<compile_context>
chip_gen: v5e
topology: v5e:2x2
jax: 0.10.0
libtpu: 0.0.40
codegen_flags: <defaults>
</compile_context>

<pallas_src>
import functools

import jax
import jax.numpy as jnp
from jax import lax
from jax.experimental import pallas as pl
from jax.experimental.pallas import tpu as pltpu

EPS = 1e-14


def _round_up(x, m):
    return (x + m - 1) // m * m


# ------------------------------ Pallas kernel -------------------------------

def _ce_kernel(ref_ref, tgt_ref, lab_ref, tlab_ref, out_ref, *, temperature):
    """Fused similarity GEMM + column softmax + label GEMM + NLL gather.

    Block shapes per grid step (b, t):
      ref_ref : (1, Nr, C)        reference features (ref-pixel major)
      tgt_ref : (1, C, NT)        target features for NT target pixels
      lab_ref : (1, Dp, Nr)       one-hot reference labels, transposed
      tlab_ref: (1, 1, NT) int32  ground-truth class per target pixel
      out_ref : (1, 1, NT)        per-pixel negative log-likelihood
    """
    ref = ref_ref[0]                                   # (Nr, C)
    tgt = tgt_ref[0]                                   # (C, NT)

    # Similarity (Nr, NT); softmax is over the Nr (ref-pixel) axis per column.
    s = jnp.dot(ref, tgt, preferred_element_type=jnp.float32) * temperature
    m = jnp.max(s, axis=0, keepdims=True)              # (1, NT)
    p = jnp.exp(s - m)                                 # (Nr, NT)
    denom = jnp.sum(p, axis=0, keepdims=True)          # (1, NT)

    # Prediction numerator: onehot-labels @ exp-scores -> (Dp, NT).
    num = jnp.dot(lab_ref[0], p, preferred_element_type=jnp.float32)
    pred = num / denom                                 # softmax-normalized probs

    # Gather the ground-truth class per column via a one-hot compare.
    labels = tlab_ref[0]                               # (1, NT) int32
    row_ids = lax.broadcasted_iota(jnp.int32, pred.shape, 0)
    onehot = (row_ids == labels).astype(jnp.float32)   # (Dp, NT)
    picked = jnp.sum(pred * onehot, axis=0, keepdims=True)   # (1, NT)

    out_ref[0] = -jnp.log(picked + EPS)


# --------------------------------- wrapper -----------------------------------

def cross_entropy_loss(ref, target, ref_label, target_label, temperature=1.0):
    """CrossEntropy.forward of the VOS module.

    ref:          (B, num_ref, C, H, W) float
    target:       (B, C, H, W)          float
    ref_label:    (B, num_ref, d, H, W) one-hot float
    target_label: (B, H, W)             int
    returns scalar mean NLL loss.
    """
    B, R, C, H, W = ref.shape
    d = ref_label.shape[2]
    Nr = R * H * W
    Nt = H * W

    # Layout glue — same permutes/reshapes as the PyTorch module.
    ref_m = jnp.transpose(ref, (0, 1, 3, 4, 2)).reshape(B, Nr, C).astype(jnp.float32)
    tgt_m = target.reshape(B, C, Nt).astype(jnp.float32)
    lab_m = jnp.transpose(ref_label, (0, 2, 1, 3, 4)).reshape(B, d, Nr).astype(jnp.float32)
    tlab = target_label.reshape(B, 1, Nt).astype(jnp.int32)

    # Pad class dim to the f32 sublane granularity and target pixels to the lane width.
    Dp = _round_up(d, 8)
    Ntp = _round_up(Nt, 128)
    NT = max(nt for nt in (512, 256, 128) if Ntp % nt == 0)  # lane-dense target tile

    if Dp != d:
        lab_m = jnp.pad(lab_m, ((0, 0), (0, Dp - d), (0, 0)))
    if Ntp != Nt:
        tgt_m = jnp.pad(tgt_m, ((0, 0), (0, 0), (0, Ntp - Nt)))
        tlab = jnp.pad(tlab, ((0, 0), (0, 0), (0, Ntp - Nt)))

    # NOTE: Nr is kept un-tiled (full block) — ~MBs of VMEM for typical VOS
    # shapes. For very large num_ref*H*W an online-softmax over Nr tiles would
    # be needed; not required at these sizes.
    grid = (B, Ntp // NT)
    out = pl.pallas_call(
        functools.partial(_ce_kernel, temperature=float(temperature)),
        grid=grid,
        in_specs=[
            pl.BlockSpec((1, Nr, C), lambda b, t: (b, 0, 0)),
            pl.BlockSpec((1, C, NT), lambda b, t: (b, 0, t)),
            pl.BlockSpec((1, Dp, Nr), lambda b, t: (b, 0, 0)),
            pl.BlockSpec((1, 1, NT), lambda b, t: (b, 0, t)),
        ],
        out_specs=pl.BlockSpec((1, 1, NT), lambda b, t: (b, 0, t)),
        out_shape=jax.ShapeDtypeStruct((B, 1, Ntp), jnp.float32),
        compiler_params=pltpu.CompilerParams(
            dimension_semantics=("parallel", "parallel")),
    )(ref_m, tgt_m, lab_m, tlab)

    # NLLLoss(reduction='mean') over all B*H*W target pixels (valid prefix only).
    return jnp.mean(out[:, 0, :Nt])


# ----------------------------- pure-JAX reference ----------------------------

def ref_loss(ref, target, ref_label, target_label, temperature=1.0):
    B, R, C, H, W = ref.shape
    d = ref_label.shape[2]
    refm = jnp.transpose(ref, (0, 1, 3, 4, 2)).reshape(B, R * H * W, C)
    tgt = target.reshape(B, C, H * W)
    sim = jnp.einsum('brc,bct->brt', refm, tgt) * temperature
    sm = jax.nn.softmax(sim, axis=1)
    lab = jnp.transpose(ref_label, (0, 2, 1, 3, 4)).reshape(B, d, R * H * W)
    pred = jnp.einsum('bdr,brt->bdt', lab, sm)          # (B, d, Nt)
    logp = jnp.log(pred + EPS)
    tl = target_label.reshape(B, 1, H * W)
    picked = jnp.take_along_axis(logp, tl, axis=1)      # (B, 1, Nt)
    return -jnp.mean(picked)


# ----------------------------------- main ------------------------------------

if __name__ == "__main__":
    key = jax.random.PRNGKey(0)
    k1, k2, k3, k4 = jax.random.split(key, 4)

    # small shapes consistent with the module:
    #   batch=2, num_ref=3, feature_dim=32, H=W=16, num_classes d=4
    B, R, C, H, W, d = 2, 3, 32, 16, 16, 4

    ref = jax.random.normal(k1, (B, R, C, H, W), jnp.float32)
    target = jax.random.normal(k2, (B, C, H, W), jnp.float32)
    rl = jax.random.randint(k3, (B, R, H, W), 0, d)
    ref_label = jnp.moveaxis(jax.nn.one_hot(rl, d, dtype=jnp.float32), -1, 2)  # (B,R,d,H,W)
    target_label = jax.random.randint(k4, (B, H, W), 0, d)

    loss = cross_entropy_loss(ref, target, ref_label, target_label, temperature=1.0)
    loss = jax.block_until_ready(loss)

    expect = jax.block_until_ready(
        ref_loss(ref, target, ref_label, target_label, temperature=1.0))
    assert jnp.allclose(loss, expect, rtol=1e-3, atol=1e-4), (
        float(loss), float(expect))

    print("KERNEL_OK")
</pallas_src>

<mosaic_0001>
module attributes {stable_mosaic.version = 11 : i64} {
  func.func @_ce_kernel(%arg0: i32, %arg1: i32, %arg2: memref<1x768x32xf32, #tpu.memory_space<vmem>>, %arg3: memref<1x32x256xf32, #tpu.memory_space<vmem>>, %arg4: memref<1x8x768xf32, #tpu.memory_space<vmem>>, %arg5: memref<1x1x256xi32, #tpu.memory_space<vmem>>, %arg6: memref<1x1x256xf32, #tpu.memory_space<vmem>>) attributes {dimension_semantics = [#tpu.dimension_semantics<parallel>, #tpu.dimension_semantics<parallel>], iteration_bounds = array<i64: 2, 1>, scalar_prefetch = 0 : i64, scratch_operands = 0 : i64, tpu.core_type = #tpu.core_type<tc>, window_params = [{transform_indices = @transform_0, window_bounds = array<i64: 1, 768, 32>}, {transform_indices = @transform_1, window_bounds = array<i64: 1, 32, 256>}, {transform_indices = @transform_2, window_bounds = array<i64: 1, 8, 768>}, {transform_indices = @transform_3, window_bounds = array<i64: 1, 1, 256>}, {transform_indices = @transform_4, window_bounds = array<i64: 1, 1, 256>}]} {
    %c0 = arith.constant 0 : index
    %c0_0 = arith.constant 0 : index
    %c0_1 = arith.constant 0 : index
    %0 = vector.load %arg2[%c0, %c0_0, %c0_1] : memref<1x768x32xf32, #tpu.memory_space<vmem>>, vector<1x768x32xf32>
    %1 = vector.shape_cast %0 : vector<1x768x32xf32> to vector<768x32xf32>
    %c0_2 = arith.constant 0 : index
    %c0_3 = arith.constant 0 : index
    %c0_4 = arith.constant 0 : index
    %2 = vector.load %arg3[%c0_2, %c0_3, %c0_4] : memref<1x32x256xf32, #tpu.memory_space<vmem>>, vector<1x32x256xf32>
    %3 = vector.shape_cast %2 : vector<1x32x256xf32> to vector<32x256xf32>
    %cst = arith.constant dense<0.000000e+00> : vector<768x256xf32>
    %4 = tpu.matmul %1, %3, %cst {dimension_numbers = #tpu.dot_dimension_numbers<[1], [0], [0], [1], [0, 0, 1, 1], [], []>} : vector<768x32xf32>, vector<32x256xf32>, vector<768x256xf32> -> vector<768x256xf32>
    %cst_5 = arith.constant 1.000000e+00 : f32
    %5 = vector.broadcast %cst_5 : f32 to vector<768x256xf32>
    %6 = arith.mulf %4, %5 : vector<768x256xf32>
    %cst_6 = arith.constant dense<0xFF800000> : vector<256xf32>
    %7 = vector.multi_reduction <maximumf>, %6, %cst_6 [0] : vector<768x256xf32> to vector<256xf32>
    %8 = vector.shape_cast %7 : vector<256xf32> to vector<1x256xf32>
    %9 = vector.broadcast %8 : vector<1x256xf32> to vector<768x256xf32>
    %10 = arith.subf %6, %9 : vector<768x256xf32>
    %11 = math.exp %10 : vector<768x256xf32>
    %cst_7 = arith.constant dense<0.000000e+00> : vector<256xf32>
    %12 = vector.multi_reduction <add>, %11, %cst_7 [0] : vector<768x256xf32> to vector<256xf32>
    %13 = vector.shape_cast %12 : vector<256xf32> to vector<1x256xf32>
    %c0_8 = arith.constant 0 : index
    %c0_9 = arith.constant 0 : index
    %c0_10 = arith.constant 0 : index
    %14 = vector.load %arg4[%c0_8, %c0_9, %c0_10] : memref<1x8x768xf32, #tpu.memory_space<vmem>>, vector<1x8x768xf32>
    %15 = vector.shape_cast %14 : vector<1x8x768xf32> to vector<8x768xf32>
    %cst_11 = arith.constant dense<0.000000e+00> : vector<8x256xf32>
    %16 = tpu.matmul %15, %11, %cst_11 {dimension_numbers = #tpu.dot_dimension_numbers<[1], [0], [0], [1], [0, 0, 1, 1], [], []>} : vector<8x768xf32>, vector<768x256xf32>, vector<8x256xf32> -> vector<8x256xf32>
    %17 = vector.broadcast %13 : vector<1x256xf32> to vector<8x256xf32>
    %18 = arith.divf %16, %17 : vector<8x256xf32>
    %c0_12 = arith.constant 0 : index
    %c0_13 = arith.constant 0 : index
    %c0_14 = arith.constant 0 : index
    %19 = vector.load %arg5[%c0_12, %c0_13, %c0_14] : memref<1x1x256xi32, #tpu.memory_space<vmem>>, vector<1x1x256xi32>
    %20 = vector.shape_cast %19 : vector<1x1x256xi32> to vector<1x256xi32>
    %21 = tpu.iota {dimensions = array<i32: 0>} : vector<8x256xi32>
    %22 = vector.broadcast %20 : vector<1x256xi32> to vector<8x256xi32>
    %23 = arith.cmpi eq, %21, %22 : vector<8x256xi32>
    %24 = arith.extui %23 : vector<8x256xi1> to vector<8x256xi32>
    %25 = arith.sitofp %24 : vector<8x256xi32> to vector<8x256xf32>
    %26 = arith.mulf %18, %25 : vector<8x256xf32>
    %cst_15 = arith.constant dense<0.000000e+00> : vector<256xf32>
    %27 = vector.multi_reduction <add>, %26, %cst_15 [0] : vector<8x256xf32> to vector<256xf32>
    %28 = vector.shape_cast %27 : vector<256xf32> to vector<1x256xf32>
    %cst_16 = arith.constant 9.99999982E-15 : f32
    %29 = vector.broadcast %cst_16 : f32 to vector<1x256xf32>
    %30 = arith.addf %28, %29 : vector<1x256xf32>
    %31 = math.log %30 : vector<1x256xf32>
    %cst_17 = arith.constant 0.000000e+00 : f32
    %32 = vector.broadcast %cst_17 : f32 to vector<1x256xf32>
    %33 = arith.subf %32, %31 : vector<1x256xf32>
    %c0_18 = arith.constant 0 : index
    %c0_19 = arith.constant 0 : index
    %c0_20 = arith.constant 0 : index
    %34 = vector.load %arg6[%c0_18, %c0_19, %c0_20] : memref<1x1x256xf32, #tpu.memory_space<vmem>>, vector<1x1x256xf32>
    %35 = vector.shape_cast %34 : vector<1x1x256xf32> to vector<1x256xf32>
    %36 = vector.shape_cast %33 : vector<1x256xf32> to vector<1x1x256xf32>
    tpu.vector_store %arg6[%c0_18, %c0_19, %c0_20], %36 {strides = array<i32>} : memref<1x1x256xf32, #tpu.memory_space<vmem>>, vector<1x1x256xf32>,
    return
  }
  func.func @transform_0(%arg0: i32, %arg1: i32) -> (i32, i32, i32) {
    %c0_i32 = arith.constant 0 : i32
    %c0_i32_0 = arith.constant 0 : i32
    %c0_i32_1 = arith.constant 0 : i32
    return %arg0, %c0_i32, %c0_i32_0 : i32, i32, i32
  }
  func.func @transform_1(%arg0: i32, %arg1: i32) -> (i32, i32, i32) {
    %c0_i32 = arith.constant 0 : i32
    %c0_i32_0 = arith.constant 0 : i32
    return %arg0, %c0_i32, %arg1 : i32, i32, i32
  }
  func.func @transform_2(%arg0: i32, %arg1: i32) -> (i32, i32, i32) {
    %c0_i32 = arith.constant 0 : i32
    %c0_i32_0 = arith.constant 0 : i32
    %c0_i32_1 = arith.constant 0 : i32
    return %arg0, %c0_i32, %c0_i32_0 : i32, i32, i32
  }
  func.func @transform_3(%arg0: i32, %arg1: i32) -> (i32, i32, i32) {
    %c0_i32 = arith.constant 0 : i32
    %c0_i32_0 = arith.constant 0 : i32
    return %arg0, %c0_i32, %arg1 : i32, i32, i32
  }
  func.func @transform_4(%arg0: i32, %arg1: i32) -> (i32, i32, i32) {
    %c0_i32 = arith.constant 0 : i32
    %c0_i32_0 = arith.constant 0 : i32
    return %arg0, %c0_i32, %arg1 : i32, i32, i32
  }
}

</mosaic_0001>

<bundles_post_ra>
// kernel: tpu_custom_call.1
= control target key start
LH: loop header
LB: loop body
LE: loop exit
PB: predicated region body
PF: predicated region fallthrough
CT: control target
= control target key end

     0   :  { %9 = vsyncpa [#allocation3], 0  ;;  %s5719_s0 = inlined_call_operand.vmem [shape: f32[2,768,32], index: 0, kind: input, shape index: {}]   ;;  %s5720_s1 = inlined_call_operand.vmem [shape: f32[2,32,256], index: 1, kind: input, shape index: {}]   ;;  %s5721_s2 = inlined_call_operand.vmem [shape: f32[2,8,768], index: 2, kind: input, shape index: {}]   ;;  %s5722_s3 = inlined_call_operand.vmem [shape: s32[2,1,256], index: 3, kind: input, shape index: {}]   ;;  %s5723_s4 = inlined_call_operand.hbm [shape: f32[2,1,256], index: 4, kind: output, shape index: {}]  }
   0x1   :  { %11 = vsyncpa [#allocation3 + $0x1], 0  ;;  %s3509_s15 = smov 0   ;;  %s3511_s16 = smov 0  }
   0x2   :  { %s3513_s17 = smov 0   ;;  %s3515_s18 = smov 0  }
   0x3   :  { %s3517_s19 = smov 0   ;;  %s3519_s20 = smov 0  }
   0x4 LB: > { %s2735_s21 = sadd.s32 4294967295, %s3481_s20   ;;  %s2736_s22 = sadd.s32 4294967294, %s3481_s20   ;;  %s3481_s20 = sphi %s3519_s20, %s17_s20   ;;  %s3477_s19 = sphi %s3517_s19, %s6554_s19   ;;  %s3473_s18 = sphi %s3515_s18, %s6553_s18   ;;  %s3469_s17 = sphi %s3513_s17, %s6552_s17   ;;  %s3465_s16 = sphi %s3511_s16, %s6551_s16   ;;  %s3461_s15 = sphi %s3509_s15, %s6550_s15  }
   0x5   : > { %s29_s23 = sadd.s32 1, %s3477_s19  ;;  %s146_s24 = sadd.s32 1, %s3469_s17 }
   0x6   : > { %p31_p0 = scmp.ge.s32.totalorder %s29_s23, 2  ;;  %p156_p1 = scmp.ne.s32.totalorder %s3469_s17, %s3465_s16 }
   0x7   : > { %p157_p2 = scmp.eq.s32.totalorder %s2735_s21, 1  ;;  %p162_p3 = scmp.ne.s32.totalorder %s3465_s16, %s3461_s15 }
   0x8   : > { %s6556_s23 = smov (%p31_p0, %s29_s23), 0  ;;  %p163_p5 = scmp.eq.s32.totalorder %s2736_s22, 1 }
   0x9   : > { %p3549_p4 = por %p157_p2, %p156_p1  ;;  %s141_s26 = ssub.s32 %s3477_s19, %s6556_s23 }
   0xa   : > { %p2739_p6 = scmp.ge.s32.totalorder %s3481_s20, 1  ;;  %p144_p7 = scmp.eq.s32.totalorder %s141_s26, 0 }
   0xb   : > { %p3556_p8 = por %p163_p5, %p162_p3  ;;  %p222_p9 = scmp.lt.s32.totalorder %s3481_s20, 3 }
   0xc   : > { %s3562_s28 = scalar_select %p144_p7, %s3469_s17, %s146_s24  }
   0xd   : > { %p223_p10 = pnand %p2739_p6, %p222_p9 }
   0xf   : > { %226 = sbr.rel (%p223_p10) target bundleno = 1136 (0x470), region = 36 }
  0x14   : > { %p270_p11 = scmp.lt.s32.totalorder %s3473_s18, 1  ;;  %vm404_vm0 = vcmask 261120   ;;  %s2941_s6 = sshll.u32 %s3473_s18, 1  ;;  %vm2595_vm11 = vcmask 1040384  }
  0x15   : > { %s2616_s9 = scalar_lea.hbm %s5723_s4, %s2941_s6  ;;  %s3423_s24 = scalar_lea.hbm %s5723_s4, 4 }
  0x16   : > { %s3566_s29 = scalar_select %p270_p11, %s3473_s18, 1 }
  0x18   : > { %s2953_s30 = smul.u32 768, %s3566_s29  ;;  %s2944_s5 = sshll.u32 %s3566_s29, 6 }
  0x19   : > { %s283_s8 = scalar_lea.vmem %s5720_s1, %s2944_s5  ;;  %s2954_s12 = smul.u32 48, %s3566_s29 }
  0x1a   : > { %v402_v0 = vld [vmem:[%s283_s8 + $0x30] sm:$0xff]  ;;  %v403_v1 = vld [vmem:[%s283_s8 + $0x38] sm:$0xff]  ;;  %v400_v2 = vld [vmem:[%s283_s8 + $0x20] sm:$0xff]  ;;  %s3576_s11 = scalar_lea.vmem %s5719_s0, %s2953_s30  ;;  %s2745_s22 = sshll.u32 %s3566_s29, 1 }
  0x1b   : > { %705 = vmatpush.msra.mxu0 %v402_v0  ;;  %1010 = vmatpush.msra.mxu1 %v403_v1  ;;  %v401_v3 = vld [vmem:[%s283_s8 + $0x28] sm:$0xff]  ;;  %v398_v4 = vld [vmem:[%s283_s8 + $0x10] sm:$0xff]  ;;  %v399_v5 = vld [vmem:[%s283_s8 + $0x18] sm:$0xff]  ;;  %s5251_s21 = scalar_lea.vmem %s5721_s2, %s2954_s12  ;;  %s297_s30 = scalar_lea.vmem %s5722_s3, %s2745_s22 }
  0x1c   : > { %2949 = vmatpush.msra.mxu3 %v403_v1  ;;  %2945 = vmatpush.msra.mxu2 %v402_v0  ;;  %v396_v6 = vld [vmem:[%s283_s8] sm:$0xff]  ;;  %v397_v7 = vld [vmem:[%s283_s8 + $0x8] sm:$0xff]  ;;  %v302_v12 = vld [vmem:[%s3576_s11 + $0x10] sm:$0xff]  ;;  %s267_s29 = sand.u32 1, %s3465_s16   ;;  %s2620_s12 = sshll.u32 %s2616_s9, 4  ;;  %s2621_s12 = int_to_ptr.hbm [resolvable:$true] %s2620_s12 }
  0x1d   : > { %706 = vmatpush.msra.mxu0 %v400_v2  ;;  %1011 = vmatpush.msra.mxu1 %v401_v3  ;;  %v300_v8 = vld [vmem:[%s3576_s11] sm:$0xff]  ;;  %v301_v10 = vld [vmem:[%s3576_s11 + $0x8] sm:$0xff]  ;;  %v362_v13 = vld [vmem:[%s3576_s11 + $0x1f0] sm:$0xff]  ;;  %s2740_s5 = sshll.u32 %s267_s29, 1  ;;  %s2604_s18 = scalar_lea.sflag [#allocation3], %s267_s29 }
  0x1e   : > { %2950 = vmatpush.msra.mxu3 %v401_v3  ;;  %2946 = vmatpush.msra.mxu2 %v400_v2  ;;  %v360_v9 = vld [vmem:[%s3576_s11 + $0x1e0] sm:$0xff]  ;;  %v361_v11 = vld [vmem:[%s3576_s11 + $0x1e8] sm:$0xff]  ;;  %v303_v14 = vld [vmem:[%s3576_s11 + $0x18] sm:$0xff]  ;;  %s269_s10 = scalar_lea.vmem [#allocation2], %s2740_s5  ;;  %s3417_s13 = sshra.s32 %s2621_s12, 4  ;;  %s3418_s13 = int_to_ptr.hbm [resolvable:$true] %s3417_s13 }
  0x1f   : > { %707 = vmatpush.msra.mxu0 %v398_v4  ;;  %1012 = vmatpush.msra.mxu1 %v399_v5  ;;  %v363_v15 = vld [vmem:[%s3576_s11 + $0x1f8] sm:$0xff]  ;;  %v304_v16 = vld [vmem:[%s3576_s11 + $0x20] sm:$0xff]  ;;  %v305_v18 = vld [vmem:[%s3576_s11 + $0x28] sm:$0xff]  ;;  %s3419_s14 = scalar_lea.hbm %s3418_s13, 2  ;;  %p3424_p1 = scmp.lt.s32.totalorder %s3418_s13, %s5723_s4 }
  0x20   : > { %2951 = vmatpush.msra.mxu3 %v399_v5  ;;  %2947 = vmatpush.msra.mxu2 %v398_v4  ;;  %v364_v17 = vld [vmem:[%s3576_s11 + $0x200] sm:$0xff]  ;;  %v365_v19 = vld [vmem:[%s3576_s11 + $0x208] sm:$0xff]  ;;  %v306_v20 = vld [vmem:[%s3576_s11 + $0x30] sm:$0xff]  ;;  %p3420_p12 = scmp.ne.s32.totalorder %s3418_s13, %s3419_s14  ;;  %p3425_p2 = scmp.lt.s32.totalorder %s3423_s24, %s3419_s14 }
  0x21   : > { %708 = vmatpush.msra.mxu0 %v396_v6  ;;  %1013 = vmatpush.msra.mxu1 %v397_v7  ;;  %v366_v21 = vld [vmem:[%s3576_s11 + $0x210] sm:$0xff]  ;;  %v307_v22 = vld [vmem:[%s3576_s11 + $0x38] sm:$0xff]  ;;  %v308_v24 = vld [vmem:[%s3576_s11 + $0x40] sm:$0xff] }
  0x22   : > { %2746 = vmatmul.msk.f32.vlgmr.msra.gmra.mxu0 %vm404_vm0, %v300_v8  ;;  %2842 = vmatmul.msk.f32.vlgmr.msra.gmra.mxu1 %vm404_vm0, %v300_v8  ;;  %v367_v23 = vld [vmem:[%s3576_s11 + $0x218] sm:$0xff]  ;;  %v368_v26 = vld [vmem:[%s3576_s11 + $0x220] sm:$0xff]  ;;  %v309_v27 = vld [vmem:[%s3576_s11 + $0x48] sm:$0xff]  ;;  %p3421_p13 = pnand %p3420_p12, %p3549_p4  ;;  %p3426_p3 = por %p3425_p2, %p3424_p1 }
  0x23   : > { %2952 = vmatpush.msra.mxu3 %v397_v7  ;;  %2948 = vmatpush.msra.mxu2 %v396_v6  ;;  %v3620_v25 = vld [vmem:[%s3576_s11 + $0x1d8] sm:$0xff]  ;;  %v369_v28 = vld [vmem:[%s3576_s11 + $0x228] sm:$0xff]  ;;  %v310_v29 = vld [vmem:[%s3576_s11 + $0x50] sm:$0xff] }
  0x24   : > { %2806 = vmatmul.msk.f32.vlgmr.msra.gmra.mxu2 %vm404_vm0, %v360_v9  ;;  %2901 = vmatmul.msk.f32.vlgmr.msra.gmra.mxu3 %vm404_vm0, %v3620_v25  ;;  %v370_v30 = vld [vmem:[%s3576_s11 + $0x230] sm:$0xff]  ;;  %v311_v31 = vld [vmem:[%s3576_s11 + $0x58] sm:$0xff]  ;;  %v312_v33 = vld [vmem:[%s3576_s11 + $0x60] sm:$0xff]  ;;  %p3422_p0 = pneg %p3421_p13 }
  0x25   : > { %v3643_v32 = vld [vmem:[%s3576_s11 + $0x238] sm:$0xff]  ;;  %v3652_v34 = vld [vmem:[%s3576_s11 + $0x240] sm:$0xff]  ;;  %v313_v35 = vld [vmem:[%s3576_s11 + $0x68] sm:$0xff] }
  0x26   : > { %v3661_v36 = vld [vmem:[%s3576_s11 + $0x248] sm:$0xff]  ;;  %v314_v37 = vld [vmem:[%s3576_s11 + $0x70] sm:$0xff]  ;;  %v315_v39 = vld [vmem:[%s3576_s11 + $0x78] sm:$0xff]  ;;  %p3427_p5 = pnand %p3426_p3, %p3422_p0 }
  0x27   : > { %v3670_v38 = vld [vmem:[%s3576_s11 + $0x250] sm:$0xff]  ;;  %v3679_v40 = vld [vmem:[%s3576_s11 + $0x258] sm:$0xff]  ;;  %v316_v43 = vld [vmem:[%s3576_s11 + $0x80] sm:$0xff] }
  0x28   : > { %v3692_v44 = vld [vmem:[%s3576_s11 + $0x260] sm:$0xff]  ;;  %v317_v47 = vld [vmem:[%s3576_s11 + $0x88] sm:$0xff]  ;;  %v318_v51 = vld [vmem:[%s3576_s11 + $0x90] sm:$0xff] }
  0x29   : > { %v3705_v48 = vld [vmem:[%s3576_s11 + $0x268] sm:$0xff]  ;;  %v3718_v52 = vld [vmem:[%s3576_s11 + $0x270] sm:$0xff]  ;;  %v319_v55 = vld [vmem:[%s3576_s11 + $0x98] sm:$0xff] }
  0x2a   : > { %2747 = vmatmul.msk.f32.gmra.mxu0 %vm404_vm0, %v301_v10  ;;  %2843 = vmatmul.msk.f32.gmra.mxu1 %vm404_vm0, %v301_v10  ;;  %v3731_v56 = vld [vmem:[%s3576_s11 + $0x278] sm:$0xff]  ;;  %v320_v59 = vld [vmem:[%s3576_s11 + $0xa0] sm:$0xff]  ;;  %v321_v63 = vld [vmem:[%s3576_s11 + $0xa8] sm:$0xff] }
  0x2b   : > { %v3745_v60 = vld [vmem:[%s3576_s11 + $0x280] sm:$0xff]  ;;  %v3759_v0 = vld [vmem:[%s3576_s11 + $0x288] sm:$0xff]  ;;  %v322_v3 = vld [vmem:[%s3576_s11 + $0xb0] sm:$0xff] }
  0x2c   : > { %2807 = vmatmul.msk.f32.gmra.mxu2 %vm404_vm0, %v361_v11  ;;  %2902 = vmatmul.msk.f32.gmra.mxu3 %vm404_vm0, %v360_v9  ;;  %v3773_v4 = vld [vmem:[%s3576_s11 + $0x290] sm:$0xff]  ;;  %v323_v7 = vld [vmem:[%s3576_s11 + $0xb8] sm:$0xff] }
  0x2d   : > { %v3787_v8 = vld [vmem:[%s3576_s11 + $0x298] sm:$0xff] }
  0x32   : > { %2748 = vmatmul.msk.f32.gmra.mxu0 %vm404_vm0, %v302_v12  ;;  %2844 = vmatmul.msk.f32.gmra.mxu1 %vm404_vm0, %v302_v12  ;;  %v324_v12 = vld [vmem:[%s3576_s11 + $0xc0] sm:$0xff] }
  0x34   : > { %2808 = vmatmul.msk.f32.gmra.mxu2 %vm404_vm0, %v362_v13  ;;  %2903 = vmatmul.msk.f32.gmra.mxu3 %vm404_vm0, %v361_v11 }
  0x3a   : > { %2749 = vmatmul.msk.f32.gmra.mxu0 %vm404_vm0, %v303_v14  ;;  %2845 = vmatmul.msk.f32.gmra.mxu1 %vm404_vm0, %v303_v14 }
  0x3c   : > { %2809 = vmatmul.msk.f32.gmra.mxu2 %vm404_vm0, %v363_v15  ;;  %2904 = vmatmul.msk.f32.gmra.mxu3 %vm404_vm0, %v362_v13  ;;  %v3803_v13 = vld [vmem:[%s3576_s11 + $0x2a0] sm:$0xff] }
  0x42   : > { %2750 = vmatmul.msk.f32.gmra.mxu0 %vm404_vm0, %v304_v16  ;;  %2846 = vmatmul.msk.f32.gmra.mxu1 %vm404_vm0, %v304_v16 }
  0x44   : > { %2810 = vmatmul.msk.f32.gmra.mxu2 %vm404_vm0, %v364_v17  ;;  %2905 = vmatmul.msk.f32.gmra.mxu3 %vm404_vm0, %v363_v15 }
  0x4a   : > { %2751 = vmatmul.msk.f32.gmra.mxu0 %vm404_vm0, %v305_v18  ;;  %2847 = vmatmul.msk.f32.gmra.mxu1 %vm404_vm0, %v305_v18  ;;  %v3819_v18 = vld [vmem:[%s3576_s11 + $0x2a8] sm:$0xff] }
  0x4c   : > { %2811 = vmatmul.msk.f32.gmra.mxu2 %vm404_vm0, %v365_v19  ;;  %2906 = vmatmul.msk.f32.gmra.mxu3 %vm404_vm0, %v364_v17  ;;  %v325_v17 = vld [vmem:[%s3576_s11 + $0xc8] sm:$0xff] }
  0x52   : > { %2752 = vmatmul.msk.f32.gmra.mxu0 %vm404_vm0, %v306_v20  ;;  %2848 = vmatmul.msk.f32.gmra.mxu1 %vm404_vm0, %v306_v20 }
  0x54   : > { %2812 = vmatmul.msk.f32.gmra.mxu2 %vm404_vm0, %v366_v21  ;;  %2907 = vmatmul.msk.f32.gmra.mxu3 %vm404_vm0, %v365_v19 }
  0x5a   : > { %2753 = vmatmul.msk.f32.gmra.mxu0 %vm404_vm0, %v307_v22  ;;  %2849 = vmatmul.msk.f32.gmra.mxu1 %vm404_vm0, %v307_v22  ;;  %v326_v22 = vld [vmem:[%s3576_s11 + $0xd0] sm:$0xff] }
  0x5c   : > { %2813 = vmatmul.msk.f32.gmra.mxu2 %vm404_vm0, %v367_v23  ;;  %2908 = vmatmul.msk.f32.gmra.mxu3 %vm404_vm0, %v366_v21 }
  0x62   : > { %2754 = vmatmul.msk.f32.gmra.mxu0 %vm404_vm0, %v308_v24  ;;  %2850 = vmatmul.msk.f32.gmra.mxu1 %vm404_vm0, %v308_v24 }
  0x64   : > { %2814 = vmatmul.msk.f32.gmra.mxu2 %vm404_vm0, %v368_v26  ;;  %2909 = vmatmul.msk.f32.gmra.mxu3 %vm404_vm0, %v367_v23  ;;  %v3835_v23 = vld [vmem:[%s3576_s11 + $0x2b0] sm:$0xff] }
  0x6a   : > { %2755 = vmatmul.msk.f32.gmra.mxu0 %vm404_vm0, %v309_v27  ;;  %2851 = vmatmul.msk.f32.gmra.mxu1 %vm404_vm0, %v309_v27  ;;  %v327_v27 = vld [vmem:[%s3576_s11 + $0xd8] sm:$0xff] }
  0x6c   : > { %2815 = vmatmul.msk.f32.gmra.mxu2 %vm404_vm0, %v369_v28  ;;  %2910 = vmatmul.msk.f32.gmra.mxu3 %vm404_vm0, %v368_v26 }
  0x72   : > { %2756 = vmatmul.msk.f32.gmra.mxu0 %vm404_vm0, %v310_v29  ;;  %2852 = vmatmul.msk.f32.gmra.mxu1 %vm404_vm0, %v310_v29  ;;  %v3851_v29 = vld [vmem:[%s3576_s11 + $0x2b8] sm:$0xff] }
  0x74   : > { %2816 = vmatmul.msk.f32.gmra.mxu2 %vm404_vm0, %v370_v30  ;;  %2911 = vmatmul.msk.f32.gmra.mxu3 %vm404_vm0, %v369_v28 }
  0x7a   : > { %2757 = vmatmul.msk.f32.gmra.mxu0 %vm404_vm0, %v311_v31  ;;  %2853 = vmatmul.msk.f32.gmra.mxu1 %vm404_vm0, %v311_v31 }
  0x7c   : > { %2817 = vmatmul.msk.f32.gmra.mxu2 %vm404_vm0, %v3643_v32  ;;  %2912 = vmatmul.msk.f32.gmra.mxu3 %vm404_vm0, %v370_v30 }
  0x82   : > { %2758 = vmatmul.msk.f32.gmra.mxu0 %vm404_vm0, %v312_v33  ;;  %2854 = vmatmul.msk.f32.gmra.mxu1 %vm404_vm0, %v312_v33  ;;  %v3865_v33 = vld [vmem:[%s3576_s11 + $0x2c0] sm:$0xff] }
  0x84   : > { %2818 = vmatmul.msk.f32.gmra.mxu2 %vm404_vm0, %v3652_v34  ;;  %2913 = vmatmul.msk.f32.gmra.mxu3 %vm404_vm0, %v3643_v32  ;;  %v328_v32 = vld [vmem:[%s3576_s11 + $0xe0] sm:$0xff] }
  0x8a   : > { %2759 = vmatmul.msk.f32.gmra.mxu0 %vm404_vm0, %v313_v35  ;;  %2855 = vmatmul.msk.f32.gmra.mxu1 %vm404_vm0, %v313_v35 }
  0x8c   : > { %2819 = vmatmul.msk.f32.gmra.mxu2 %vm404_vm0, %v3661_v36  ;;  %2914 = vmatmul.msk.f32.gmra.mxu3 %vm404_vm0, %v3652_v34 }
  0x92   : > { %2760 = vmatmul.msk.f32.gmra.mxu0 %vm404_vm0, %v314_v37  ;;  %2856 = vmatmul.msk.f32.gmra.mxu1 %vm404_vm0, %v314_v37  ;;  %v329_v37 = vld [vmem:[%s3576_s11 + $0xe8] sm:$0xff] }
  0x94   : > { %2820 = vmatmul.msk.f32.gmra.mxu2 %vm404_vm0, %v3670_v38  ;;  %2915 = vmatmul.msk.f32.gmra.mxu3 %vm404_vm0, %v3661_v36 }
  0x9a   : > { %2761 = vmatmul.msk.f32.gmra.mxu0 %vm404_vm0, %v315_v39  ;;  %2857 = vmatmul.msk.f32.gmra.mxu1 %vm404_vm0, %v315_v39 }
  0x9c   : > { %2821 = vmatmul.msk.f32.gmra.mxu2 %vm404_vm0, %v3679_v40  ;;  %2916 = vmatmul.msk.f32.gmra.mxu3 %vm404_vm0, %v3670_v38  ;;  %v389_v38 = vld [vmem:[%s3576_s11 + $0x2c8] sm:$0xff] }
  0x9f   : > { %v3685_v41 = vpop.f32.mrf.mxu0  ;;  %v3687_v42 = vpop.f32.mrf.mxu1 }
  0xa0   : > { %5979 = vst [vmem:[#allocation5_spill] sm:$0xff] %v3685_v41 }
  0xa2   : > { %2762 = vmatmul.msk.f32.gmra.mxu0 %vm404_vm0, %v316_v43  ;;  %2858 = vmatmul.msk.f32.gmra.mxu1 %vm404_vm0, %v316_v43  ;;  %v330_v43 = vld [vmem:[%s3576_s11 + $0xf0] sm:$0xff] }
  0xa4   : > { %2822 = vmatmul.msk.f32.gmra.mxu2 %vm404_vm0, %v3692_v44  ;;  %2917 = vmatmul.msk.f32.gmra.mxu3 %vm404_vm0, %v3679_v40 }
  0xa7   : > { %v3698_v45 = vpop.f32.mrf.mxu0  ;;  %v3700_v46 = vpop.f32.mrf.mxu1 }
  0xa8   : > { %5980 = vst [vmem:[#allocation6_spill] sm:$0xff] %v3698_v45  ;;  %v3791_v9 = vpop.f32.mrf.mxu2 }
  0xa9   : > { %5981 = vst [vmem:[#allocation7_spill] sm:$0xff] %v3700_v46 }
  0xaa   : > { %2763 = vmatmul.msk.f32.gmra.mxu0 %vm404_vm0, %v317_v47  ;;  %2859 = vmatmul.msk.f32.gmra.mxu1 %vm404_vm0, %v317_v47  ;;  %5991 = vst [vmem:[#allocation17_spill] sm:$0xff] %v3791_v9  ;;  %v3895_v47 = vpop.f32.mrf.mxu3 }
  0xab   : > { %6004 = vst [vmem:[#allocation30_spill] sm:$0xff] %v3895_v47 }
  0xac   : > { %2823 = vmatmul.msk.f32.gmra.mxu2 %vm404_vm0, %v3705_v48  ;;  %2918 = vmatmul.msk.f32.gmra.mxu3 %vm404_vm0, %v3692_v44 }
  0xaf   : > { %v3711_v49 = vpop.f32.mrf.mxu0  ;;  %v3713_v50 = vpop.f32.mrf.mxu1 }
  0xb0   : > { %5982 = vst [vmem:[#allocation8_spill] sm:$0xff] %v3711_v49  ;;  %v3807_v14 = vpop.f32.mrf.mxu2 }
  0xb1   : > { %5983 = vst [vmem:[#allocation9_spill] sm:$0xff] %v3713_v50 }
  0xb2   : > { %2764 = vmatmul.msk.f32.gmra.mxu0 %vm404_vm0, %v318_v51  ;;  %2860 = vmatmul.msk.f32.gmra.mxu1 %vm404_vm0, %v318_v51  ;;  %5993 = vst [vmem:[#allocation19_spill] sm:$0xff] %v3807_v14  ;;  %v331_v51 = vld [vmem:[%s3576_s11 + $0xf8] sm:$0xff] }
  0xb4   : > { %2824 = vmatmul.msk.f32.gmra.mxu2 %vm404_vm0, %v3718_v52  ;;  %2919 = vmatmul.msk.f32.gmra.mxu3 %vm404_vm0, %v3705_v48 }
  0xb7   : > { %v3724_v53 = vpop.f32.mrf.mxu0  ;;  %v3726_v54 = vpop.f32.mrf.mxu1 }
  0xb8   : > { %5984 = vst [vmem:[#allocation10_spill] sm:$0xff] %v3724_v53  ;;  %v3825_v19 = vpop.f32.mrf.mxu2  ;;  %v351_v53 = vld [vmem:[%s3576_s11 + $0x198] sm:$0xff] }
  0xb9   : > { %5985 = vst [vmem:[#allocation11_spill] sm:$0xff] %v3726_v54 }
  0xba   : > { %2765 = vmatmul.msk.f32.gmra.mxu0 %vm404_vm0, %v319_v55  ;;  %2861 = vmatmul.msk.f32.gmra.mxu1 %vm404_vm0, %v319_v55  ;;  %5995 = vst [vmem:[#allocation21_spill] sm:$0xff] %v3825_v19  ;;  %v3906_v55 = vpop.f32.mrf.mxu3 }
  0xbb   : > { %6007 = vst [vmem:[#allocation33_spill] sm:$0xff] %v3906_v55 }
  0xbc   : > { %2825 = vmatmul.msk.f32.gmra.mxu2 %vm404_vm0, %v3731_v56  ;;  %2920 = vmatmul.msk.f32.gmra.mxu3 %vm404_vm0, %v3718_v52 }
  0xbf   : > { %v3737_v57 = vpop.f32.mrf.mxu0  ;;  %v3739_v58 = vpop.f32.mrf.mxu1 }
  0xc0   : > { %5986 = vst [vmem:[#allocation12_spill] sm:$0xff] %v3737_v57  ;;  %v3846_v28 = vpop.f32.mrf.mxu2 }
  0xc1   : > { %5998 = vst [vmem:[#allocation24_spill] sm:$0xff] %v3846_v28 }
  0xc2   : > { %2766 = vmatmul.msk.f32.gmra.mxu0 %vm404_vm0, %v320_v59  ;;  %2862 = vmatmul.msk.f32.gmra.mxu1 %vm404_vm0, %v320_v59  ;;  %v332_v59 = vld [vmem:[%s3576_s11 + $0x100] sm:$0xff] }
  0xc4   : > { %2826 = vmatmul.msk.f32.gmra.mxu2 %vm404_vm0, %v3745_v60  ;;  %2921 = vmatmul.msk.f32.gmra.mxu3 %vm404_vm0, %v3731_v56 }
  0xc7   : > { %v3751_v61 = vpop.f32.mrf.mxu0  ;;  %v3753_v62 = vpop.f32.mrf.mxu1 }
  0xc8   : > { %5987 = vst [vmem:[#allocation13_spill] sm:$0xff] %v3751_v61  ;;  %v3869_v34 = vpop.f32.mrf.mxu2 }
  0xc9   : > { %6000 = vst [vmem:[#allocation26_spill] sm:$0xff] %v3869_v34 }
  0xca   : > { %2767 = vmatmul.msk.f32.gmra.mxu0 %vm404_vm0, %v321_v63  ;;  %2863 = vmatmul.msk.f32.gmra.mxu1 %vm404_vm0, %v321_v63 }
  0xcc   : > { %2827 = vmatmul.msk.f32.gmra.mxu2 %vm404_vm0, %v3759_v0  ;;  %2922 = vmatmul.msk.f32.gmra.mxu3 %vm404_vm0, %v3745_v60 }
  0xcf   : > { %v3765_v1 = vpop.f32.mrf.mxu0  ;;  %v3767_v2 = vpop.f32.mrf.mxu1 }
  0xd0   : > { %5988 = vst [vmem:[#allocation14_spill] sm:$0xff] %v3765_v1  ;;  %v3883_v39 = vpop.f32.mrf.mxu2 }
  0xd1   : > { %6002 = vst [vmem:[#allocation28_spill] sm:$0xff] %v3883_v39 }
  0xd2   : > { %2768 = vmatmul.msk.f32.gmra.mxu0 %vm404_vm0, %v322_v3  ;;  %2864 = vmatmul.msk.f32.gmra.mxu1 %vm404_vm0, %v322_v3  ;;  %v3920_v3 = vpop.f32.mrf.mxu3 }
  0xd3   : > { %6011 = vst [vmem:[#allocation37_spill] sm:$0xff] %v3920_v3 }
  0xd4   : > { %2828 = vmatmul.msk.f32.gmra.mxu2 %vm404_vm0, %v3773_v4  ;;  %2923 = vmatmul.msk.f32.gmra.mxu3 %vm404_vm0, %v3759_v0  ;;  %v333_v0 = vld [vmem:[%s3576_s11 + $0x108] sm:$0xff] }
  0xd7   : > { %v3779_v5 = vpop.f32.mrf.mxu0  ;;  %v3781_v6 = vpop.f32.mrf.mxu1 }
  0xd8   : > { %5989 = vst [vmem:[#allocation15_spill] sm:$0xff] %v3779_v5 }
  0xd9   : > { %5990 = vst [vmem:[#allocation16_spill] sm:$0xff] %v3781_v6 }
  0xda   : > { %2769 = vmatmul.msk.f32.gmra.mxu0 %vm404_vm0, %v323_v7  ;;  %2865 = vmatmul.msk.f32.gmra.mxu1 %vm404_vm0, %v323_v7 }
  0xdc   : > { %2829 = vmatmul.msk.f32.gmra.mxu2 %vm404_vm0, %v3787_v8  ;;  %2924 = vmatmul.msk.f32.gmra.mxu3 %vm404_vm0, %v3773_v4 }
  0xdf   : > { %v3795_v10 = vpop.f32.mrf.mxu0  ;;  %v3797_v11 = vpop.f32.mrf.mxu1 }
  0xe0   : > { %5992 = vst [vmem:[#allocation18_spill] sm:$0xff] %v3795_v10 }
  0xe2   : > { %2770 = vmatmul.msk.f32.gmra.mxu0 %vm404_vm0, %v324_v12  ;;  %2866 = vmatmul.msk.f32.gmra.mxu1 %vm404_vm0, %v324_v12  ;;  %v3931_v12 = vpop.f32.mrf.mxu3 }
  0xe3   : > { %6014 = vst [vmem:[#allocation40_spill] sm:$0xff] %v3931_v12 }
  0xe4   : > { %2830 = vmatmul.msk.f32.gmra.mxu2 %vm404_vm0, %v3803_v13  ;;  %2925 = vmatmul.msk.f32.gmra.mxu3 %vm404_vm0, %v3787_v8  ;;  %v334_v8 = vld [vmem:[%s3576_s11 + $0x110] sm:$0xff] }
  0xe7   : > { %v3811_v15 = vpop.f32.mrf.mxu0  ;;  %v3813_v16 = vpop.f32.mrf.mxu1 }
  0xe8   : > { %5994 = vst [vmem:[#allocation20_spill] sm:$0xff] %v3811_v15  ;;  %v347_v15 = vld [vmem:[%s3576_s11 + $0x178] sm:$0xff] }
  0xea   : > { %2771 = vmatmul.msk.f32.gmra.mxu0 %vm404_vm0, %v325_v17  ;;  %2867 = vmatmul.msk.f32.gmra.mxu1 %vm404_vm0, %v325_v17  ;;  %v335_v17 = vld [vmem:[%s3576_s11 + $0x118] sm:$0xff] }
  0xec   : > { %2831 = vmatmul.msk.f32.gmra.mxu2 %vm404_vm0, %v3819_v18  ;;  %2926 = vmatmul.msk.f32.gmra.mxu3 %vm404_vm0, %v3803_v13 }
  0xef   : > { %v3827_v20 = vpop.f32.mrf.mxu0  ;;  %v3829_v21 = vpop.f32.mrf.mxu1 }
  0xf0   : > { %5996 = vst [vmem:[#allocation22_spill] sm:$0xff] %v3827_v20 }
  0xf2   : > { %2772 = vmatmul.msk.f32.gmra.mxu0 %vm404_vm0, %v326_v22  ;;  %2868 = vmatmul.msk.f32.gmra.mxu1 %vm404_vm0, %v326_v22 }
  0xf4   : > { %2832 = vmatmul.msk.f32.gmra.mxu2 %vm404_vm0, %v3835_v23  ;;  %2927 = vmatmul.msk.f32.gmra.mxu3 %vm404_vm0, %v3819_v18 }
  0xf7   : > { %v3841_v24 = vpop.f32.mrf.mxu0  ;;  %v3843_v26 = vpop.f32.mrf.mxu1 }
  0xf8   : > { %5997 = vst [vmem:[#allocation23_spill] sm:$0xff] %v3841_v24 }
  0xfa   : > { %2773 = vmatmul.msk.f32.gmra.mxu0 %vm404_vm0, %v327_v27  ;;  %2869 = vmatmul.msk.f32.gmra.mxu1 %vm404_vm0, %v327_v27  ;;  %v3946_v27 = vpop.f32.mrf.mxu3 }
  0xfb   : > { %6017 = vst [vmem:[#allocation43_spill] sm:$0xff] %v3946_v27 }
  0xfc   : > { %2833 = vmatmul.msk.f32.gmra.mxu2 %vm404_vm0, %v3851_v29  ;;  %2928 = vmatmul.msk.f32.gmra.mxu3 %vm404_vm0, %v3835_v23 }
  0xff   : > { %v3857_v30 = vpop.f32.mrf.mxu0  ;;  %v3859_v31 = vpop.f32.mrf.mxu1 }
 0x100   : > { %5999 = vst [vmem:[#allocation25_spill] sm:$0xff] %v3857_v30 }
 0x102   : > { %2774 = vmatmul.msk.f32.gmra.mxu0 %vm404_vm0, %v328_v32  ;;  %2870 = vmatmul.msk.f32.gmra.mxu1 %vm404_vm0, %v328_v32  ;;  %v336_v32 = vld [vmem:[%s3576_s11 + $0x120] sm:$0xff]  ;;  %v3957_v23 = vpop.f32.mrf.mxu3 }
 0x103   : > { %6020 = vst [vmem:[#allocation46_spill] sm:$0xff] %v3957_v23 }
 0x104   : > { %2834 = vmatmul.msk.f32.gmra.mxu2 %vm404_vm0, %v3865_v33  ;;  %2929 = vmatmul.msk.f32.gmra.mxu3 %vm404_vm0, %v3851_v29 }
 0x107   : > { %v3873_v35 = vpop.f32.mrf.mxu0  ;;  %v3875_v36 = vpop.f32.mrf.mxu1 }
 0x108   : > { %6001 = vst [vmem:[#allocation27_spill] sm:$0xff] %v3873_v35  ;;  %v343_v35 = vld [vmem:[%s3576_s11 + $0x158] sm:$0xff] }
 0x10a   : > { %2775 = vmatmul.msk.f32.gmra.mxu0 %vm404_vm0, %v329_v37  ;;  %2871 = vmatmul.msk.f32.gmra.mxu1 %vm404_vm0, %v329_v37 }
 0x10c   : > { %2835 = vmatmul.msk.f32.gmra.mxu2 %vm404_vm0, %v389_v38  ;;  %2930 = vmatmul.msk.f32.gmra.mxu3 %vm404_vm0, %v3865_v33 }
 0x10f   : > { %v3886_v40 = vpop.f32.mrf.mxu1  ;;  %v3889_v44 = vpop.f32.mrf.mxu0 }
 0x110   : > { %6003 = vst [vmem:[#allocation29_spill] sm:$0xff] %v3889_v44 }
 0x112   : > { %2776 = vmatmul.msk.f32.gmra.mxu0 %vm404_vm0, %v330_v43  ;;  %2872 = vmatmul.msk.f32.gmra.mxu1 %vm404_vm0, %v330_v43 }
 0x117   : > { %v3897_v48 = vpop.f32.mrf.mxu1  ;;  %v3902_v52 = vpop.f32.mrf.mxu0 }
 0x118   : > { %6005 = vst [vmem:[#allocation31_spill] sm:$0xff] %v3897_v48 }
 0x119   : > { %6006 = vst [vmem:[#allocation32_spill] sm:$0xff] %v3902_v52  ;;  %v341_v52 = vld [vmem:[%s3576_s11 + $0x148] sm:$0xff] }
 0x11a   : > { %2777 = vmatmul.msk.f32.gmra.mxu0 %vm404_vm0, %v331_v51  ;;  %2873 = vmatmul.msk.f32.gmra.mxu1 %vm404_vm0, %v331_v51  ;;  %v337_v51 = vld [vmem:[%s3576_s11 + $0x128] sm:$0xff] }
 0x11f   : > { %v3908_v56 = vpop.f32.mrf.mxu1  ;;  %v3915_v60 = vpop.f32.mrf.mxu0 }
 0x120   : > { %6008 = vst [vmem:[#allocation34_spill] sm:$0xff] %v3908_v56 }
 0x121   : > { %6009 = vst [vmem:[#allocation35_spill] sm:$0xff] %v3915_v60  ;;  %v344_v60 = vld [vmem:[%s3576_s11 + $0x160] sm:$0xff] }
 0x122   : > { %2778 = vmatmul.msk.f32.gmra.mxu0 %vm404_vm0, %v332_v59  ;;  %2874 = vmatmul.msk.f32.gmra.mxu1 %vm404_vm0, %v332_v59 }
 0x127   : > { %v3917_v63 = vpop.f32.mrf.mxu1  ;;  %v3926_v4 = vpop.f32.mrf.mxu0 }
 0x128   : > { %6010 = vst [vmem:[#allocation36_spill] sm:$0xff] %v3917_v63 }
 0x129   : > { %6012 = vst [vmem:[#allocation38_spill] sm:$0xff] %v3926_v4  ;;  %v3984_v4 = vpop.f32.mrf.mxu2 }
 0x12a   : > { %2779 = vmatmul.msk.f32.gmra.mxu0 %vm404_vm0, %v333_v0  ;;  %2875 = vmatmul.msk.f32.gmra.mxu1 %vm404_vm0, %v333_v0  ;;  %v338_v0 = vld [vmem:[%s3576_s11 + $0x130] sm:$0xff]  ;;  %6028 = vst [vmem:[#allocation54_spill] sm:$0xff] %v3984_v4 }
 0x12f   : > { %v3928_v7 = vpop.f32.mrf.mxu1  ;;  %v3940_v22 = vpop.f32.mrf.mxu0 }
 0x130   : > { %6013 = vst [vmem:[#allocation39_spill] sm:$0xff] %v3928_v7 }
 0x131   : > { %6016 = vst [vmem:[#allocation42_spill] sm:$0xff] %v3940_v22 }
 0x132   : > { %2780 = vmatmul.msk.f32.gmra.mxu0 %vm404_vm0, %v334_v8  ;;  %2876 = vmatmul.msk.f32.gmra.mxu1 %vm404_vm0, %v334_v8  ;;  %v3971_v8 = vpop.f32.mrf.mxu3 }
 0x133   : > { %6024 = vst [vmem:[#allocation50_spill] sm:$0xff] %v3971_v8  ;;  %2931 = vmatmul.msk.f32.gmra.mxu3 %vm404_vm0, %v389_v38 }
 0x137   : > { %v3937_v13 = vpop.f32.mrf.mxu1  ;;  %v3953_v37 = vpop.f32.mrf.mxu0 }
 0x138   : > { %6015 = vst [vmem:[#allocation41_spill] sm:$0xff] %v3937_v13 }
 0x139   : > { %6019 = vst [vmem:[#allocation45_spill] sm:$0xff] %v3953_v37 }
 0x13a   : > { %2781 = vmatmul.msk.f32.gmra.mxu0 %vm404_vm0, %v335_v17  ;;  %2877 = vmatmul.msk.f32.gmra.mxu1 %vm404_vm0, %v335_v17  ;;  %v3982_v37 = vpop.f32.mrf.mxu3 }
 0x13b   : > { %6027 = vst [vmem:[#allocation53_spill] sm:$0xff] %v3982_v37 }
 0x13f   : > { %v3948_v18 = vpop.f32.mrf.mxu1  ;;  %v3966_v29 = vpop.f32.mrf.mxu0 }
 0x140   : > { %6018 = vst [vmem:[#allocation44_spill] sm:$0xff] %v3948_v18 }
 0x141   : > { %6022 = vst [vmem:[#allocation48_spill] sm:$0xff] %v3966_v29 }
 0x142   : > { %2782 = vmatmul.msk.f32.gmra.mxu0 %vm404_vm0, %v336_v32  ;;  %2878 = vmatmul.msk.f32.gmra.mxu1 %vm404_vm0, %v336_v32  ;;  %v339_v32 = vld [vmem:[%s3576_s11 + $0x138] sm:$0xff] }
 0x147   : > { %v3959_v43 = vpop.f32.mrf.mxu1  ;;  %v3976_v17 = vpop.f32.mrf.mxu0 }
 0x148   : > { %6021 = vst [vmem:[#allocation47_spill] sm:$0xff] %v3959_v43 }
 0x149   : > { %6025 = vst [vmem:[#allocation51_spill] sm:$0xff] %v3976_v17 }
 0x14a   : > { %2783 = vmatmul.msk.f32.gmra.mxu0 %vm404_vm0, %v337_v51  ;;  %2879 = vmatmul.msk.f32.gmra.mxu1 %vm404_vm0, %v337_v51  ;;  %v390_v51 = vld [vmem:[%s3576_s11 + $0x2d0] sm:$0xff] }
 0x14b   : > { %2932 = vmatmul.msk.f32.gmra.mxu3 %vm404_vm0, %v390_v51  ;;  %2836 = vmatmul.msk.f32.gmra.mxu2 %vm404_vm0, %v390_v51  ;;  %v342_v51 = vld [vmem:[%s3576_s11 + $0x150] sm:$0xff] }
 0x14f   : > { %v3968_v59 = vpop.f32.mrf.mxu1  ;;  %v3993_v17 = vpop.f32.mrf.mxu0 }
 0x150   : > { %6023 = vst [vmem:[#allocation49_spill] sm:$0xff] %v3968_v59 }
 0x151   : > { %6030 = vst [vmem:[#allocation56_spill] sm:$0xff] %v3993_v17 }
 0x152   : > { %2784 = vmatmul.msk.f32.gmra.mxu0 %vm404_vm0, %v338_v0  ;;  %2880 = vmatmul.msk.f32.gmra.mxu1 %vm404_vm0, %v338_v0  ;;  %v340_v0 = vld [vmem:[%s3576_s11 + $0x140] sm:$0xff] }
 0x157   : > { %v3978_v33 = vpop.f32.mrf.mxu1  ;;  %v4000_v22 = vpop.f32.mrf.mxu0 }
 0x158   : > { %6026 = vst [vmem:[#allocation52_spill] sm:$0xff] %v3978_v33 }
 0x159   : > { %6032 = vst [vmem:[#allocation58_spill] sm:$0xff] %v4000_v22 }
 0x15a   : > { %2785 = vmatmul.msk.f32.gmra.mxu0 %vm404_vm0, %v339_v32  ;;  %2881 = vmatmul.msk.f32.gmra.mxu1 %vm404_vm0, %v339_v32 }
 0x15f   : > { %v3990_v38 = vpop.f32.mrf.mxu1  ;;  %v4009_v17 = vpop.f32.mrf.mxu0 }
 0x160   : > { %6029 = vst [vmem:[#allocation55_spill] sm:$0xff] %v3990_v38 }
 0x161   : > { %6034 = vst [vmem:[#allocation60_spill] sm:$0xff] %v4009_v17  ;;  %v345_v17 = vld [vmem:[%s3576_s11 + $0x168] sm:$0xff] }
 0x162   : > { %2786 = vmatmul.msk.f32.gmra.mxu0 %vm404_vm0, %v340_v0  ;;  %2882 = vmatmul.msk.f32.gmra.mxu1 %vm404_vm0, %v340_v0 }
 0x167   : > { %v3997_v29 = vpop.f32.mrf.mxu1  ;;  %v4016_v22 = vpop.f32.mrf.mxu0 }
 0x168   : > { %6031 = vst [vmem:[#allocation57_spill] sm:$0xff] %v3997_v29 }
 0x169   : > { %6036 = vst [vmem:[#allocation62_spill] sm:$0xff] %v4016_v22  ;;  %v346_v22 = vld [vmem:[%s3576_s11 + $0x170] sm:$0xff] }
 0x16a   : > { %2787 = vmatmul.msk.f32.gmra.mxu0 %vm404_vm0, %v341_v52  ;;  %2883 = vmatmul.msk.f32.gmra.mxu1 %vm404_vm0, %v341_v52 }
 0x16f   : > { %v4004_v32 = vpop.f32.mrf.mxu1  ;;  %v4026_v24 = vpop.f32.mrf.mxu0 }
 0x170   : > { %6033 = vst [vmem:[#allocation59_spill] sm:$0xff] %v4004_v32 }
 0x171   : > { %6039 = vst [vmem:[#allocation65_spill] sm:$0xff] %v4026_v24  ;;  %v4042_v24 = vpop.f32.mrf.mxu3 }
 0x172   : > { %2788 = vmatmul.msk.f32.gmra.mxu0 %vm404_vm0, %v342_v51  ;;  %2884 = vmatmul.msk.f32.gmra.mxu1 %vm404_vm0, %v342_v51  ;;  %6043 = vst [vmem:[#allocation69_spill] sm:$0xff] %v4042_v24 }
 0x177   : > { %v4011_v0 = vpop.f32.mrf.mxu1  ;;  %v4033_v44 = vpop.f32.mrf.mxu0 }
 0x178   : > { %6035 = vst [vmem:[#allocation61_spill] sm:$0xff] %v4011_v0 }
 0x179   : > { %6041 = vst [vmem:[#allocation67_spill] sm:$0xff] %v4033_v44  ;;  %v348_v44 = vld [vmem:[%s3576_s11 + $0x180] sm:$0xff] }
 0x17a   : > { %2789 = vmatmul.msk.f32.gmra.mxu0 %vm404_vm0, %v343_v35  ;;  %2885 = vmatmul.msk.f32.gmra.mxu1 %vm404_vm0, %v343_v35 }
 0x17f   : > { %v4018_v52 = vpop.f32.mrf.mxu1 }
 0x180   : > { %6037 = vst [vmem:[#allocation63_spill] sm:$0xff] %v4018_v52 }
 0x182   : > { %2790 = vmatmul.msk.f32.gmra.mxu0 %vm404_vm0, %v344_v60  ;;  %2886 = vmatmul.msk.f32.gmra.mxu1 %vm404_vm0, %v344_v60 }
 0x187   : > { %v4023_v51 = vpop.f32.mrf.mxu1 }
 0x188   : > { %6038 = vst [vmem:[#allocation64_spill] sm:$0xff] %v4023_v51 }
 0x18a   : > { %2791 = vmatmul.msk.f32.gmra.mxu0 %vm404_vm0, %v345_v17  ;;  %2887 = vmatmul.msk.f32.gmra.mxu1 %vm404_vm0, %v345_v17  ;;  %v4044_v17 = vpop.f32.mrf.mxu0 }
 0x18b   : > { %6044 = vst [vmem:[#allocation70_spill] sm:$0xff] %v4044_v17  ;;  %v4060_v17 = vpop.f32.mrf.mxu2 }
 0x18c   : > { %6049 = vst [vmem:[#allocation75_spill] sm:$0xff] %v4060_v17 }
 0x18f   : > { %v4030_v35 = vpop.f32.mrf.mxu1 }
 0x190   : > { %6040 = vst [vmem:[#allocation66_spill] sm:$0xff] %v4030_v35 }
 0x192   : > { %2792 = vmatmul.msk.f32.gmra.mxu0 %vm404_vm0, %v346_v22  ;;  %2888 = vmatmul.msk.f32.gmra.mxu1 %vm404_vm0, %v346_v22  ;;  %v4051_v22 = vpop.f32.mrf.mxu3  ;;  %v4053_v5 = vpop.f32.mrf.mxu0 }
 0x193   : > { %6046 = vst [vmem:[#allocation72_spill] sm:$0xff] %v4051_v22  ;;  %v4077_v1 = vpop.f32.mrf.mxu2 }
 0x194   : > { %6047 = vst [vmem:[#allocation73_spill] sm:$0xff] %v4053_v5  ;;  %v391_v5 = vld [vmem:[%s3576_s11 + $0x2d8] sm:$0xff] }
 0x195   : > { %2933 = vmatmul.msk.f32.gmra.mxu3 %vm404_vm0, %v391_v5  ;;  %2837 = vmatmul.msk.f32.gmra.mxu2 %vm404_vm0, %v391_v5  ;;  %6054 = vst [vmem:[#allocation80_spill] sm:$0xff] %v4077_v1  ;;  %v352_v5 = vld [vmem:[%s3576_s11 + $0x1a0] sm:$0xff] }
 0x197   : > { %v4037_v60 = vpop.f32.mrf.mxu1 }
 0x198   : > { %6042 = vst [vmem:[#allocation68_spill] sm:$0xff] %v4037_v60 }
 0x19a   : > { %2793 = vmatmul.msk.f32.gmra.mxu0 %vm404_vm0, %v347_v15  ;;  %2889 = vmatmul.msk.f32.gmra.mxu1 %vm404_vm0, %v347_v15  ;;  %v349_v15 = vld [vmem:[%s3576_s11 + $0x188] sm:$0xff]  ;;  %v4062_v61 = vpop.f32.mrf.mxu3  ;;  %v4067_v45 = vpop.f32.mrf.mxu0 }
 0x19b   : > { %6050 = vst [vmem:[#allocation76_spill] sm:$0xff] %v4062_v61  ;;  %v4093_v49 = vpop.f32.mrf.mxu2 }
 0x19c   : > { %6052 = vst [vmem:[#allocation78_spill] sm:$0xff] %v4067_v45 }
 0x19d   : > { %6058 = vst [vmem:[#allocation84_spill] sm:$0xff] %v4093_v49 }
 0x19f   : > { %v4046_v30 = vpop.f32.mrf.mxu1 }
 0x1a0   : > { %6045 = vst [vmem:[#allocation71_spill] sm:$0xff] %v4046_v30 }
 0x1a2   : > { %2794 = vmatmul.msk.f32.gmra.mxu0 %vm404_vm0, %v348_v44  ;;  %2890 = vmatmul.msk.f32.gmra.mxu1 %vm404_vm0, %v348_v44  ;;  %v350_v44 = vld [vmem:[%s3576_s11 + $0x190] sm:$0xff]  ;;  %v4079_v57 = vpop.f32.mrf.mxu3  ;;  %v4081_v41 = vpop.f32.mrf.mxu0 }
 0x1a3   : > { %6055 = vst [vmem:[#allocation81_spill] sm:$0xff] %v4079_v57 }
 0x1a4   : > { %6056 = vst [vmem:[#allocation82_spill] sm:$0xff] %v4081_v41 }
 0x1a7   : > { %v4055_v20 = vpop.f32.mrf.mxu1 }
 0x1a8   : > { %6048 = vst [vmem:[#allocation74_spill] sm:$0xff] %v4055_v20 }
 0x1aa   : > { %2795 = vmatmul.msk.f32.gmra.mxu0 %vm404_vm0, %v349_v15  ;;  %2891 = vmatmul.msk.f32.gmra.mxu1 %vm404_vm0, %v349_v15  ;;  %v4095_v41 = vpop.f32.mrf.mxu3 }
 0x1ab   : > { %6059 = vst [vmem:[#allocation85_spill] sm:$0xff] %v4095_v41 }
 0x1af   : > { %v4064_v10 = vpop.f32.mrf.mxu1 }
 0x1b0   : > { %6051 = vst [vmem:[#allocation77_spill] sm:$0xff] %v4064_v10  ;;  %v4097_v10 = vpop.f32.mrf.mxu0 }
 0x1b1   : > { %6060 = vst [vmem:[#allocation86_spill] sm:$0xff] %v4097_v10 }
 0x1b2   : > { %2796 = vmatmul.msk.f32.gmra.mxu0 %vm404_vm0, %v350_v44  ;;  %2892 = vmatmul.msk.f32.gmra.mxu1 %vm404_vm0, %v350_v44  ;;  %v392_v44 = vld [vmem:[%s3576_s11 + $0x2e0] sm:$0xff] }
 0x1b3   : > { %2934 = vmatmul.msk.f32.gmra.mxu3 %vm404_vm0, %v392_v44  ;;  %2838 = vmatmul.msk.f32.gmra.mxu2 %vm404_vm0, %v392_v44  ;;  %v353_v44 = vld [vmem:[%s3576_s11 + $0x1a8] sm:$0xff] }
 0x1b7   : > { %v4074_v15 = vpop.f32.mrf.mxu1 }
 0x1b8   : > { %6053 = vst [vmem:[#allocation79_spill] sm:$0xff] %v4074_v15  ;;  %v394_v15 = vld [vmem:[%s3576_s11 + $0x2f0] sm:$0xff]  ;;  %v4112_v10 = vpop.f32.mrf.mxu0 }
 0x1b9   : > { %6064 = vst [vmem:[#allocation90_spill] sm:$0xff] %v4112_v10  ;;  %v355_v10 = vld [vmem:[%s3576_s11 + $0x1b8] sm:$0xff] }
 0x1ba   : > { %2797 = vmatmul.msk.f32.gmra.mxu0 %vm404_vm0, %v351_v53  ;;  %2893 = vmatmul.msk.f32.gmra.mxu1 %vm404_vm0, %v351_v53  ;;  %v393_v53 = vld [vmem:[%s3576_s11 + $0x2e8] sm:$0xff] }
 0x1bb   : > { %2935 = vmatmul.msk.f32.gmra.mxu3 %vm404_vm0, %v393_v53  ;;  %2839 = vmatmul.msk.f32.gmra.mxu2 %vm404_vm0, %v393_v53  ;;  %v354_v53 = vld [vmem:[%s3576_s11 + $0x1b0] sm:$0xff] }
 0x1bf   : > { %v4089_v45 = vpop.f32.mrf.mxu1 }
 0x1c0   : > { %6057 = vst [vmem:[#allocation83_spill] sm:$0xff] %v4089_v45  ;;  %v4109_v45 = vpop.f32.mrf.mxu3 }
 0x1c1   : > { %6063 = vst [vmem:[#allocation89_spill] sm:$0xff] %v4109_v45 }
 0x1c2   : > { %2798 = vmatmul.msk.f32.gmra.mxu0 %vm404_vm0, %v352_v5  ;;  %2894 = vmatmul.msk.f32.gmra.mxu1 %vm404_vm0, %v352_v5  ;;  %v4107_v5 = vpop.f32.mrf.mxu2 }
 0x1c3   : > { %6062 = vst [vmem:[#allocation88_spill] sm:$0xff] %v4107_v5  ;;  %2936 = vmatmul.msk.f32.gmra.mxu3 %vm404_vm0, %v394_v15  ;;  %2840 = vmatmul.msk.f32.gmra.mxu2 %vm404_vm0, %v394_v15  ;;  %v4129_v15 = vpop.f32.mrf.mxu0 }
 0x1c4   : > { %6068 = vst [vmem:[#allocation94_spill] sm:$0xff] %v4129_v15 }
 0x1c7   : > { %v4103_v30 = vpop.f32.mrf.mxu1 }
 0x1c8   : > { %6061 = vst [vmem:[#allocation87_spill] sm:$0xff] %v4103_v30  ;;  %v4124_v35 = vpop.f32.mrf.mxu3 }
 0x1c9   : > { %6067 = vst [vmem:[#allocation93_spill] sm:$0xff] %v4124_v35 }
 0x1ca   : > { %2799 = vmatmul.msk.f32.gmra.mxu0 %vm404_vm0, %v353_v44  ;;  %2895 = vmatmul.msk.f32.gmra.mxu1 %vm404_vm0, %v353_v44  ;;  %v395_v44 = vld [vmem:[%s3576_s11 + $0x2f8] sm:$0xff]  ;;  %v4122_v5 = vpop.f32.mrf.mxu2 }
 0x1cb   : > { %6066 = vst [vmem:[#allocation92_spill] sm:$0xff] %v4122_v5  ;;  %2937 = vmatmul.msk.f32.gmra.mxu3 %vm404_vm0, %v395_v44  ;;  %2841 = vmatmul.msk.f32.gmra.mxu2 %vm404_vm0, %v395_v44  ;;  %v4138_v5 = vpop.f32.mrf.mxu0  ;;  %v357_v44 = vld [vmem:[%s3576_s11 + $0x1c8] sm:$0xff] }
 0x1cc   : > { %6071 = vst [vmem:[#allocation97_spill] sm:$0xff] %v4138_v5 }
 0x1cf   : > { %v4119_v30 = vpop.f32.mrf.mxu1 }
 0x1d0   : > { %6065 = vst [vmem:[#allocation91_spill] sm:$0xff] %v4119_v30  ;;  %v356_v30 = vld [vmem:[%s3576_s11 + $0x1c0] sm:$0xff]  ;;  %v4136_v49 = vpop.f32.mrf.mxu3 }
 0x1d1   : > { %6070 = vst [vmem:[#allocation96_spill] sm:$0xff] %v4136_v49 }
 0x1d2   : > { %2800 = vmatmul.msk.f32.gmra.mxu0 %vm404_vm0, %v354_v53  ;;  %2896 = vmatmul.msk.f32.gmra.mxu1 %vm404_vm0, %v354_v53 }
 0x1d7   : > { %v4133_v53 = vpop.f32.mrf.mxu1 }
 0x1d8   : > { %6069 = vst [vmem:[#allocation95_spill] sm:$0xff] %v4133_v53  ;;  %v4147_v15 = vpop.f32.mrf.mxu3  ;;  %v358_v53 = vld [vmem:[%s3576_s11 + $0x1d0] sm:$0xff]  ;;  %s2618_s11 = sshll.u32 %s269_s10, 4  ;;  %s2619_s11 = int_to_ptr.vmem [resolvable:$true] %s2618_s11 }
 0x1d9   : > { %6073 = vst [vmem:[#allocation99_spill] sm:$0xff] %v4147_v15 }
 0x1da   : > { %2801 = vmatmul.msk.f32.gmra.mxu0 %vm404_vm0, %v355_v10  ;;  %2897 = vmatmul.msk.f32.gmra.mxu1 %vm404_vm0, %v355_v10  ;;  %v4149_v10 = vpop.f32.mrf.mxu0 }
 0x1db   : > { %6074 = vst [vmem:[#allocation100_spill] sm:$0xff] %v4149_v10  ;;  %v4168_v10 = vpop.f32.mrf.mxu2 }
 0x1dc   : > { %6081 = vst [vmem:[#allocation107_spill] sm:$0xff] %v4168_v10 }
 0x1df   : > { %v4143_v20 = vpop.f32.mrf.mxu1 }
 0x1e0   : > { %6072 = vst [vmem:[#allocation98_spill] sm:$0xff] %v4143_v20  ;;  %v4156_v5 = vpop.f32.mrf.mxu3 }
 0x1e1   : > { %6076 = vst [vmem:[#allocation102_spill] sm:$0xff] %v4156_v5 }
 0x1e2   : > { %2802 = vmatmul.msk.f32.gmra.mxu0 %vm404_vm0, %v356_v30  ;;  %2898 = vmatmul.msk.f32.gmra.mxu1 %vm404_vm0, %v356_v30  ;;  %v4158_v30 = vpop.f32.mrf.mxu0 }
 0x1e3   : > { %6077 = vst [vmem:[#allocation103_spill] sm:$0xff] %v4158_v30  ;;  %v4176_v1 = vpop.f32.mrf.mxu2 }
 0x1e4   : > { %6085 = vst [vmem:[#allocation111_spill] sm:$0xff] %v4176_v1 }
 0x1e7   : > { %v4152_v52 = vpop.f32.mrf.mxu1 }
 0x1e8   : > { %6075 = vst [vmem:[#allocation101_spill] sm:$0xff] %v4152_v52 }
 0x1ea   : > { %2803 = vmatmul.msk.f32.gmra.mxu0 %vm404_vm0, %v357_v44  ;;  %2899 = vmatmul.msk.f32.gmra.mxu1 %vm404_vm0, %v357_v44  ;;  %v4164_v44 = vpop.f32.mrf.mxu3  ;;  %v4166_v60 = vpop.f32.mrf.mxu0 }
 0x1eb   : > { %6079 = vst [vmem:[#allocation105_spill] sm:$0xff] %v4164_v44 }
 0x1ec   : > { %6080 = vst [vmem:[#allocation106_spill] sm:$0xff] %v4166_v60 }
 0x1ef   : > { %v4162_v20 = vpop.f32.mrf.mxu1 }
 0x1f0   : > { %6078 = vst [vmem:[#allocation104_spill] sm:$0xff] %v4162_v20  ;;  %v4184_v20 = vpop.f32.mrf.mxu2 }
 0x1f1   : > { %6089 = vst [vmem:[#allocation115_spill] sm:$0xff] %v4184_v20 }
 0x1f2   : > { %2804 = vmatmul.msk.f32.gmra.mxu0 %vm404_vm0, %v358_v53  ;;  %2900 = vmatmul.msk.f32.gmra.mxu1 %vm404_vm0, %v358_v53  ;;  %v4172_v32 = vpop.f32.mrf.mxu3  ;;  %v4174_v53 = vpop.f32.mrf.mxu0 }
 0x1f3   : > { %6083 = vst [vmem:[#allocation109_spill] sm:$0xff] %v4172_v32 }
 0x1f4   : > { %6084 = vst [vmem:[#allocation110_spill] sm:$0xff] %v4174_v53 }
 0x1f7   : > { %v4170_v52 = vpop.f32.mrf.mxu1 }
 0x1f8   : > { %6082 = vst [vmem:[#allocation108_spill] sm:$0xff] %v4170_v52  ;;  %v1461_v52 = vmax.f32 %v3906_v55, %v3895_v47  ;;  %v4194_v53 = vpop.f32.mrf.mxu2 }
 0x1f9   : > { %6093 = vst [vmem:[#allocation119_spill] sm:$0xff] %v4194_v53 }
 0x1fa   : > { %2805 = vmatmul.msk.f32.gmra.mxu0 %vm404_vm0, %v3620_v25  ;;  %v4180_v51 = vpop.f32.mrf.mxu3  ;;  %v4182_v25 = vpop.f32.mrf.mxu0  ;;  %v1463_v0 = vmax.f32 %v1461_v52, %v3920_v3 }
 0x1fb   : > { %6087 = vst [vmem:[#allocation113_spill] sm:$0xff] %v4180_v51 }
 0x1fc   : > { %6088 = vst [vmem:[#allocation114_spill] sm:$0xff] %v4182_v25  ;;  %v1465_v20 = vmax.f32 %v1463_v0, %v3931_v12 }
 0x1ff   : > { %v4178_v30 = vpop.f32.mrf.mxu1 }
 0x200   : > { %6086 = vst [vmem:[#allocation112_spill] sm:$0xff] %v4178_v30 }
 0x202   : > { %v4188_v60 = vpop.f32.mrf.mxu3  ;;  %v4190_v10 = vpop.f32.mrf.mxu0 }
 0x203   : > { %6091 = vst [vmem:[#allocation117_spill] sm:$0xff] %v4188_v60 }
 0x204   : > { %6092 = vst [vmem:[#allocation118_spill] sm:$0xff] %v4190_v10  ;;  %v1467_v10 = vmax.f32 %v1465_v20, %v3946_v27 }
 0x206   : > { %v1469_v47 = vmax.f32 %v1467_v10, %v3957_v23 }
 0x207   : > { %v4186_v38 = vpop.f32.mrf.mxu1 }
 0x208   : > { %6090 = vst [vmem:[#allocation116_spill] sm:$0xff] %v4186_v38  ;;  %v4204_v38 = vpop.f32.mrf.mxu2  ;;  %v1471_v53 = vmax.f32 %v1469_v47, %v3971_v8 }
 0x209   : > { %6097 = vst [vmem:[#allocation123_spill] sm:$0xff] %v4204_v38 }
 0x20a   : > { %v4198_v30 = vpop.f32.mrf.mxu3  ;;  %v4201_v25 = vpop.f32.mrf.mxu0  ;;  %v1473_v0 = vmax.f32 %v1471_v53, %v3982_v37 }
 0x20b   : > { %6095 = vst [vmem:[#allocation121_spill] sm:$0xff] %v4198_v30 }
 0x20c   : > { %6096 = vst [vmem:[#allocation122_spill] sm:$0xff] %v4201_v25  ;;  %v1475_v20 = vmax.f32 %v1473_v0, %v4042_v24 }
 0x20e   : > { %v1477_v10 = vmax.f32 %v1475_v20, %v4051_v22 }
 0x20f   : > { %v4196_v1 = vpop.f32.mrf.mxu1 }
 0x210   : > { %6094 = vst [vmem:[#allocation120_spill] sm:$0xff] %v4196_v1  ;;  %v4215_v1 = vpop.f32.mrf.mxu2  ;;  %v1479_v8 = vmax.f32 %v1477_v10, %v4062_v61  ;;  %v1405_v10 = vmax.f32 %v3700_v46, %v3726_v54 }
 0x211   : > { %6101 = vst [vmem:[#allocation127_spill] sm:$0xff] %v4215_v1 }
 0x212   : > { %v4209_v17 = vpop.f32.mrf.mxu3  ;;  %v4211_v55 = vpop.f32.mrf.mxu0 }
 0x213   : > { %6099 = vst [vmem:[#allocation125_spill] sm:$0xff] %v4209_v17 }
 0x214   : > { %6100 = vst [vmem:[#allocation126_spill] sm:$0xff] %v4211_v55  ;;  %v1481_v55 = vmax.f32 %v1479_v8, %v4079_v57 }
 0x216   : > { %v1483_v0 = vmax.f32 %v1481_v55, %v4095_v41  ;;  %v1404_v55 = vmax.f32 %v3687_v42, %v3713_v50  ;;  %v1407_v41 = vmax.f32 %v1405_v10, %v3753_v62 }
 0x217   : > { %v4206_v59 = vpop.f32.mrf.mxu1 }
 0x218   : > { %6098 = vst [vmem:[#allocation124_spill] sm:$0xff] %v4206_v59  ;;  %v4225_v27 = vpop.f32.mrf.mxu2  ;;  %v1485_v20 = vmax.f32 %v1483_v0, %v4109_v45  ;;  %v1406_v45 = vmax.f32 %v1404_v55, %v3739_v58 }
 0x219   : > { %6105 = vst [vmem:[#allocation131_spill] sm:$0xff] %v4225_v27 }
 0x21a   : > { %v4219_v3 = vpop.f32.mrf.mxu3  ;;  %v4222_v12 = vpop.f32.mrf.mxu0  ;;  %v1487_v8 = vmax.f32 %v1485_v20, %v4124_v35  ;;  %v1361_v35 = vmax.f32 %v3807_v14, %v3791_v9  ;;  %v1408_v50 = vmax.f32 %v1406_v45, %v3767_v2 }
 0x21b   : > { %6103 = vst [vmem:[#allocation129_spill] sm:$0xff] %v4219_v3 }
 0x21c   : > { %6104 = vst [vmem:[#allocation130_spill] sm:$0xff] %v4222_v12  ;;  %v1489_v0 = vmax.f32 %v1487_v8, %v4136_v49 }
 0x21f   : > { %v4217_v52 = vpop.f32.mrf.mxu1 }
 0x220   : > { %6102 = vst [vmem:[#allocation128_spill] sm:$0xff] %v4217_v52  ;;  %v4236_v1 = vpop.f32.mrf.mxu2 }
 0x221   : > { %6109 = vst [vmem:[#allocation135_spill] sm:$0xff] %v4236_v1 }
 0x222   : > { %v4230_v23 = vpop.f32.mrf.mxu3  ;;  %v4232_v47 = vpop.f32.mrf.mxu0 }
 0x223   : > { %6107 = vst [vmem:[#allocation133_spill] sm:$0xff] %v4230_v23 }
 0x224   : > { %6108 = vst [vmem:[#allocation134_spill] sm:$0xff] %v4232_v47  ;;  %v1409_v47 = vmax.f32 %v1407_v41, %v3781_v6  ;;  %v1363_v41 = vmax.f32 %v1361_v35, %v3825_v19 }
 0x226   : > { %v1411_v10 = vmax.f32 %v1409_v47, %v3813_v16  ;;  %v1365_v9 = vmax.f32 %v1363_v41, %v3846_v28  ;;  %v6129_v28 = vld [vmem:[#allocation61_spill] sm:$0xff] }
 0x227   : > { %v4227_v25 = vpop.f32.mrf.mxu1 }
 0x228   : > { %6106 = vst [vmem:[#allocation132_spill] sm:$0xff] %v4227_v25  ;;  %v4246_v22 = vpop.f32.mrf.mxu2  ;;  %v1413_v49 = vmax.f32 %v1411_v10, %v3843_v26 }
 0x229   : > { %6112 = vst [vmem:[#allocation138_spill] sm:$0xff] %v4246_v22 }
 0x22a   : > { %v4240_v37 = vpop.f32.mrf.mxu3  ;;  %v4243_v24 = vpop.f32.mrf.mxu0 }
 0x22b   : > { %6110 = vst [vmem:[#allocation136_spill] sm:$0xff] %v4240_v37 }
 0x22c   : > { %6111 = vst [vmem:[#allocation137_spill] sm:$0xff] %v4243_v24  ;;  %v1491_v24 = vmax.f32 %v1489_v0, %v4147_v15  ;;  %v1410_v0 = vmax.f32 %v1408_v50, %v3797_v11  ;;  %v1367_v50 = vmax.f32 %v1365_v9, %v3869_v34  ;;  %v6127_v34 = vld [vmem:[#allocation75_spill] sm:$0xff] }
 0x22e   : > { %v1493_v8 = vmax.f32 %v1491_v24, %v4156_v5  ;;  %v1412_v45 = vmax.f32 %v1410_v0, %v3829_v21  ;;  %v1415_v24 = vmax.f32 %v1413_v49, %v3875_v36  ;;  %v1369_v0 = vmax.f32 %v1367_v50, %v3883_v39  ;;  %v6128_v39 = vld [vmem:[#allocation49_spill] sm:$0xff] }
 0x22f   : > { %v4238_v53 = vpop.f32.mrf.mxu1 }
 0x230   : > { %v4264_v54 = vpop.f32.mrf.mxu2  ;;  %v1462_v15 = vmax.f32 %v4164_v44, %v1493_v8  ;;  %v1414_v10 = vmax.f32 %v1412_v45, %v3859_v31  ;;  %v1417_v8 = vmax.f32 %v1415_v24, %v3897_v48  ;;  %v6159_v48 = vld [vmem:[#allocation104_spill] sm:$0xff] }
 0x231   : > { %6115 = vst [vmem:[#allocation141_spill] sm:$0xff] %v4264_v54 }
 0x232   : > { %v4253_v57 = vpop.f32.mrf.mxu3  ;;  %v4255_v61 = vpop.f32.mrf.mxu0  ;;  %v1464_v47 = vmax.f32 %v1462_v15, %v4172_v32  ;;  %v1419_v44 = vmax.f32 %v1417_v8, %v3917_v63  ;;  %v1416_v49 = vmax.f32 %v1414_v10, %v3886_v40  ;;  %v6147_v63 = vld [vmem:[#allocation77_spill] sm:$0xff] }
 0x233   : > { %6114 = vst [vmem:[#allocation140_spill] sm:$0xff] %v4253_v57 }
 0x234   : > { %v1466_v41 = vmax.f32 %v1464_v47, %v4180_v51  ;;  %v1421_v15 = vmax.f32 %v1419_v44, %v3937_v13  ;;  %v1418_v45 = vmax.f32 %v1416_v49, %v3908_v56  ;;  %v1371_v47 = vmax.f32 %v1369_v0, %v3984_v4  ;;  %v6131_v13 = vld [vmem:[#allocation64_spill] sm:$0xff] }
 0x236   : > { %v1468_v32 = vmax.f32 %v1466_v41, %v4188_v60  ;;  %v1423_v24 = vmax.f32 %v1421_v15, %v3959_v43  ;;  %v1420_v50 = vmax.f32 %v1418_v45, %v3928_v7  ;;  %v1373_v49 = vmax.f32 %v1371_v47, %v6127_v34  ;;  %v6130_v43 = vld [vmem:[#allocation55_spill] sm:$0xff] }
 0x237   : > { %v4248_v12 = vpop.f32.mrf.mxu1 }
 0x238   : > { %6113 = vst [vmem:[#allocation139_spill] sm:$0xff] %v4248_v12  ;;  %v4282_v14 = vpop.f32.mrf.mxu2  ;;  %v1425_v10 = vmax.f32 %v1423_v24, %v3978_v33  ;;  %v1470_v44 = vmax.f32 %v1468_v32, %v4198_v30  ;;  %v1422_v41 = vmax.f32 %v1420_v50, %v3948_v18  ;;  %v6132_v33 = vld [vmem:[#allocation80_spill] sm:$0xff]  ;;  %v6135_v50 = vld [vmem:[#allocation59_spill] sm:$0xff] }
 0x239   : > { %6119 = vst [vmem:[#allocation145_spill] sm:$0xff] %v4282_v14  ;;  %v1375_v32 = vmax.f32 %v1373_v49, %v6132_v33  ;;  %v6142_v49 = vld [vmem:[#allocation66_spill] sm:$0xff] }
 0x23a   : > { %v4270_v46 = vpop.f32.mrf.mxu3  ;;  %v4275_v55 = vpop.f32.mrf.mxu0  ;;  %v1427_v60 = vmax.f32 %v1425_v10, %v3997_v29  ;;  %v1424_v15 = vmax.f32 %v1422_v41, %v6128_v39  ;;  %v1472_v4 = vmax.f32 %v1470_v44, %v4209_v17  ;;  %v6136_v29 = vld [vmem:[#allocation68_spill] sm:$0xff]  ;;  %v6139_v17 = vld [vmem:[#allocation74_spill] sm:$0xff] }
 0x23b   : > { %6117 = vst [vmem:[#allocation143_spill] sm:$0xff] %v4270_v46 }
 0x23c   : > { %6118 = vst [vmem:[#allocation144_spill] sm:$0xff] %v4275_v55  ;;  %v1429_v0 = vmax.f32 %v1427_v60, %v6129_v28  ;;  %v1426_v45 = vmax.f32 %v1424_v15, %v6130_v43  ;;  %v1474_v41 = vmax.f32 %v1472_v4, %v4219_v3  ;;  %v6138_v60 = vld [vmem:[#allocation63_spill] sm:$0xff]  ;;  %v6140_v28 = vld [vmem:[#allocation84_spill] sm:$0xff] }
 0x23d   : > { %v6143_v43 = vld [vmem:[#allocation79_spill] sm:$0xff]  ;;  %v6146_v3 = vld [vmem:[#allocation88_spill] sm:$0xff] }
 0x23e   : > { %v1431_v24 = vmax.f32 %v1429_v0, %v6131_v13  ;;  %v1428_v10 = vmax.f32 %v1426_v45, %v6135_v50  ;;  %v1377_v0 = vmax.f32 %v1375_v32, %v6140_v28  ;;  %v1476_v45 = vmax.f32 %v1474_v41, %v4230_v23  ;;  %v6144_v50 = vld [vmem:[#allocation71_spill] sm:$0xff]  ;;  %v6152_v23 = vld [vmem:[#allocation92_spill] sm:$0xff] }
 0x23f   : > { %v4266_v20 = vpop.f32.mrf.mxu1 }
 0x240   : > { %6116 = vst [vmem:[#allocation142_spill] sm:$0xff] %v4266_v20  ;;  %v4302_v19 = vpop.f32.mrf.mxu2  ;;  %v1433_v47 = vmax.f32 %v1431_v24, %v6136_v29  ;;  %v1430_v44 = vmax.f32 %v1428_v10, %v6138_v60  ;;  %v6145_v29 = vld [vmem:[#allocation87_spill] sm:$0xff]  ;;  %v1379_v18 = vmax.f32 %v1377_v0, %v6146_v3  ;;  %v1478_v32 = vmax.f32 %v1476_v45, %v4240_v37  ;;  %v6155_v3 = vld [vmem:[#allocation108_spill] sm:$0xff]  ;;  %v6156_v45 = vld [vmem:[#allocation98_spill] sm:$0xff] }
 0x241   : > { %6123 = vst [vmem:[#allocation149_spill] sm:$0xff] %v4302_v19  ;;  %v6148_v60 = vld [vmem:[#allocation95_spill] sm:$0xff] }
 0x242   : > { %v4289_v5 = vpop.f32.mrf.mxu3  ;;  %v4292_v35 = vpop.f32.mrf.mxu0  ;;  %v1435_v15 = vmax.f32 %v1433_v47, %v6139_v17  ;;  %v1432_v33 = vmax.f32 %v1430_v44, %v6142_v49  ;;  %v6158_v49 = vld [vmem:[#allocation116_spill] sm:$0xff] }
 0x243   : > { %6121 = vst [vmem:[#allocation147_spill] sm:$0xff] %v4289_v5 }
 0x244   : > { %6122 = vst [vmem:[#allocation148_spill] sm:$0xff] %v4292_v35  ;;  %v1437_v39 = vmax.f32 %v1435_v15, %v6143_v43  ;;  %v1434_v24 = vmax.f32 %v1432_v33, %v6144_v50  ;;  %v6151_v15 = vld [vmem:[#allocation83_spill] sm:$0xff]  ;;  %v1381_v33 = vmax.f32 %v1379_v18, %v6152_v23  ;;  %v6153_v43 = vld [vmem:[#allocation101_spill] sm:$0xff] }
 0x245   : > { %v6160_v23 = vld [vmem:[#allocation111_spill] sm:$0xff] }
 0x246   : > { %v1439_v4 = vmax.f32 %v1437_v39, %v6145_v29  ;;  %v1436_v10 = vmax.f32 %v1434_v24, %v6147_v63  ;;  %v6154_v29 = vld [vmem:[#allocation91_spill] sm:$0xff] }
 0x247   : > { %v4284_v6 = vpop.f32.mrf.mxu1  ;;  %v6157_v63 = vld [vmem:[#allocation107_spill] sm:$0xff] }
 0x248   : > { %6120 = vst [vmem:[#allocation146_spill] sm:$0xff] %v4284_v6  ;;  %v4325_v30 = vpop.f32.mrf.mxu2  ;;  %v1441_v47 = vmax.f32 %v1439_v4, %v6148_v60  ;;  %v1438_v41 = vmax.f32 %v1436_v10, %v6151_v15  ;;  %v1480_v4 = vmax.f32 %v1478_v32, %v4253_v57  ;;  %v1383_v50 = vmax.f32 %v1381_v33, %v6157_v63  ;;  %v6165_v33 = vld [vmem:[#allocation120_spill] sm:$0xff]  ;;  %v6166_v63 = vld [vmem:[#allocation115_spill] sm:$0xff] }
 0x249   : > { %6133 = vst [vmem:[#allocation153_spill] sm:$0xff] %v4325_v30 }
 0x24a   : > { %v4309_v51 = vpop.f32.mrf.mxu3  ;;  %v4314_v8 = vpop.f32.mrf.mxu0  ;;  %v1443_v39 = vmax.f32 %v1441_v47, %v6153_v43  ;;  %v1440_v0 = vmax.f32 %v1438_v41, %v6154_v29  ;;  %v1482_v47 = vmax.f32 %v1480_v4, %v4270_v46  ;;  %v1385_v41 = vmax.f32 %v1383_v50, %v6160_v23  ;;  %v6161_v43 = vld [vmem:[#allocation112_spill] sm:$0xff]  ;;  %v6168_v23 = vld [vmem:[#allocation5_spill] sm:$0xff] }
 0x24b   : > { %6125 = vst [vmem:[#allocation151_spill] sm:$0xff] %v4309_v51 }
 0x24c   : > { %6126 = vst [vmem:[#allocation152_spill] sm:$0xff] %v4314_v8  ;;  %v1445_v24 = vmax.f32 %v1443_v39, %v6155_v3  ;;  %v1442_v37 = vmax.f32 %v1440_v0, %v6156_v45  ;;  %v1387_v4 = vmax.f32 %v1385_v41, %v6166_v63 }
 0x24e   : > { %v1447_v56 = vmax.f32 %v1445_v24, %v6158_v49  ;;  %v1444_v10 = vmax.f32 %v1442_v37, %v6159_v48 }
 0x24f   : > { %v4304_v9 = vpop.f32.mrf.mxu1 }
 0x250   : > { %6124 = vst [vmem:[#allocation150_spill] sm:$0xff] %v4304_v9  ;;  %v4348_v28 = vpop.f32.mrf.mxu2  ;;  %v1449_v18 = vmax.f32 %v1447_v56, %v4206_v59  ;;  %v1446_v39 = vmax.f32 %v1444_v10, %v6161_v43  ;;  %v1484_v56 = vmax.f32 %v1482_v47, %v4289_v5  ;;  %v6170_v47 = vld [vmem:[#allocation119_spill] sm:$0xff] }
 0x251   : > { %6149 = vst [vmem:[#allocation157_spill] sm:$0xff] %v4348_v28  ;;  %v1389_v5 = vmax.f32 %v1387_v4, %v6170_v47  ;;  %v6176_v4 = vld [vmem:[#allocation18_spill] sm:$0xff]  ;;  %v6177_v47 = vld [vmem:[#allocation13_spill] sm:$0xff] }
 0x252   : > { %v4332_v34 = vpop.f32.mrf.mxu3  ;;  %v4337_v13 = vpop.f32.mrf.mxu0  ;;  %v1451_v32 = vmax.f32 %v1449_v18, %v4227_v25  ;;  %v1448_v24 = vmax.f32 %v1446_v39, %v6165_v33  ;;  %v6167_v18 = vld [vmem:[#allocation8_spill] sm:$0xff]  ;;  %v1486_v39 = vmax.f32 %v1484_v56, %v4309_v51 }
 0x253   : > { %6137 = vst [vmem:[#allocation155_spill] sm:$0xff] %v4332_v34  ;;  %v1303_v25 = vmax.f32 %v6168_v23, %v6167_v18  ;;  %v6173_v23 = vld [vmem:[#allocation10_spill] sm:$0xff] }
 0x254   : > { %6141 = vst [vmem:[#allocation156_spill] sm:$0xff] %v4337_v13  ;;  %v1453_v37 = vmax.f32 %v1451_v32, %v4248_v12  ;;  %v1450_v50 = vmax.f32 %v1448_v24, %v4217_v52  ;;  %v6169_v32 = vld [vmem:[#allocation12_spill] sm:$0xff] }
 0x255   : > { %v1305_v12 = vmax.f32 %v1303_v25, %v6169_v32  ;;  %v6178_v32 = vld [vmem:[#allocation22_spill] sm:$0xff] }
 0x256   : > { %v1455_v10 = vmax.f32 %v1453_v37, %v4284_v6  ;;  %v1452_v59 = vmax.f32 %v1450_v50, %v4238_v53  ;;  %v6171_v37 = vld [vmem:[#allocation14_spill] sm:$0xff]  ;;  %v1488_v50 = vmax.f32 %v1486_v39, %v4332_v34 }
 0x257   : > { %v4327_v7 = vpop.f32.mrf.mxu1  ;;  %v1307_v63 = vmax.f32 %v1305_v12, %v6171_v37 }
 0x258   : > { %6134 = vst [vmem:[#allocation154_spill] sm:$0xff] %v4327_v7  ;;  %v4371_v57 = vpop.f32.mrf.mxu2  ;;  %v1457_v49 = vmax.f32 %v1455_v10, %v4327_v7  ;;  %v1454_v41 = vmax.f32 %v1452_v59, %v4266_v20  ;;  %v6174_v10 = vld [vmem:[#allocation6_spill] sm:$0xff]  ;;  %v1391_v59 = vmax.f32 %v1389_v5, %v4204_v38  ;;  %v6182_v5 = vld [vmem:[#allocation20_spill] sm:$0xff] }
 0x259   : > { %6162 = vst [vmem:[#allocation83_spill] sm:$0xff] %v4371_v57  ;;  %v1304_v18 = vmax.f32 %v6174_v10, %v6173_v23  ;;  %v1309_v51 = vmax.f32 %v1307_v63, %v6176_v4  ;;  %v6179_v10 = vld [vmem:[#allocation15_spill] sm:$0xff] }
 0x25a   : > { %v4352_v44 = vpop.f32.mrf.mxu3  ;;  %v4360_v60 = vpop.f32.mrf.mxu0  ;;  %v1456_v6 = vmax.f32 %v1454_v41, %v4304_v9  ;;  %v6181_v9 = vld [vmem:[#allocation127_spill] sm:$0xff] }
 0x25b   : > { %6150 = vst [vmem:[#allocation158_spill] sm:$0xff] %v4352_v44  ;;  %v1306_v41 = vmax.f32 %v1304_v18, %v6177_v47  ;;  %v1311_v37 = vmax.f32 %v1309_v51, %v6178_v32  ;;  %v1362_v20 = vmax.f32 %v6181_v9, %v1391_v59  ;;  %v6184_v18 = vld [vmem:[#allocation23_spill] sm:$0xff]  ;;  %v6189_v59 = vld [vmem:[#allocation42_spill] sm:$0xff] }
 0x25c   : > { %v6185_v51 = vld [vmem:[#allocation35_spill] sm:$0xff] }
 0x25d   : > { %v1308_v23 = vmax.f32 %v1306_v41, %v6179_v10 }
 0x25f   : > { %v4350_v17 = vpop.f32.mrf.mxu1  ;;  %v1310_v38 = vmax.f32 %v1308_v23, %v6182_v5  ;;  %v6190_v23 = vld [vmem:[#allocation32_spill] sm:$0xff] }
 0x260   : > { %v4396_v52 = vpop.f32.mrf.mxu2 }
 0x261   : > { %6172 = vst [vmem:[#allocation104_spill] sm:$0xff] %v4396_v52  ;;  %v1312_v47 = vmax.f32 %v1310_v38, %v6184_v18  ;;  %v6194_v18 = vld [vmem:[#allocation45_spill] sm:$0xff] }
 0x262   : > { %v4375_v0 = vpop.f32.mrf.mxu3  ;;  %v4383_v46 = vpop.f32.mrf.mxu0 }
 0x263   : > { %6164 = vst [vmem:[#allocation98_spill] sm:$0xff] %v4375_v0 }
 0x267   : > { %v4373_v3 = vpop.f32.mrf.mxu1 }
 0x268   : > { %6163 = vst [vmem:[#allocation91_spill] sm:$0xff] %v4373_v3  ;;  %v1459_v24 = vmax.f32 %v1457_v49, %v4373_v3  ;;  %v1458_v49 = vmax.f32 %v1456_v6, %v4350_v17  ;;  %v6180_v3 = vld [vmem:[#allocation25_spill] sm:$0xff]  ;;  %v4422_v32 = vpop.f32.mrf.mxu2 }
 0x269   : > { %v1313_v7 = vmax.f32 %v1311_v37, %v6180_v3  ;;  %v6183_v6 = vld [vmem:[#allocation29_spill] sm:$0xff]  ;;  %6186 = vst [vmem:[#allocation120_spill] sm:$0xff] %v4422_v32  ;;  %v6188_v37 = vld [vmem:[#allocation27_spill] sm:$0xff]  ;;  %v6195_v3 = vld [vmem:[#allocation60_spill] sm:$0xff] }
 0x26a   : > { %v4403_v25 = vpop.f32.mrf.mxu3  ;;  %v1490_v12 = vmax.f32 %v1488_v50, %v1459_v24  ;;  %v4411_v34 = vpop.f32.mrf.mxu0  ;;  %v1314_v10 = vmax.f32 %v1312_v47, %v6188_v37 }
 0x26b   : > { %6175 = vst [vmem:[#allocation112_spill] sm:$0xff] %v4403_v25  ;;  %v1315_v24 = vmax.f32 %v1313_v7, %v6183_v6  ;;  %v6191_v7 = vld [vmem:[#allocation48_spill] sm:$0xff] }
 0x26c   : > { %v1492_v63 = vmax.f32 %v1490_v12, %v4352_v44  ;;  %v1316_v44 = vmax.f32 %v1314_v10, %v6190_v23 }
 0x26d   : > { %v1317_v4 = vmax.f32 %v1315_v24, %v6185_v51  ;;  %v6192_v24 = vld [vmem:[#allocation38_spill] sm:$0xff] }
 0x26f   : > { %v4401_v56 = vpop.f32.mrf.mxu1  ;;  %v1319_v9 = vmax.f32 %v1317_v4, %v6189_v59  ;;  %v6197_v59 = vld [vmem:[#allocation65_spill] sm:$0xff] }
 0x270   : > { %v1460_v39 = vmax.f32 %v1458_v49, %v4401_v56  ;;  %v1364_v49 = vmax.f32 %v1362_v20, %v4225_v27  ;;  %v1318_v20 = vmax.f32 %v1316_v44, %v6192_v24  ;;  %v6193_v27 = vld [vmem:[#allocation56_spill] sm:$0xff]  ;;  %v6200_v44 = vld [vmem:[#allocation58_spill] sm:$0xff] }
 0x271   : > { %v6201_v24 = vld [vmem:[#allocation70_spill] sm:$0xff] }
 0x272   : > { %v1494_v50 = vmax.f32 %v1492_v63, %v1460_v39  ;;  %v4424_v41 = vpop.f32.mrf.mxu3  ;;  %v1321_v39 = vmax.f32 %v1319_v9, %v6191_v7  ;;  %v1366_v38 = vmax.f32 %v1364_v49, %v4236_v1  ;;  %v4432_v63 = vpop.f32.mrf.mxu0  ;;  %v1320_v47 = vmax.f32 %v1318_v20, %v6194_v18  ;;  %v6203_v18 = vld [vmem:[#allocation78_spill] sm:$0xff] }
 0x273   : > { %6187 = vst [vmem:[#allocation29_spill] sm:$0xff] %v4424_v41  ;;  %v4443_v1 = vpop.f32.mrf.mxu2 }
 0x274   : > { %v1495_v12 = vmax.f32 %v4375_v0, %v1494_v50  ;;  %v1323_v51 = vmax.f32 %v1321_v39, %v6193_v27  ;;  %v1368_v50 = vmax.f32 %v1366_v38, %v4246_v22  ;;  %v6196_v0 = vld [vmem:[#allocation51_spill] sm:$0xff]  ;;  %6198 = vst [vmem:[#allocation27_spill] sm:$0xff] %v4443_v1 }
 0x275   : > { %v1322_v10 = vmax.f32 %v1320_v47, %v6196_v0 }
 0x276   : > { %v1496_v5 = vmax.f32 %v4403_v25, %v1495_v12  ;;  %v1325_v4 = vmax.f32 %v1323_v51, %v6195_v3  ;;  %v1370_v20 = vmax.f32 %v1368_v50, %v4264_v54  ;;  %v6202_v25 = vld [vmem:[#allocation62_spill] sm:$0xff]  ;;  %v6206_v3 = vld [vmem:[#allocation73_spill] sm:$0xff] }
 0x277   : > { %v1324_v39 = vmax.f32 %v1322_v10, %v6200_v44  ;;  %v6207_v44 = vld [vmem:[#allocation94_spill] sm:$0xff] }
 0x278   : > { %v1327_v9 = vmax.f32 %v1325_v4, %v6197_v59  ;;  %v1497_v49 = vmax.f32 %v4424_v41, %v1496_v5  ;;  %v6204_v4 = vld [vmem:[#allocation67_spill] sm:$0xff]  ;;  %v6205_v41 = vld [vmem:[#allocation86_spill] sm:$0xff]  ;;  %v1372_v27 = vmax.f32 %v1370_v20, %v4282_v14 }
 0x279   : > { %v1326_v51 = vmax.f32 %v1324_v39, %v6202_v25  ;;  %v6209_v39 = vld [vmem:[#allocation82_spill] sm:$0xff] }
 0x27a   : > { %v4445_v7 = vpop.f32.mrf.mxu3  ;;  %v1329_v12 = vmax.f32 %v1327_v9, %v6201_v24  ;;  %v4453_v22 = vpop.f32.mrf.mxu0  ;;  %v6214_v14 = vld [vmem:[#allocation114_spill] sm:$0xff] }
 0x27b   : > { %6199 = vst [vmem:[#allocation32_spill] sm:$0xff] %v4445_v7  ;;  %v1498_v47 = vmax.f32 %v4445_v7, %v1497_v49  ;;  %v1328_v5 = vmax.f32 %v1326_v51, %v6204_v4  ;;  %v4460_v50 = vpop.f32.mrf.mxu2  ;;  %v1374_v49 = vmax.f32 %v1372_v27, %v4302_v19  ;;  %v6211_v7 = vld [vmem:[#allocation90_spill] sm:$0xff] }
 0x27c   : > { %v1331_v38 = vmax.f32 %v1329_v12, %v6203_v18  ;;  %6208 = vst [vmem:[#allocation159_spill] sm:$0xff] %v4460_v50  ;;  %v6210_v12 = vld [vmem:[#allocation100_spill] sm:$0xff]  ;;  %v6212_v51 = vld [vmem:[#allocation106_spill] sm:$0xff] }
 0x27d   : > { %v1330_v10 = vmax.f32 %v1328_v5, %v6206_v3  ;;  %v1499_v59 = vrot.slane %v1498_v47, 4  ;;  %v6215_v3 = vld [vmem:[#allocation103_spill] sm:$0xff]  ;;  %v6218_v19 = vld [vmem:[#allocation130_spill] sm:$0xff] }
 0x27e   : > { %v1333_v0 = vmax.f32 %v1331_v38, %v6205_v41  ;;  %v6213_v41 = vld [vmem:[#allocation97_spill] sm:$0xff] }
 0x27f   : > { %v1332_v54 = vmax.f32 %v1330_v10, %v6209_v39  ;;  %v1500_v38 = vmax.f32 %v1498_v47, %v1499_v59  ;;  %v6216_v10 = vld [vmem:[#allocation122_spill] sm:$0xff] }
 0x280   : > { %v1335_v9 = vmax.f32 %v1333_v0, %v6207_v44  ;;  %v1376_v0 = vmax.f32 %v1374_v49, %v4325_v30  ;;  %v6222_v30 = vld [vmem:[#allocation126_spill] sm:$0xff] }
 0x281   : > { %v1334_v24 = vmax.f32 %v1332_v54, %v6211_v7 }
 0x282   : > { %v1337_v25 = vmax.f32 %v1335_v9, %v6210_v12  ;;  %v4470_v44 = vpop.f32.mrf.mxu0  ;;  %v1501_v9 = vrot.slane %v1500_v38, 2  ;;  %v6217_v12 = vld [vmem:[#allocation110_spill] sm:$0xff] }
 0x283   : > { %v1336_v20 = vmax.f32 %v1334_v24, %v6213_v41  ;;  %v4477_v59 = vpop.f32.mrf.mxu2  ;;  %v6220_v24 = vld [vmem:[#allocation118_spill] sm:$0xff] }
 0x284   : > { %v1339_v4 = vmax.f32 %v1337_v25, %v6212_v51  ;;  %v1378_v25 = vmax.f32 %v1376_v0, %v4348_v28  ;;  %6219 = vst [vmem:[#allocation114_spill] sm:$0xff] %v4477_v59  ;;  %v1502_v49 = vmax.f32 %v1500_v38, %v1501_v9 }
 0x285   : > { %v1338_v18 = vmax.f32 %v1336_v20, %v6215_v3  ;;  %v6223_v3 = vld [vmem:[#allocation134_spill] sm:$0xff] }
 0x286   : > { %v1341_v5 = vmax.f32 %v1339_v4, %v6214_v14  ;;  %v6221_v4 = vld [vmem:[#allocation137_spill] sm:$0xff] }
 0x287   : > { %v1340_v27 = vmax.f32 %v1338_v18, %v6217_v12 }
 0x288   : > { %v1343_v39 = vmax.f32 %v1341_v5, %v6216_v10  ;;  %v1380_v5 = vmax.f32 %v1378_v25, %v4371_v57 }
 0x289   : > { %v1342_v47 = vmax.f32 %v1340_v27, %v6220_v24 }
 0x28a   : > { %v1345_v54 = vmax.f32 %v1343_v39, %v6218_v19  ;;  %v1503_v39 = vrot.slane %v1502_v49, 1  ;;  %v4486_v12 = vpop.f32.mrf.mxu0 }
 0x28b   : > { %v1344_v41 = vmax.f32 %v1342_v47, %v6222_v30  ;;  %v4495_v25 = vpop.f32.mrf.mxu2 }
 0x28c   : > { %v1347_v7 = vmax.f32 %v1345_v54, %v6221_v4  ;;  %v1382_v54 = vmax.f32 %v1380_v5, %v4396_v52  ;;  %6224 = vst [vmem:[#allocation122_spill] sm:$0xff] %v4495_v25 }
 0x28d   : > { %v1346_v51 = vmax.f32 %v1344_v41, %v6223_v3 }
 0x28e   : > { %v1349_v20 = vmax.f32 %v1347_v7, %v4275_v55  ;;  %v4493_v7 = vmax.f32 %v1502_v49, %v1503_v39 }
 0x28f   : > { %v1348_v0 = vmax.f32 %v1346_v51, %v4255_v61 }
 0x290   : > { %v1351_v18 = vmax.f32 %v1349_v20, %v4314_v8  ;;  %v1384_v20 = vmax.f32 %v1382_v54, %v4422_v32  ;;  %v1506_v5 = vsub.f32 %v3687_v42, %v4493_v7 }
 0x291   : > { %v1350_v38 = vmax.f32 %v1348_v0, %v4292_v35  ;;  %v6225_v0 = vld [vmem:[#allocation7_spill] sm:$0xff] }
 0x292   : > { %v1353_v27 = vmax.f32 %v1351_v18, %v4360_v60  ;;  %v1386_v39 = vmax.f32 %v1384_v20, %v4443_v1  ;;  %v4508_v28 = vpop.f32.mrf.mxu0  ;;  %v1699_v54 = vmul.f32 1.442695, %v1506_v5  ;;  %v1514_v20 = vsub.f32 %v3739_v58, %v4493_v7  ;;  %v6231_v58 = vld [vmem:[#allocation16_spill] sm:$0xff]  ;;  %v6259_v1 = vld [vmem:[#allocation63_spill] sm:$0xff] }
 0x293   : > { %v1352_v41 = vmax.f32 %v1350_v38, %v4337_v13  ;;  %v4514_v42 = vpop.f32.mrf.mxu2 }
 0x294   : > { %v1355_v9 = vmax.f32 %v1353_v27, %v4411_v34  ;;  %v1508_v27 = vsub.f32 %v6225_v0, %v4493_v7  ;;  %6227 = vst [vmem:[#allocation130_spill] sm:$0xff] %v4514_v42  ;;  %v6228_v0 = vld [vmem:[#allocation11_spill] sm:$0xff]  ;;  %3011 = vpow2.f32 %v1699_v54 }
 0x295   : > { %v1354_v51 = vmax.f32 %v1352_v41, %v4383_v46  ;;  %v6226_v41 = vld [vmem:[#allocation9_spill] sm:$0xff]  ;;  %v1512_v32 = vsub.f32 %v6228_v0, %v4493_v7 }
 0x296   : > { %v1357_v47 = vmax.f32 %v1355_v9, %v4453_v22  ;;  %v1510_v57 = vsub.f32 %v6226_v41, %v4493_v7 }
 0x297   : > { %v1356_v49 = vmax.f32 %v1354_v51, %v4432_v63 }
 0x298   : > { %v1359_v18 = vmax.f32 %v1357_v47, %v4486_v12  ;;  %v1703_v47 = vmul.f32 1.442695, %v1508_v27  ;;  %v1711_v27 = vmul.f32 1.442695, %v1512_v32 }
 0x299   : > { %v1358_v38 = vmax.f32 %v1356_v49, %v4470_v44  ;;  %v1516_v49 = vsub.f32 %v3753_v62, %v4493_v7  ;;  %v1522_v62 = vsub.f32 %v3797_v11, %v4493_v7 }
 0x29a   : > { %v1388_v9 = vmax.f32 %v1386_v39, %v1359_v18  ;;  %3013 = vpow2.f32 %v1703_v47  ;;  %v1707_v18 = vmul.f32 1.442695, %v1510_v57  ;;  %v1518_v39 = vsub.f32 %v3767_v2, %v4493_v7  ;;  %v4525_v41 = vpop.eup %3011 }
 0x29b   : > { %v1360_v52 = vmax.f32 %v1358_v38, %v4508_v28  ;;  %v1715_v38 = vmul.f32 1.442695, %v1514_v20  ;;  %6229 = vst [vmem:[#allocation118_spill] sm:$0xff] %v4525_v41  ;;  %v1520_v47 = vsub.f32 %v6231_v58, %v4493_v7  ;;  %v1719_v57 = vmul.f32 1.442695, %v1516_v49  ;;  %v4534_v32 = vpop.f32.mrf.mxu2 }
 0x29c   : > { %v1390_v51 = vmax.f32 %v1388_v9, %v4460_v50  ;;  %3015 = vpow2.f32 %v1707_v18  ;;  %6232 = vst [vmem:[#allocation126_spill] sm:$0xff] %v4534_v32  ;;  %v1524_v20 = vsub.f32 %v3813_v16, %v4493_v7  ;;  %v1562_v50 = vsub.f32 %v6259_v1, %v4493_v7  ;;  %v6264_v1 = vld [vmem:[#allocation66_spill] sm:$0xff] }
 0x29d   : > { %3017 = vpow2.f32 %v1711_v27  ;;  %v1727_v18 = vmul.f32 1.442695, %v1520_v47  ;;  %v1528_v27 = vsub.f32 %v3843_v26, %v4493_v7 }
 0x29e   : > { %v1392_v5 = vmax.f32 %v1390_v51, %v1360_v52  ;;  %3019 = vpow2.f32 %v1715_v38  ;;  %v1723_v52 = vmul.f32 1.442695, %v1518_v39  ;;  %v1731_v39 = vmul.f32 1.442695, %v1522_v62 }
 0x29f   : > { %3021 = vpow2.f32 %v1719_v57  ;;  %v1735_v47 = vmul.f32 1.442695, %v1524_v20  ;;  %v1534_v57 = vsub.f32 %v3886_v40, %v4493_v7  ;;  %v6240_v40 = vld [vmem:[#allocation36_spill] sm:$0xff] }
 0x2a0   : > { %v1393_v9 = vmax.f32 %v4477_v59, %v1392_v5  ;;  %v4528_v54 = vpop.eup %3013  ;;  %v1526_v5 = vsub.f32 %v3829_v21, %v4493_v7  ;;  %3023 = vpow2.f32 %v1723_v52  ;;  %v1532_v21 = vsub.f32 %v3875_v36, %v4493_v7 }
 0x2a1   : > { %6230 = vst [vmem:[#allocation137_spill] sm:$0xff] %v4528_v54  ;;  %v2182_v0 = vadd.f32 %v4528_v54, %v4525_v41  ;;  %3025 = vpow2.f32 %v1727_v18 }
 0x2a2   : > { %v1394_v2 = vmax.f32 %v4495_v25, %v1393_v9  ;;  %v4539_v51 = vpop.eup %3015  ;;  %v1530_v9 = vsub.f32 %v3859_v31, %v4493_v7  ;;  %v1739_v26 = vmul.f32 1.442695, %v1526_v5  ;;  %3027 = vpow2.f32 %v1731_v39  ;;  %v6242_v39 = vld [vmem:[#allocation39_spill] sm:$0xff] }
 0x2a3   : > { %6233 = vst [vmem:[#allocation134_spill] sm:$0xff] %v4539_v51  ;;  %v2183_v11 = vadd.f32 %v4539_v51, %v2182_v0  ;;  %v4546_v49 = vpop.eup %3017  ;;  %v1743_v0 = vmul.f32 1.442695, %v1528_v27  ;;  %v1540_v5 = vsub.f32 %v6240_v40, %v4493_v7  ;;  %3029 = vpow2.f32 %v1735_v47  ;;  %v4573_v51 = vpop.f32.mrf.mxu2 }
 0x2a4   : > { %6234 = vst [vmem:[#allocation7_spill] sm:$0xff] %v4546_v49  ;;  %v1395_v38 = vmax.f32 %v4514_v42, %v1394_v2  ;;  %v4554_v58 = vpop.eup %3019  ;;  %v6237_v2 = vld [vmem:[#allocation31_spill] sm:$0xff]  ;;  %v1747_v54 = vmul.f32 1.442695, %v1530_v9  ;;  %v1542_v27 = vsub.f32 %v6242_v39, %v4493_v7  ;;  %3031 = vpow2.f32 %v1739_v26 }
 0x2a5   : > { %v2184_v16 = vadd.f32 %v4546_v49, %v2183_v11  ;;  %6235 = vst [vmem:[#allocation9_spill] sm:$0xff] %v4554_v58  ;;  %v4561_v52 = vpop.eup %3021  ;;  %v1536_v31 = vsub.f32 %v6237_v2, %v4493_v7  ;;  %v6238_v11 = vld [vmem:[#allocation34_spill] sm:$0xff]  ;;  %v1755_v2 = vmul.f32 1.442695, %v1534_v57  ;;  %v6245_v49 = vld [vmem:[#allocation44_spill] sm:$0xff]  ;;  %3033 = vpow2.f32 %v1743_v0  ;;  %v6247_v57 = vld [vmem:[#allocation47_spill] sm:$0xff] }
 0x2a6   : > { %6236 = vst [vmem:[#allocation11_spill] sm:$0xff] %v4561_v52  ;;  %v1538_v41 = vsub.f32 %v6238_v11, %v4493_v7  ;;  %v1396_v20 = vmax.f32 %v4534_v32, %v1395_v38  ;;  %v4569_v18 = vpop.eup %3023  ;;  %v6244_v38 = vld [vmem:[#allocation41_spill] sm:$0xff]  ;;  %3035 = vpow2.f32 %v1747_v54  ;;  %v1578_v42 = vsub.f32 %v6151_v15, %v4493_v7 }
 0x2a7   : > { %v2185_v62 = vadd.f32 %v4554_v58, %v2184_v16  ;;  %6239 = vst [vmem:[#allocation16_spill] sm:$0xff] %v4569_v18  ;;  %v1751_v16 = vmul.f32 1.442695, %v1532_v21  ;;  %v4578_v11 = vpop.eup %3025  ;;  %v1546_v58 = vsub.f32 %v6245_v49, %v4493_v7  ;;  %v1759_v47 = vmul.f32 1.442695, %v1536_v31 }
 0x2a8   : > { %6241 = vst [vmem:[#allocation31_spill] sm:$0xff] %v4573_v51  ;;  %v1763_v21 = vmul.f32 1.442695, %v1538_v41  ;;  %v1397_v39 = vmax.f32 %v4573_v51, %v1396_v20  ;;  %v4586_v26 = vpop.eup %3027  ;;  %v1771_v49 = vmul.f32 1.442695, %v1542_v27  ;;  %v6250_v41 = vld [vmem:[#allocation52_spill] sm:$0xff]  ;;  %v1582_v15 = vsub.f32 %v6154_v29, %v4493_v7 }
 0x2a9   : > { %v2186_v36 = vadd.f32 %v4561_v52, %v2185_v62  ;;  %6243 = vst [vmem:[#allocation34_spill] sm:$0xff] %v4578_v11  ;;  %v1544_v62 = vsub.f32 %v6244_v38, %v4493_v7  ;;  %3037 = vpow2.f32 %v1751_v16  ;;  %v1767_v52 = vmul.f32 1.442695, %v1540_v5  ;;  %v6248_v38 = vld [vmem:[#allocation49_spill] sm:$0xff]  ;;  %v4593_v54 = vpop.eup %3029  ;;  %v6251_v20 = vld [vmem:[#allocation55_spill] sm:$0xff] }
 0x2aa   : > { %6246 = vst [vmem:[#allocation36_spill] sm:$0xff] %v4586_v26  ;;  %3039 = vpow2.f32 %v1755_v2  ;;  %v1552_v0 = vsub.f32 %v6250_v41, %v4493_v7  ;;  %v1779_v5 = vmul.f32 1.442695, %v1546_v58  ;;  %v1398_v2 = vrot.slane %v1397_v39, 4 }
 0x2ab   : > { %v2187_v9 = vadd.f32 %v4569_v18, %v2186_v36  ;;  %v1548_v36 = vsub.f32 %v6247_v57, %v4493_v7  ;;  %v1550_v18 = vsub.f32 %v6248_v38, %v4493_v7  ;;  %6249 = vst [vmem:[#allocation39_spill] sm:$0xff] %v4593_v54  ;;  %3041 = vpow2.f32 %v1759_v47  ;;  %v4599_v57 = vpop.eup %3031 }
 0x2ac   : > { %6252 = vst [vmem:[#allocation41_spill] sm:$0xff] %v4599_v57  ;;  %3043 = vpow2.f32 %v1763_v21  ;;  %v4602_v27 = vpop.eup %3033 }
 0x2ad   : > { %v2188_v40 = vadd.f32 %v4578_v11, %v2187_v9  ;;  %v1554_v9 = vsub.f32 %v6251_v20, %v4493_v7  ;;  %v1775_v11 = vmul.f32 1.442695, %v1544_v62  ;;  %6253 = vst [vmem:[#allocation44_spill] sm:$0xff] %v4602_v27  ;;  %3045 = vpow2.f32 %v1767_v52  ;;  %v4606_v41 = vpop.eup %3035  ;;  %v6256_v20 = vld [vmem:[#allocation59_spill] sm:$0xff] }
 0x2ae   : > { %6255 = vst [vmem:[#allocation47_spill] sm:$0xff] %v4606_v41  ;;  %v1558_v47 = vsub.f32 %v6256_v20, %v4493_v7  ;;  %3047 = vpow2.f32 %v1771_v49  ;;  %v1787_v62 = vmul.f32 1.442695, %v1550_v18  ;;  %v1791_v52 = vmul.f32 1.442695, %v1552_v0 }
 0x2af   : > { %v2189_v31 = vadd.f32 %v4586_v26, %v2188_v40  ;;  %v6254_v40 = vld [vmem:[#allocation57_spill] sm:$0xff]  ;;  %v1783_v26 = vmul.f32 1.442695, %v1548_v36  ;;  %v4611_v58 = vpop.eup %3037  ;;  %3049 = vpow2.f32 %v1775_v11  ;;  %v1399_v49 = vmax.f32 %v1397_v39, %v1398_v2  ;;  %v6266_v39 = vld [vmem:[#allocation68_spill] sm:$0xff] }
 0x2b0   : > { %v1556_v38 = vsub.f32 %v6254_v40, %v4493_v7  ;;  %6257 = vst [vmem:[#allocation49_spill] sm:$0xff] %v4611_v58  ;;  %v4617_v36 = vpop.eup %3039  ;;  %3051 = vpow2.f32 %v1779_v5  ;;  %v1795_v40 = vmul.f32 1.442695, %v1554_v9  ;;  %v1566_v11 = vsub.f32 %v6264_v1, %v4493_v7 }
 0x2b1   : > { %v2190_v16 = vadd.f32 %v4593_v54, %v2189_v31  ;;  %v6258_v31 = vld [vmem:[#allocation61_spill] sm:$0xff]  ;;  %6260 = vst [vmem:[#allocation52_spill] sm:$0xff] %v4617_v36  ;;  %v4620_v18 = vpop.eup %3041  ;;  %3053 = vpow2.f32 %v1783_v26  ;;  %v1803_v0 = vmul.f32 1.442695, %v1558_v47  ;;  %v1568_v2 = vsub.f32 %v6266_v39, %v4493_v7 }
 0x2b2   : > { %v1560_v54 = vsub.f32 %v6258_v31, %v4493_v7  ;;  %6261 = vst [vmem:[#allocation55_spill] sm:$0xff] %v4620_v18  ;;  %v1799_v59 = vmul.f32 1.442695, %v1556_v38  ;;  %v4624_v31 = vpop.eup %3043  ;;  %3055 = vpow2.f32 %v1787_v62  ;;  %v1400_v62 = vrot.slane %v1399_v49, 2 }
 0x2b3   : > { %v2191_v21 = vadd.f32 %v4599_v57, %v2190_v16  ;;  %v6262_v16 = vld [vmem:[#allocation64_spill] sm:$0xff]  ;;  %6263 = vst [vmem:[#allocation57_spill] sm:$0xff] %v4624_v31  ;;  %v4629_v9 = vpop.eup %3045  ;;  %3057 = vpow2.f32 %v1791_v52 }
 0x2b4   : > { %v1564_v57 = vsub.f32 %v6262_v16, %v4493_v7  ;;  %6265 = vst [vmem:[#allocation59_spill] sm:$0xff] %v4629_v9  ;;  %v1807_v26 = vmul.f32 1.442695, %v1560_v54  ;;  %v4635_v38 = vpop.eup %3047  ;;  %3059 = vpow2.f32 %v1795_v40  ;;  %v1811_v16 = vmul.f32 1.442695, %v1562_v50 }
 0x2b5   : > { %v2192_v20 = vadd.f32 %v4602_v27, %v2191_v21  ;;  %v6267_v21 = vld [vmem:[#allocation71_spill] sm:$0xff]  ;;  %6268 = vst [vmem:[#allocation61_spill] sm:$0xff] %v4635_v38  ;;  %v4638_v47 = vpop.eup %3049  ;;  %3061 = vpow2.f32 %v1799_v59  ;;  %v1819_v54 = vmul.f32 1.442695, %v1566_v11  ;;  %v1823_v59 = vmul.f32 1.442695, %v1568_v2 }
 0x2b6   : > { %v1570_v27 = vsub.f32 %v6267_v21, %v4493_v7  ;;  %6269 = vst [vmem:[#allocation63_spill] sm:$0xff] %v4638_v47  ;;  %v1815_v25 = vmul.f32 1.442695, %v1564_v57  ;;  %v4642_v39 = vpop.eup %3051  ;;  %v6272_v21 = vld [vmem:[#allocation77_spill] sm:$0xff]  ;;  %3063 = vpow2.f32 %v1803_v0  ;;  %v1401_v0 = vmax.f32 %v1399_v49, %v1400_v62  ;;  %v6280_v49 = vld [vmem:[#allocation95_spill] sm:$0xff] }
 0x2b7   : > { %v2193_v5 = vadd.f32 %v4606_v41, %v2192_v20  ;;  %v6270_v20 = vld [vmem:[#allocation74_spill] sm:$0xff]  ;;  %6271 = vst [vmem:[#allocation64_spill] sm:$0xff] %v4642_v39  ;;  %v1574_v52 = vsub.f32 %v6272_v21, %v4493_v7  ;;  %v4647_v50 = vpop.eup %3053  ;;  %3065 = vpow2.f32 %v1807_v26  ;;  %v1586_v62 = vsub.f32 %v6156_v45, %v4493_v7 }
 0x2b8   : > { %v1572_v41 = vsub.f32 %v6270_v20, %v4493_v7  ;;  %6273 = vst [vmem:[#allocation66_spill] sm:$0xff] %v4647_v50  ;;  %v4653_v57 = vpop.eup %3055  ;;  %3067 = vpow2.f32 %v1811_v16  ;;  %v1827_v20 = vmul.f32 1.442695, %v1570_v27  ;;  %v1584_v16 = vsub.f32 %v6280_v49, %v4493_v7 }
 0x2b9   : > { %v2194_v1 = vadd.f32 %v4611_v58, %v2193_v5  ;;  %v6274_v5 = vld [vmem:[#allocation79_spill] sm:$0xff]  ;;  %6275 = vst [vmem:[#allocation68_spill] sm:$0xff] %v4653_v57  ;;  %v4656_v11 = vpop.eup %3057  ;;  %3069 = vpow2.f32 %v1815_v25  ;;  %v1835_v2 = vmul.f32 1.442695, %v1574_v52  ;;  %v1590_v45 = vsub.f32 %v6159_v48, %v4493_v7 }
 0x2ba   : > { %v1576_v58 = vsub.f32 %v6274_v5, %v4493_v7  ;;  %6276 = vst [vmem:[#allocation71_spill] sm:$0xff] %v4656_v11  ;;  %v1831_v51 = vmul.f32 1.442695, %v1572_v41  ;;  %v4660_v5 = vpop.eup %3059  ;;  %3071 = vpow2.f32 %v1819_v54  ;;  %v1402_v54 = vrot.slane %v1401_v0, 1 }
 0x2bb   : > { %v2195_v40 = vadd.f32 %v4617_v36, %v2194_v1  ;;  %v6277_v1 = vld [vmem:[#allocation87_spill] sm:$0xff]  ;;  %6278 = vst [vmem:[#allocation74_spill] sm:$0xff] %v4660_v5  ;;  %v4665_v27 = vpop.eup %3061  ;;  %3073 = vpow2.f32 %v1823_v59 }
 0x2bc   : > { %v1580_v36 = vsub.f32 %v6277_v1, %v4493_v7  ;;  %6279 = vst [vmem:[#allocation77_spill] sm:$0xff] %v4665_v27  ;;  %v1839_v25 = vmul.f32 1.442695, %v1576_v58  ;;  %v4671_v41 = vpop.eup %3063  ;;  %3075 = vpow2.f32 %v1827_v20  ;;  %v1851_v58 = vmul.f32 1.442695, %v1582_v15  ;;  %v6286_v20 = vld [vmem:[#allocation108_spill] sm:$0xff] }
 0x2bd   : > { %v2196_v21 = vadd.f32 %v4620_v18, %v2195_v40  ;;  %6281 = vst [vmem:[#allocation79_spill] sm:$0xff] %v4671_v41  ;;  %v1843_v40 = vmul.f32 1.442695, %v1578_v42  ;;  %v4674_v52 = vpop.eup %3065  ;;  %3077 = vpow2.f32 %v1831_v51  ;;  %v1855_v51 = vmul.f32 1.442695, %v1584_v16 }
 0x2be   : > { %6282 = vst [vmem:[#allocation87_spill] sm:$0xff] %v4674_v52  ;;  %v4678_v49 = vpop.eup %3067  ;;  %3079 = vpow2.f32 %v1835_v2  ;;  %v4692_v2 = vmax.f32 %v1401_v0, %v1402_v54  ;;  %v1867_v16 = vmul.f32 1.442695, %v1590_v45  ;;  %v6292_v0 = vld [vmem:[#allocation124_spill] sm:$0xff] }
 0x2bf   : > { %v2197_v26 = vadd.f32 %v4624_v31, %v2196_v21  ;;  %v6283_v21 = vld [vmem:[#allocation101_spill] sm:$0xff]  ;;  %v1847_v31 = vmul.f32 1.442695, %v1580_v36  ;;  %6284 = vst [vmem:[#allocation95_spill] sm:$0xff] %v4678_v49  ;;  %v4683_v42 = vpop.eup %3069  ;;  %3081 = vpow2.f32 %v1839_v25  ;;  %v6293_v54 = vld [vmem:[#allocation128_spill] sm:$0xff] }
 0x2c0   : > { %v1588_v1 = vsub.f32 %v6283_v21, %v4493_v7  ;;  %6285 = vst [vmem:[#allocation101_spill] sm:$0xff] %v4683_v42  ;;  %v4689_v36 = vpop.eup %3071  ;;  %3083 = vpow2.f32 %v1843_v40  ;;  %v1859_v21 = vmul.f32 1.442695, %v1586_v62  ;;  %v1600_v40 = vsub.f32 %v6292_v0, %v4493_v7 }
 0x2c1   : > { %v2198_v29 = vadd.f32 %v4629_v9, %v2197_v26  ;;  %v1592_v26 = vsub.f32 %v6286_v20, %v4493_v7  ;;  %v1594_v9 = vsub.f32 %v6161_v43, %v4493_v7  ;;  %6287 = vst [vmem:[#allocation108_spill] sm:$0xff] %v4689_v36  ;;  %v4694_v15 = vpop.eup %3073  ;;  %3085 = vpow2.f32 %v1847_v31 }
 0x2c2   : > { %6288 = vst [vmem:[#allocation160_spill] sm:$0xff] %v4694_v15  ;;  %v1863_v20 = vmul.f32 1.442695, %v1588_v1  ;;  %v4698_v18 = vpop.eup %3075  ;;  %v1598_v43 = vsub.f32 %v6165_v33, %v4493_v7  ;;  %3087 = vpow2.f32 %v1851_v58  ;;  %v1887_v45 = vmul.f32 1.442695, %v1600_v40  ;;  %v6305_v40 = vld [vmem:[#allocation150_spill] sm:$0xff] }
 0x2c3   : > { %v2199_v59 = vadd.f32 %v4635_v38, %v2198_v29  ;;  %v6289_v29 = vld [vmem:[#allocation116_spill] sm:$0xff]  ;;  %v4703_v25 = vpop.eup %3077  ;;  %3089 = vpow2.f32 %v1855_v51  ;;  %v1871_v31 = vmul.f32 1.442695, %v1592_v26  ;;  %v1606_v26 = vsub.f32 %v4238_v53, %v4493_v7 }
 0x2c4   : > { %v1596_v38 = vsub.f32 %v6289_v29, %v4493_v7  ;;  %6290 = vst [vmem:[#allocation116_spill] sm:$0xff] %v4698_v18  ;;  %v4709_v1 = vpop.eup %3079  ;;  %3091 = vpow2.f32 %v1859_v21  ;;  %v1875_v29 = vmul.f32 1.442695, %v1594_v9  ;;  %v1883_v51 = vmul.f32 1.442695, %v1598_v43  ;;  %v6303_v43 = vld [vmem:[#allocation146_spill] sm:$0xff] }
 0x2c5   : > { %v2200_v48 = vadd.f32 %v4638_v47, %v2199_v59  ;;  %6291 = vst [vmem:[#allocation161_spill] sm:$0xff] %v4703_v25  ;;  %v1602_v59 = vsub.f32 %v6293_v54, %v4493_v7  ;;  %v4714_v58 = vpop.eup %3081  ;;  %3093 = vpow2.f32 %v1863_v20 }
 0x2c6   : > { %6294 = vst [vmem:[#allocation124_spill] sm:$0xff] %v4709_v1  ;;  %v1879_v0 = vmul.f32 1.442695, %v1596_v38  ;;  %3095 = vpow2.f32 %v1867_v16  ;;  %v6301_v38 = vld [vmem:[#allocation142_spill] sm:$0xff] }
 0x2c7   : > { %v2201_v62 = vadd.f32 %v4642_v39, %v2200_v48  ;;  %6295 = vst [vmem:[#allocation128_spill] sm:$0xff] %v4714_v58  ;;  %v6296_v48 = vld [vmem:[#allocation132_spill] sm:$0xff]  ;;  %v4718_v39 = vpop.eup %3083  ;;  %3097 = vpow2.f32 %v1871_v31  ;;  %v1610_v20 = vsub.f32 %v6301_v38, %v4493_v7  ;;  %v1614_v31 = vsub.f32 %v6305_v40, %v4493_v7 }
 0x2c8   : > { %v1604_v47 = vsub.f32 %v6296_v48, %v4493_v7  ;;  %6297 = vst [vmem:[#allocation132_spill] sm:$0xff] %v4718_v39  ;;  %v4723_v21 = vpop.eup %3085  ;;  %3099 = vpow2.f32 %v1875_v29  ;;  %v1891_v48 = vmul.f32 1.442695, %v1602_v59  ;;  %v6307_v59 = vld [vmem:[#allocation154_spill] sm:$0xff] }
 0x2c9   : > { %v2202_v33 = vadd.f32 %v4647_v50, %v2201_v62  ;;  %6298 = vst [vmem:[#allocation162_spill] sm:$0xff] %v4723_v21  ;;  %v6299_v62 = vld [vmem:[#allocation139_spill] sm:$0xff]  ;;  %v4727_v50 = vpop.eup %3087  ;;  %3101 = vpow2.f32 %v1879_v0  ;;  %v1907_v0 = vmul.f32 1.442695, %v1610_v20  ;;  %v1622_v20 = vsub.f32 %v4401_v56, %v4493_v7 }
 0x2ca   : > { %v1608_v54 = vsub.f32 %v6299_v62, %v4493_v7  ;;  %6300 = vst [vmem:[#allocation139_spill] sm:$0xff] %v4727_v50  ;;  %v4732_v16 = vpop.eup %3089  ;;  %3103 = vpow2.f32 %v1883_v51  ;;  %v1899_v62 = vmul.f32 1.442695, %v1606_v26  ;;  %v6310_v26 = vld [vmem:[#allocation91_spill] sm:$0xff] }
 0x2cb   : > { %v2203_v9 = vadd.f32 %v4653_v57, %v2202_v33  ;;  %6302 = vst [vmem:[#allocation142_spill] sm:$0xff] %v4732_v16  ;;  %v1612_v33 = vsub.f32 %v6303_v43, %v4493_v7  ;;  %v1895_v57 = vmul.f32 1.442695, %v1604_v47  ;;  %v4736_v32 = vpop.eup %3091  ;;  %3105 = vpow2.f32 %v1887_v45 }
 0x2cc   : > { %6304 = vst [vmem:[#allocation146_spill] sm:$0xff] %v4736_v32  ;;  %v4741_v29 = vpop.eup %3093  ;;  %v1618_v47 = vsub.f32 %v4350_v17, %v4493_v7  ;;  %3107 = vpow2.f32 %v1891_v48  ;;  %v1915_v45 = vmul.f32 1.442695, %v1614_v31  ;;  %v1535_v17 = vsub.f32 %v6190_v23, %v4692_v2  ;;  %v6315_v23 = vld [vmem:[#allocation30_spill] sm:$0xff] }
 0x2cd   : > { %v2204_v53 = vadd.f32 %v4656_v11, %v2203_v9  ;;  %6306 = vst [vmem:[#allocation150_spill] sm:$0xff] %v4741_v29  ;;  %v1616_v9 = vsub.f32 %v6307_v59, %v4493_v7  ;;  %v1903_v11 = vmul.f32 1.442695, %v1608_v54  ;;  %v4745_v55 = vpop.eup %3095  ;;  %3109 = vpow2.f32 %v1895_v57 }
 0x2ce   : > { %6308 = vst [vmem:[#allocation154_spill] sm:$0xff] %v4745_v55  ;;  %v4750_v51 = vpop.eup %3097  ;;  %v1911_v40 = vmul.f32 1.442695, %v1612_v33  ;;  %3111 = vpow2.f32 %v1899_v62  ;;  %v1923_v57 = vmul.f32 1.442695, %v1618_v47  ;;  %v1533_v31 = vsub.f32 %v6183_v6, %v4692_v2  ;;  %v6318_v6 = vld [vmem:[#allocation33_spill] sm:$0xff] }
 0x2cf   : > { %v2205_v38 = vadd.f32 %v4660_v5, %v2204_v53  ;;  %6309 = vst [vmem:[#allocation163_spill] sm:$0xff] %v4750_v51  ;;  %v1620_v53 = vsub.f32 %v6310_v26, %v4493_v7  ;;  %v4754_v5 = vpop.eup %3099  ;;  %3113 = vpow2.f32 %v1903_v11  ;;  %v1531_v11 = vsub.f32 %v6188_v37, %v4692_v2  ;;  %v6322_v37 = vld [vmem:[#allocation37_spill] sm:$0xff] }
 0x2d0   : > { %6311 = vst [vmem:[#allocation91_spill] sm:$0xff] %v4754_v5  ;;  %v4759_v48 = vpop.eup %3101  ;;  %3115 = vpow2.f32 %v1907_v0  ;;  %v1626_v0 = vsub.f32 %v6318_v6, %v4493_v7 }
 0x2d1   : > { %v2206_v43 = vadd.f32 %v4665_v27, %v2205_v38  ;;  %6312 = vst [vmem:[#allocation164_spill] sm:$0xff] %v4759_v48  ;;  %v1919_v38 = vmul.f32 1.442695, %v1616_v9  ;;  %v4763_v59 = vpop.eup %3103  ;;  %3117 = vpow2.f32 %v1911_v40  ;;  %v1927_v26 = vmul.f32 1.442695, %v1620_v53  ;;  %v6320_v40 = vld [vmem:[#allocation25_spill] sm:$0xff] }
 0x2d2   : > { %6313 = vst [vmem:[#allocation165_spill] sm:$0xff] %v4763_v59  ;;  %v4768_v62 = vpop.eup %3105  ;;  %3119 = vpow2.f32 %v1915_v45  ;;  %v1757_v9 = vmul.f32 1.442695, %v1535_v17  ;;  %v1529_v45 = vsub.f32 %v6320_v40, %v4692_v2  ;;  %v1628_v17 = vsub.f32 %v6322_v37, %v4493_v7 }
 0x2d3   : > { %v2207_v54 = vadd.f32 %v4671_v41, %v2206_v43  ;;  %6314 = vst [vmem:[#allocation166_spill] sm:$0xff] %v4768_v62  ;;  %v1624_v43 = vsub.f32 %v6315_v23, %v4493_v7  ;;  %v4772_v27 = vpop.eup %3107  ;;  %3121 = vpow2.f32 %v1919_v38  ;;  %v6324_v38 = vld [vmem:[#allocation23_spill] sm:$0xff]  ;;  %v1749_v6 = vmul.f32 1.442695, %v1531_v11 }
 0x2d4   : > { %6316 = vst [vmem:[#allocation30_spill] sm:$0xff] %v4772_v27  ;;  %v4777_v47 = vpop.eup %3109  ;;  %3123 = vpow2.f32 %v1923_v57  ;;  %v1527_v57 = vsub.f32 %v6324_v38, %v4692_v2  ;;  %v6330_v11 = vld [vmem:[#allocation43_spill] sm:$0xff]  ;;  %v1943_v38 = vmul.f32 1.442695, %v1628_v17  ;;  %v6336_v17 = vld [vmem:[#allocation18_spill] sm:$0xff] }
 0x2d5   : > { %v2208_v33 = vadd.f32 %v4674_v52, %v2207_v54  ;;  %6317 = vst [vmem:[#allocation167_spill] sm:$0xff] %v4777_v47  ;;  %v1931_v54 = vmul.f32 1.442695, %v1622_v20  ;;  %v4781_v41 = vpop.eup %3111  ;;  %3125 = vpow2.f32 %v1927_v26  ;;  %v1935_v52 = vmul.f32 1.442695, %v1624_v43  ;;  %v6328_v26 = vld [vmem:[#allocation22_spill] sm:$0xff] }
 0x2d6   : > { %6319 = vst [vmem:[#allocation33_spill] sm:$0xff] %v4781_v41  ;;  %v4786_v23 = vpop.eup %3113  ;;  %3127 = vpow2.f32 %v1757_v9  ;;  %v1525_v37 = vsub.f32 %v6328_v26, %v4692_v2  ;;  %v1632_v9 = vsub.f32 %v6330_v11, %v4493_v7  ;;  %v1521_v11 = vsub.f32 %v6336_v17, %v4692_v2 }
 0x2d7   : > { %v2209_v56 = vadd.f32 %v4678_v49, %v2208_v33  ;;  %v1753_v33 = vmul.f32 1.442695, %v1533_v31  ;;  %6321 = vst [vmem:[#allocation25_spill] sm:$0xff] %v4786_v23  ;;  %v4790_v49 = vpop.eup %3115  ;;  %v6326_v31 = vld [vmem:[#allocation40_spill] sm:$0xff]  ;;  %3129 = vpow2.f32 %v1931_v54 }
 0x2d8   : > { %6323 = vst [vmem:[#allocation37_spill] sm:$0xff] %v4790_v49  ;;  %v1630_v40 = vsub.f32 %v6326_v31, %v4493_v7  ;;  %v6332_v54 = vld [vmem:[#allocation20_spill] sm:$0xff] }
 0x2d9   : > { %v2210_v53 = vadd.f32 %v4683_v42, %v2209_v56  ;;  %v4795_v56 = vpop.eup %3117  ;;  %v1939_v42 = vmul.f32 1.442695, %v1626_v0  ;;  %3131 = vpow2.f32 %v1753_v33  ;;  %v1523_v31 = vsub.f32 %v6332_v54, %v4692_v2 }
 0x2da   : > { %6325 = vst [vmem:[#allocation23_spill] sm:$0xff] %v4795_v56  ;;  %v4799_v35 = vpop.eup %3119  ;;  %3133 = vpow2.f32 %v1935_v52  ;;  %v1947_v26 = vmul.f32 1.442695, %v1630_v40 }
 0x2db   : > { %v2211_v20 = vadd.f32 %v4689_v36, %v2210_v53  ;;  %6327 = vst [vmem:[#allocation40_spill] sm:$0xff] %v4799_v35  ;;  %v1745_v53 = vmul.f32 1.442695, %v1529_v45  ;;  %v4804_v36 = vpop.eup %3121  ;;  %3135 = vpow2.f32 %v1749_v6  ;;  %v6334_v45 = vld [vmem:[#allocation46_spill] sm:$0xff]  ;;  %v6338_v6 = vld [vmem:[#allocation15_spill] sm:$0xff] }
 0x2dc   : > { %6329 = vst [vmem:[#allocation22_spill] sm:$0xff] %v4804_v36  ;;  %v4808_v8 = vpop.eup %3123  ;;  %v1634_v33 = vsub.f32 %v6334_v45, %v4493_v7  ;;  %3137 = vpow2.f32 %v1939_v42  ;;  %v1519_v54 = vsub.f32 %v6338_v6, %v4692_v2 }
 0x2dd   : > { %v2212_v43 = vadd.f32 %v4694_v15, %v2211_v20  ;;  %6331 = vst [vmem:[#allocation43_spill] sm:$0xff] %v4808_v8  ;;  %v1741_v20 = vmul.f32 1.442695, %v1527_v57  ;;  %v4813_v15 = vpop.eup %3125  ;;  %3139 = vpow2.f32 %v1745_v53  ;;  %v1951_v57 = vmul.f32 1.442695, %v1632_v9  ;;  %v6342_v9 = vld [vmem:[#allocation14_spill] sm:$0xff] }
 0x2de   : > { %6333 = vst [vmem:[#allocation20_spill] sm:$0xff] %v4813_v15  ;;  %v4817_v13 = vpop.eup %3127  ;;  %3141 = vpow2.f32 %v1943_v38  ;;  %v1955_v53 = vmul.f32 1.442695, %v1634_v33  ;;  %v1517_v38 = vsub.f32 %v6342_v9, %v4692_v2 }
 0x2df   : > { %v2213_v0 = vadd.f32 %v4698_v18, %v2212_v43  ;;  %6335 = vst [vmem:[#allocation46_spill] sm:$0xff] %v4817_v13  ;;  %v1737_v43 = vmul.f32 1.442695, %v1525_v37  ;;  %v4822_v18 = vpop.eup %3129  ;;  %2289 = vmatpush.msrb.mxu2 %v4817_v13  ;;  %3143 = vpow2.f32 %v1741_v20  ;;  %v1729_v13 = vmul.f32 1.442695, %v1521_v11  ;;  %v6345_v20 = vld [vmem:[#allocation13_spill] sm:$0xff] }
 0x2e0   : > { %6337 = vst [vmem:[#allocation18_spill] sm:$0xff] %v4822_v18  ;;  %v4827_v42 = vpop.eup %3131  ;;  %3145 = vpow2.f32 %v1947_v26  ;;  %v1515_v33 = vsub.f32 %v6345_v20, %v4692_v2  ;;  %v1725_v26 = vmul.f32 1.442695, %v1519_v54 }
 0x2e1   : > { %v2214_v52 = vadd.f32 %v4703_v25, %v2213_v0  ;;  %6339 = vst [vmem:[#allocation15_spill] sm:$0xff] %v4827_v42  ;;  %v6340_v0 = vld [vmem:[#allocation82_spill] sm:$0xff]  ;;  %v1733_v25 = vmul.f32 1.442695, %v1523_v31  ;;  %v4832_v37 = vpop.eup %3133  ;;  %2290 = vmatpush.msrb.mxu2 %v4827_v42  ;;  %3147 = vpow2.f32 %v1737_v43  ;;  %v6348_v43 = vld [vmem:[#allocation12_spill] sm:$0xff] }
 0x2e2   : > { %v1567_v45 = vsub.f32 %v6340_v0, %v4692_v2  ;;  %6341 = vst [vmem:[#allocation82_spill] sm:$0xff] %v4832_v37  ;;  %v4837_v17 = vpop.eup %3135  ;;  %3149 = vpow2.f32 %v1951_v57  ;;  %v1513_v57 = vsub.f32 %v6348_v43, %v4692_v2  ;;  %v1721_v42 = vmul.f32 1.442695, %v1517_v38 }
 0x2e3   : > { %v2215_v40 = vadd.f32 %v4709_v1, %v2214_v52  ;;  %6343 = vst [vmem:[#allocation14_spill] sm:$0xff] %v4837_v17  ;;  %v6344_v52 = vld [vmem:[#allocation78_spill] sm:$0xff]  ;;  %v4842_v31 = vpop.eup %3137  ;;  %2291 = vmatpush.msrb.mxu2 %v4837_v17  ;;  %3151 = vpow2.f32 %v1733_v25  ;;  %v1717_v17 = vmul.f32 1.442695, %v1515_v33 }
 0x2e4   : > { %v1565_v1 = vsub.f32 %v6344_v52, %v4692_v2  ;;  %v4847_v0 = vpop.eup %3139  ;;  %v1821_v52 = vmul.f32 1.442695, %v1567_v45  ;;  %3153 = vpow2.f32 %v1955_v53  ;;  %v6352_v45 = vld [vmem:[#allocation10_spill] sm:$0xff] }
 0x2e5   : > { %v2216_v6 = vadd.f32 %v4714_v58, %v2215_v40  ;;  %6346 = vst [vmem:[#allocation78_spill] sm:$0xff] %v4847_v0  ;;  %v6347_v40 = vld [vmem:[#allocation73_spill] sm:$0xff]  ;;  %v4852_v11 = vpop.eup %3141  ;;  %2292 = vmatpush.msrb.mxu2 %v4847_v0  ;;  %3155 = vpow2.f32 %v1729_v13  ;;  %v1511_v53 = vsub.f32 %v6352_v45, %v4692_v2 }
 0x2e6   : > { %v1563_v58 = vsub.f32 %v6347_v40, %v4692_v2  ;;  %v4857_v54 = vpop.eup %3143  ;;  %v1817_v40 = vmul.f32 1.442695, %v1565_v1  ;;  %3157 = vpow2.f32 %v1725_v26  ;;  %v6355_v1 = vld [vmem:[#allocation8_spill] sm:$0xff] }
 0x2e7   : > { %v2217_v9 = vadd.f32 %v4718_v39, %v2216_v6  ;;  %6349 = vst [vmem:[#allocation13_spill] sm:$0xff] %v4857_v54  ;;  %v6350_v6 = vld [vmem:[#allocation70_spill] sm:$0xff]  ;;  %v4862_v25 = vpop.eup %3145  ;;  %2293 = vmatpush.msrb.mxu2 %v4857_v54  ;;  %3159 = vpow2.f32 %v1821_v52  ;;  %v1709_v54 = vmul.f32 1.442695, %v1511_v53 }
 0x2e8   : > { %v1561_v39 = vsub.f32 %v6350_v6, %v4692_v2  ;;  %6351 = vst [vmem:[#allocation73_spill] sm:$0xff] %v4862_v25  ;;  %v4867_v38 = vpop.eup %3147  ;;  %v1813_v0 = vmul.f32 1.442695, %v1563_v58  ;;  %v1509_v6 = vsub.f32 %v6355_v1, %v4692_v2  ;;  %v1713_v25 = vmul.f32 1.442695, %v1513_v57  ;;  %v6359_v52 = vld [vmem:[#allocation6_spill] sm:$0xff] }
 0x2e9   : > { %v2218_v20 = vadd.f32 %v4723_v21, %v2217_v9  ;;  %6353 = vst [vmem:[#allocation12_spill] sm:$0xff] %v4867_v38  ;;  %v6354_v9 = vld [vmem:[#allocation67_spill] sm:$0xff]  ;;  %v4872_v13 = vpop.eup %3149  ;;  %3161 = vpow2.f32 %v1721_v42  ;;  %2294 = vmatpush.msrb.mxu2 %v4867_v38 }
 0x2ea   : > { %v1559_v21 = vsub.f32 %v6354_v9, %v4692_v2  ;;  %v4877_v33 = vpop.eup %3151  ;;  %3163 = vpow2.f32 %v1817_v40  ;;  %v1507_v9 = vsub.f32 %v6359_v52, %v4692_v2  ;;  %v6361_v40 = vld [vmem:[#allocation5_spill] sm:$0xff]  ;;  %v1705_v38 = vmul.f32 1.442695, %v1509_v6 }
 0x2eb   : > { %v2219_v43 = vadd.f32 %v4727_v50, %v2218_v20  ;;  %6356 = vst [vmem:[#allocation70_spill] sm:$0xff] %v4877_v33  ;;  %v6357_v20 = vld [vmem:[#allocation65_spill] sm:$0xff]  ;;  %v1809_v50 = vmul.f32 1.442695, %v1561_v39  ;;  %v4882_v58 = vpop.eup %3153  ;;  %3165 = vpow2.f32 %v1717_v17  ;;  %2295 = vmatpush.msrb.mxu2 %v4877_v33 }
 0x2ec   : > { %v1557_v45 = vsub.f32 %v6357_v20, %v4692_v2  ;;  %6358 = vst [vmem:[#allocation10_spill] sm:$0xff] %v4882_v58  ;;  %v4887_v42 = vpop.eup %3155  ;;  %3167 = vpow2.f32 %v1813_v0  ;;  %v1505_v20 = vsub.f32 %v6361_v40, %v4692_v2  ;;  %v6363_v0 = vld [vmem:[#allocation58_spill] sm:$0xff]  ;;  %v1701_v33 = vmul.f32 1.442695, %v1507_v9  ;;  %v6364_v40 = vld [vmem:[#allocation56_spill] sm:$0xff] }
 0x2ed   : > { %v2220_v26 = vadd.f32 %v4732_v16, %v2219_v43  ;;  %v6360_v43 = vld [vmem:[#allocation62_spill] sm:$0xff]  ;;  %v1805_v16 = vmul.f32 1.442695, %v1559_v21  ;;  %v4892_v39 = vpop.eup %3157  ;;  %3169 = vpow2.f32 %v1713_v25  ;;  %2296 = vmatpush.msrb.mxu2 %v4887_v42 }
 0x2ee   : > { %v1555_v1 = vsub.f32 %v6360_v43, %v4692_v2  ;;  %v4897_v17 = vpop.eup %3159  ;;  %3171 = vpow2.f32 %v1809_v50  ;;  %v1551_v43 = vsub.f32 %v6363_v0, %v4692_v2  ;;  %v1697_v9 = vmul.f32 1.442695, %v1505_v20  ;;  %v6365_v0 = vld [vmem:[#allocation51_spill] sm:$0xff] }
 0x2ef   : > { %v2221_v57 = vadd.f32 %v4736_v32, %v2220_v26  ;;  %v6362_v26 = vld [vmem:[#allocation60_spill] sm:$0xff]  ;;  %v1801_v32 = vmul.f32 1.442695, %v1557_v45  ;;  %v4902_v21 = vpop.eup %3161  ;;  %3173 = vpow2.f32 %v1709_v54  ;;  %2309 = vmatpush.msrb.mxu3 %v4897_v17  ;;  %2297 = vmatpush.msrb.mxu2 %v4892_v39 }
 0x2f0   : > { %v1553_v52 = vsub.f32 %v6362_v26, %v4692_v2  ;;  %v4908_v25 = vpop.eup %3163  ;;  %v1797_v45 = vmul.f32 1.442695, %v1555_v1  ;;  %3175 = vpow2.f32 %v1805_v16  ;;  %v1549_v26 = vsub.f32 %v6364_v40, %v4692_v2 }
 0x2f1   : > { %v2222_v53 = vadd.f32 %v4741_v29, %v2221_v57  ;;  %v1599_v57 = vsub.f32 %v4255_v61, %v4692_v2  ;;  %v4913_v50 = vpop.eup %3165  ;;  %3177 = vpow2.f32 %v1705_v38  ;;  %2310 = vmatpush.msrb.mxu3 %v4908_v25  ;;  %2298 = vmatpush.msrb.mxu2 %v4902_v21  ;;  %v1597_v61 = vsub.f32 %v6221_v4, %v4692_v2  ;;  %v6366_v29 = vld [vmem:[#allocation48_spill] sm:$0xff] }
 0x2f2   : > { %v4919_v54 = vpop.eup %3167  ;;  %v1793_v1 = vmul.f32 1.442695, %v1553_v52  ;;  %3179 = vpow2.f32 %v1801_v32  ;;  %v1547_v40 = vsub.f32 %v6365_v0, %v4692_v2  ;;  %v1789_v38 = vmul.f32 1.442695, %v1551_v43 }
 0x2f3   : > { %v2223_v6 = vadd.f32 %v4745_v55, %v2222_v53  ;;  %v4924_v16 = vpop.eup %3169  ;;  %3181 = vpow2.f32 %v1701_v33  ;;  %2311 = vmatpush.msrb.mxu3 %v4919_v54  ;;  %2299 = vmatpush.msrb.mxu2 %v4913_v50  ;;  %v1595_v4 = vsub.f32 %v6223_v3, %v4692_v2  ;;  %v1885_v32 = vmul.f32 1.442695, %v1599_v57  ;;  %v6367_v55 = vld [vmem:[#allocation45_spill] sm:$0xff] }
 0x2f4   : > { %v4930_v20 = vpop.eup %3171  ;;  %3183 = vpow2.f32 %v1797_v45  ;;  %v1545_v0 = vsub.f32 %v6366_v29, %v4692_v2  ;;  %v1785_v33 = vmul.f32 1.442695, %v1549_v26  ;;  %v1593_v3 = vsub.f32 %v6218_v19, %v4692_v2 }
 0x2f5   : > { %v2224_v53 = vadd.f32 %v4750_v51, %v2223_v6  ;;  %v4935_v52 = vpop.eup %3173  ;;  %3185 = vpow2.f32 %v1697_v9  ;;  %2312 = vmatpush.msrb.mxu3 %v4930_v20  ;;  %2300 = vmatpush.msrb.mxu2 %v4924_v16  ;;  %v1881_v57 = vmul.f32 1.442695, %v1597_v61  ;;  %v1543_v29 = vsub.f32 %v6367_v55, %v4692_v2  ;;  %v6368_v51 = vld [vmem:[#allocation42_spill] sm:$0xff] }
 0x2f6   : > { %v4941_v43 = vpop.eup %3175  ;;  %3187 = vpow2.f32 %v1793_v1  ;;  %v1781_v9 = vmul.f32 1.442695, %v1547_v40  ;;  %v1591_v19 = vsub.f32 %v6222_v30, %v4692_v2  ;;  %v1877_v1 = vmul.f32 1.442695, %v1595_v4 }
 0x2f7   : > { %v2225_v6 = vadd.f32 %v4754_v5, %v2224_v53  ;;  %v4946_v45 = vpop.eup %3177  ;;  %3189 = vpow2.f32 %v1789_v38  ;;  %2313 = vmatpush.msrb.mxu3 %v4941_v43  ;;  %2301 = vmatpush.msrb.mxu2 %v4935_v52  ;;  %v1541_v55 = vsub.f32 %v6368_v51, %v4692_v2  ;;  %v1777_v40 = vmul.f32 1.442695, %v1545_v0  ;;  %v6369_v5 = vld [vmem:[#allocation38_spill] sm:$0xff] }
 0x2f8   : > { %v4952_v26 = vpop.eup %3179  ;;  %3191 = vpow2.f32 %v1885_v32  ;;  %v1589_v30 = vsub.f32 %v6216_v10, %v4692_v2  ;;  %v1873_v4 = vmul.f32 1.442695, %v1593_v3  ;;  %v1539_v51 = vsub.f32 %v6369_v5, %v4692_v2 }
 0x2f9   : > { %v2226_v53 = vadd.f32 %v4759_v48, %v2225_v6  ;;  %v4957_v61 = vpop.eup %3181  ;;  %3193 = vpow2.f32 %v1785_v33  ;;  %2314 = vmatpush.msrb.mxu3 %v4952_v26  ;;  %2302 = vmatpush.msrb.mxu2 %v4946_v45  ;;  %v1773_v0 = vmul.f32 1.442695, %v1543_v29  ;;  %v1587_v10 = vsub.f32 %v6220_v24, %v4692_v2  ;;  %v6370_v48 = vld [vmem:[#allocation35_spill] sm:$0xff] }
 0x2fa   : > { %v4963_v38 = vpop.eup %3183  ;;  %3195 = vpow2.f32 %v1881_v57  ;;  %v1869_v3 = vmul.f32 1.442695, %v1591_v19  ;;  %v1537_v5 = vsub.f32 %v6370_v48, %v4692_v2  ;;  %v1769_v29 = vmul.f32 1.442695, %v1541_v55 }
 0x2fb   : > { %v2227_v6 = vadd.f32 %v4763_v59, %v2226_v53  ;;  %v4968_v32 = vpop.eup %3185  ;;  %3197 = vpow2.f32 %v1781_v9  ;;  %2315 = vmatpush.msrb.mxu3 %v4963_v38  ;;  %2303 = vmatpush.msrb.mxu2 %v4957_v61  ;;  %v1585_v24 = vsub.f32 %v6214_v14, %v4692_v2  ;;  %v1865_v19 = vmul.f32 1.442695, %v1589_v30  ;;  %v6375_v59 = vld [vmem:[#allocation106_spill] sm:$0xff] }
 0x2fc   : > { %v4974_v33 = vpop.eup %3187  ;;  %3199 = vpow2.f32 %v1877_v1  ;;  %v1765_v55 = vmul.f32 1.442695, %v1539_v51  ;;  %v1861_v30 = vmul.f32 1.442695, %v1587_v10  ;;  %v1761_v51 = vmul.f32 1.442695, %v1537_v5 }
 0x2fd   : > { %v2228_v53 = vadd.f32 %v4768_v62, %v2227_v6  ;;  %v4979_v57 = vpop.eup %3189  ;;  %3201 = vpow2.f32 %v1777_v40  ;;  %2316 = vmatpush.msrb.mxu3 %v4974_v33  ;;  %2304 = vmatpush.msrb.mxu2 %v4968_v32  ;;  %v1857_v10 = vmul.f32 1.442695, %v1585_v24  ;;  %v6377_v62 = vld [vmem:[#allocation103_spill] sm:$0xff] }
 0x2fe   : > { %v4985_v9 = vpop.eup %3191  ;;  %3203 = vpow2.f32 %v1873_v4 }
 0x2ff   : > { %v2229_v6 = vadd.f32 %v4772_v27, %v2228_v53  ;;  %6371 = vst [vmem:[#allocation67_spill] sm:$0xff] %v4985_v9  ;;  %v4990_v1 = vpop.eup %3193  ;;  %v6372_v27 = vld [vmem:[#allocation110_spill] sm:$0xff]  ;;  %3205 = vpow2.f32 %v1773_v0  ;;  %2317 = vmatpush.msrb.mxu3 %v4979_v57  ;;  %2329 = vmatpush.msra.mxu2 %v4985_v9  ;;  %v6379_v9 = vld [vmem:[#allocation100_spill] sm:$0xff] }
 0x300   : > { %v1583_v48 = vsub.f32 %v6372_v27, %v4692_v2  ;;  %v4996_v40 = vpop.eup %3195  ;;  %3207 = vpow2.f32 %v1869_v3  ;;  %v1581_v27 = vsub.f32 %v6375_v59, %v4692_v2  ;;  %v1579_v59 = vsub.f32 %v6377_v62, %v4692_v2 }
 0x301   : > { %v2230_v53 = vadd.f32 %v4777_v47, %v2229_v6  ;;  %6373 = vst [vmem:[#allocation8_spill] sm:$0xff] %v4996_v40  ;;  %v6374_v47 = vld [vmem:[#allocation24_spill] sm:$0xff]  ;;  %v5001_v4 = vpop.eup %3197  ;;  %3209 = vpow2.f32 %v1769_v29  ;;  %2318 = vmatpush.msrb.mxu3 %v4990_v1  ;;  %2330 = vmatpush.msra.mxu2 %v4996_v40  ;;  %v1577_v62 = vsub.f32 %v6379_v9, %v4692_v2  ;;  %v6381_v40 = vld [vmem:[#allocation97_spill] sm:$0xff] }
 0x302   : > { %v1631_v14 = vsub.f32 %v6374_v47, %v4692_v2  ;;  %v5007_v0 = vpop.eup %3199  ;;  %3211 = vpow2.f32 %v1865_v19  ;;  %v1853_v5 = vmul.f32 1.442695, %v1583_v48  ;;  %v1849_v48 = vmul.f32 1.442695, %v1581_v27 }
 0x303   : > { %v2231_v6 = vadd.f32 %v4781_v41, %v2230_v53  ;;  %v6376_v41 = vld [vmem:[#allocation21_spill] sm:$0xff]  ;;  %v5012_v3 = vpop.eup %3201  ;;  %3213 = vpow2.f32 %v1765_v55  ;;  %2319 = vmatpush.msrb.mxu3 %v5001_v4  ;;  %2331 = vmatpush.msra.mxu2 %v5007_v0  ;;  %v1575_v9 = vsub.f32 %v6381_v40, %v4692_v2 }
 0x304   : > { %v1629_v47 = vsub.f32 %v6376_v41, %v4692_v2  ;;  %v5018_v29 = vpop.eup %3203  ;;  %3215 = vpow2.f32 %v1861_v30  ;;  %v1949_v24 = vmul.f32 1.442695, %v1631_v14 }
 0x305   : > { %v2232_v53 = vadd.f32 %v4786_v23, %v2231_v6  ;;  %v6378_v23 = vld [vmem:[#allocation19_spill] sm:$0xff]  ;;  %v5023_v19 = vpop.eup %3205  ;;  %3217 = vpow2.f32 %v1761_v51  ;;  %2320 = vmatpush.msrb.mxu3 %v5012_v3  ;;  %2332 = vmatpush.msra.mxu2 %v5018_v29  ;;  %v1845_v51 = vmul.f32 1.442695, %v1579_v59  ;;  %v1841_v59 = vmul.f32 1.442695, %v1577_v62 }
 0x306   : > { %v1627_v41 = vsub.f32 %v6378_v23, %v4692_v2  ;;  %v5029_v55 = vpop.eup %3207  ;;  %3219 = vpow2.f32 %v1857_v10  ;;  %v1945_v14 = vmul.f32 1.442695, %v1629_v47  ;;  %v1837_v62 = vmul.f32 1.442695, %v1575_v9 }
 0x307   : > { %v2233_v6 = vadd.f32 %v4790_v49, %v2232_v53  ;;  %v6380_v49 = vld [vmem:[#allocation17_spill] sm:$0xff]  ;;  %v5034_v30 = vpop.eup %3209  ;;  %3221 = vpow2.f32 %v1853_v5  ;;  %2321 = vmatpush.msrb.mxu3 %v5023_v19  ;;  %2333 = vmatpush.msra.mxu2 %v5029_v55 }
 0x308   : > { %v1625_v23 = vsub.f32 %v6380_v49, %v4692_v2  ;;  %v5040_v27 = vpop.eup %3211  ;;  %v1623_v49 = vsub.f32 %v4508_v28, %v4692_v2  ;;  %v1941_v10 = vmul.f32 1.442695, %v1627_v41  ;;  %3223 = vpow2.f32 %v1949_v24 }
 0x309   : > { %v2234_v53 = vadd.f32 %v4795_v56, %v2233_v6  ;;  %v5045_v47 = vpop.eup %3213  ;;  %v6382_v56 = vld [vmem:[#allocation94_spill] sm:$0xff]  ;;  %3225 = vpow2.f32 %v1849_v48  ;;  %2322 = vmatpush.msrb.mxu3 %v5034_v30  ;;  %2334 = vmatpush.msra.mxu2 %v5040_v27  ;;  %v1621_v28 = vsub.f32 %v4486_v12, %v4692_v2  ;;  %v1619_v12 = vsub.f32 %v4470_v44, %v4692_v2 }
 0x30a   : > { %v1573_v40 = vsub.f32 %v6382_v56, %v4692_v2  ;;  %v5051_v5 = vpop.eup %3215  ;;  %v1937_v41 = vmul.f32 1.442695, %v1625_v23  ;;  %3227 = vpow2.f32 %v1945_v14  ;;  %v1933_v23 = vmul.f32 1.442695, %v1623_v49 }
 0x30b   : > { %v2235_v6 = vadd.f32 %v4799_v35, %v2234_v53  ;;  %v5056_v24 = vpop.eup %3217  ;;  %v6383_v35 = vld [vmem:[#allocation90_spill] sm:$0xff]  ;;  %3229 = vpow2.f32 %v1845_v51  ;;  %2323 = vmatpush.msrb.mxu3 %v5045_v47  ;;  %2335 = vmatpush.msra.mxu2 %v5051_v5  ;;  %v1617_v44 = vsub.f32 %v4453_v22, %v4692_v2  ;;  %v1929_v49 = vmul.f32 1.442695, %v1621_v28 }
 0x30c   : > { %v1571_v56 = vsub.f32 %v6383_v35, %v4692_v2  ;;  %v5062_v48 = vpop.eup %3219  ;;  %3231 = vpow2.f32 %v1941_v10  ;;  %v1833_v9 = vmul.f32 1.442695, %v1573_v40  ;;  %v1615_v28 = vsub.f32 %v4432_v63, %v4692_v2 }
 0x30d   : > { %v2236_v53 = vadd.f32 %v4804_v36, %v2235_v6  ;;  %v5067_v14 = vpop.eup %3221  ;;  %v6384_v36 = vld [vmem:[#allocation86_spill] sm:$0xff]  ;;  %3233 = vpow2.f32 %v1841_v59  ;;  %2324 = vmatpush.msrb.mxu3 %v5056_v24  ;;  %2336 = vmatpush.msra.mxu2 %v5062_v48  ;;  %v2081_v59 = vadd.f32 %v4968_v32, %v4957_v61  ;;  %v1613_v63 = vsub.f32 %v4411_v34, %v4692_v2 }
 0x30e   : > { %v1569_v35 = vsub.f32 %v6384_v36, %v4692_v2  ;;  %v5073_v51 = vpop.eup %3223  ;;  %3235 = vpow2.f32 %v1937_v41  ;;  %v1829_v40 = vmul.f32 1.442695, %v1571_v56  ;;  %v1925_v41 = vmul.f32 1.442695, %v1619_v12 }
 0x30f   : > { %v2237_v6 = vadd.f32 %v4808_v8, %v2236_v53  ;;  %v5078_v10 = vpop.eup %3225  ;;  %v6385_v8 = vld [vmem:[#allocation50_spill] sm:$0xff]  ;;  %3237 = vpow2.f32 %v1837_v62  ;;  %2349 = vmatpush.msra.mxu3 %v5073_v51  ;;  %2337 = vmatpush.msra.mxu2 %v5067_v14  ;;  %v2082_v61 = vadd.f32 %v4946_v45, %v2081_v59  ;;  %v1921_v12 = vmul.f32 1.442695, %v1617_v44 }
 0x310   : > { %v1636_v36 = vsub.f32 %v6385_v8, %v4493_v7  ;;  %3239 = vpow2.f32 %v1933_v23  ;;  %v6386_v8 = vld [vmem:[#allocation53_spill] sm:$0xff]  ;;  %v1825_v62 = vmul.f32 1.442695, %v1569_v35  ;;  %v1611_v34 = vsub.f32 %v4383_v46, %v4692_v2 }
 0x311   : > { %v2238_v53 = vadd.f32 %v4813_v15, %v2237_v6  ;;  %v5086_v6 = vpop.eup %3227  ;;  %v1638_v56 = vsub.f32 %v6386_v8, %v4493_v7  ;;  %3241 = vpow2.f32 %v1833_v9  ;;  %2338 = vmatpush.msra.mxu2 %v5078_v10  ;;  %v6387_v35 = vld [vmem:[#allocation69_spill] sm:$0xff]  ;;  %v2083_v45 = vadd.f32 %v4935_v52, %v2082_v61 }
 0x312   : > { %v5091_v15 = vpop.eup %3229  ;;  %2350 = vmatpush.msra.mxu3 %v5086_v6  ;;  %3243 = vpow2.f32 %v1929_v49  ;;  %v1640_v9 = vsub.f32 %v6387_v35, %v4493_v7  ;;  %v1959_v8 = vmul.f32 1.442695, %v1636_v36  ;;  %v1917_v44 = vmul.f32 1.442695, %v1615_v28  ;;  %v6388_v36 = vld [vmem:[#allocation72_spill] sm:$0xff] }
 0x313   : > { %v2239_v22 = vadd.f32 %v4822_v18, %v2238_v53  ;;  %v5098_v32 = vpop.eup %3231  ;;  %3245 = vpow2.f32 %v1829_v40  ;;  %2339 = vmatpush.msra.mxu2 %v5091_v15  ;;  %v1642_v40 = vsub.f32 %v6388_v36, %v4493_v7  ;;  %v1963_v35 = vmul.f32 1.442695, %v1638_v56  ;;  %v6389_v56 = vld [vmem:[#allocation76_spill] sm:$0xff] }
 0x314   : > { %v5103_v23 = vpop.eup %3233  ;;  %2351 = vmatpush.msra.mxu3 %v5098_v32  ;;  %3247 = vpow2.f32 %v1925_v41  ;;  %v2084_v52 = vadd.f32 %v4924_v16, %v2083_v45  ;;  %v1609_v46 = vsub.f32 %v4360_v60, %v4692_v2  ;;  %v1913_v28 = vmul.f32 1.442695, %v1613_v63  ;;  %v6391_v60 = vld [vmem:[#allocation156_spill] sm:$0xff] }
 0x315   : > { %v2240_v53 = vadd.f32 %v4832_v37, %v2239_v22  ;;  %v5110_v59 = vpop.eup %3235  ;;  %3249 = vpow2.f32 %v1825_v62  ;;  %2340 = vmatpush.msra.mxu2 %v5103_v23  ;;  %v1644_v62 = vsub.f32 %v6389_v56, %v4493_v7  ;;  %v1967_v16 = vmul.f32 1.442695, %v1640_v9 }
 0x316   : > { %v5115_v49 = vpop.eup %3237  ;;  %2352 = vmatpush.msra.mxu3 %v5110_v59  ;;  %3251 = vpow2.f32 %v1921_v12  ;;  %v2085_v45 = vadd.f32 %v4913_v50, %v2084_v52  ;;  %v1607_v63 = vsub.f32 %v6391_v60, %v4692_v2  ;;  %v1909_v12 = vmul.f32 1.442695, %v1611_v34 }
 0x317   : > { %v2241_v22 = vadd.f32 %v4842_v31, %v2240_v53  ;;  %v5122_v61 = vpop.eup %3239  ;;  %3253 = vpow2.f32 %v1959_v8  ;;  %2341 = vmatpush.msra.mxu2 %v5115_v49  ;;  %v1971_v8 = vmul.f32 1.442695, %v1642_v40  ;;  %v1905_v60 = vmul.f32 1.442695, %v1609_v46 }
 0x318   : > { %v5127_v41 = vpop.eup %3241  ;;  %2353 = vmatpush.msra.mxu3 %v5122_v61  ;;  %3255 = vpow2.f32 %v1917_v44  ;;  %v2086_v9 = vadd.f32 %v4902_v21, %v2085_v45  ;;  %v1975_v44 = vmul.f32 1.442695, %v1644_v62 }
 0x319   : > { %v2242_v53 = vadd.f32 %v4852_v11, %v2241_v22  ;;  %v5134_v36 = vpop.eup %3243  ;;  %v6390_v22 = vld [vmem:[#allocation73_spill] sm:$0xff]  ;;  %3257 = vpow2.f32 %v1963_v35  ;;  %2342 = vmatpush.msra.mxu2 %v5127_v41 }
 0x31a   : > { %v5139_v37 = vpop.eup %3245  ;;  %2354 = vmatpush.msra.mxu3 %v5134_v36  ;;  %3259 = vpow2.f32 %v1913_v28  ;;  %v2087_v40 = vadd.f32 %v4892_v39, %v2086_v9 }
 0x31b   : > { %v2243_v18 = vadd.f32 %v6390_v22, %v2242_v53  ;;  %v5144_v50 = vpop.eup %3247  ;;  %v6392_v53 = vld [vmem:[#allocation152_spill] sm:$0xff]  ;;  %3261 = vpow2.f32 %v1967_v16  ;;  %2343 = vmatpush.msra.mxu2 %v5139_v37 }
 0x31c   : > { %v1605_v56 = vsub.f32 %v6392_v53, %v4692_v2  ;;  %v5149_v34 = vpop.eup %3249  ;;  %2355 = vmatpush.msra.mxu3 %v5144_v50  ;;  %v1901_v53 = vmul.f32 1.442695, %v1607_v63  ;;  %3263 = vpow2.f32 %v1909_v12  ;;  %v2088_v28 = vadd.f32 %v4887_v42, %v2087_v40  ;;  %v6395_v16 = vld [vmem:[#allocation144_spill] sm:$0xff]  ;;  %v6397_v12 = vld [vmem:[#allocation70_spill] sm:$0xff] }
 0x31d   : > { %v2244_v52 = vadd.f32 %v4872_v13, %v2243_v18  ;;  %v5154_v21 = vpop.eup %3251  ;;  %v6393_v18 = vld [vmem:[#allocation148_spill] sm:$0xff]  ;;  %3265 = vpow2.f32 %v1971_v8  ;;  %2344 = vmatpush.msra.mxu2 %v5149_v34  ;;  %v1601_v9 = vsub.f32 %v6395_v16, %v4692_v2  ;;  %v6401_v16 = vld [vmem:[#allocation13_spill] sm:$0xff] }
 0x31e   : > { %v1603_v45 = vsub.f32 %v6393_v18, %v4692_v2  ;;  %v5159_v46 = vpop.eup %3253  ;;  %2356 = vmatpush.msra.mxu3 %v5154_v21  ;;  %3267 = vpow2.f32 %v1905_v60  ;;  %v2089_v8 = vadd.f32 %v6397_v12, %v2088_v28 }
 0x31f   : > { %v2245_v35 = vadd.f32 %v4882_v58, %v2244_v52  ;;  %6394 = vst [vmem:[#allocation65_spill] sm:$0xff] %v5159_v46  ;;  %v5164_v39 = vpop.eup %3255  ;;  %v1897_v52 = vmul.f32 1.442695, %v1605_v56  ;;  %3269 = vpow2.f32 %v1975_v44  ;;  %v1889_v44 = vmul.f32 1.442695, %v1601_v9 }
 0x320   : > { %v5169_v63 = vpop.eup %3257  ;;  %2357 = vmatpush.msra.mxu3 %v5164_v39  ;;  %v1893_v18 = vmul.f32 1.442695, %v1603_v45  ;;  %3271 = vpow2.f32 %v1901_v53 }
 0x321   : > { %v2246_v62 = vadd.f32 %v5159_v46, %v2245_v35  ;;  %6396 = vst [vmem:[#allocation6_spill] sm:$0xff] %v5169_v63  ;;  %v5173_v42 = vpop.eup %3259  ;;  %v6399_v35 = vld [vmem:[#allocation12_spill] sm:$0xff]  ;;  %3273 = vpow2.f32 %v1897_v52 }
 0x322   : > { %v5176_v58 = vpop.eup %3261  ;;  %v2090_v46 = vadd.f32 %v6399_v35, %v2089_v8  ;;  %2358 = vmatpush.msra.mxu3 %v5173_v42  ;;  %3275 = vpow2.f32 %v1893_v18  ;;  %v6403_v8 = vld [vmem:[#allocation78_spill] sm:$0xff] }
 0x323   : > { %v2247_v40 = vadd.f32 %v5169_v63, %v2246_v62  ;;  %6398 = vst [vmem:[#allocation62_spill] sm:$0xff] %v5176_v58  ;;  %v5180_v56 = vpop.eup %3263  ;;  %3277 = vpow2.f32 %v1889_v44 }
 0x324   : > { %v5183_v28 = vpop.eup %3265  ;;  %v2091_v12 = vadd.f32 %v6401_v16, %v2090_v46  ;;  %2359 = vmatpush.msra.mxu3 %v5180_v56  ;;  %v6404_v46 = vld [vmem:[#allocation14_spill] sm:$0xff] }
 0x325   : > { %v2248_v60 = vadd.f32 %v5176_v58, %v2247_v40  ;;  %6400 = vst [vmem:[#allocation5_spill] sm:$0xff] %v5183_v28  ;;  %v5187_v45 = vpop.eup %3267 }
 0x326   : > { %v5190_v62 = vpop.eup %3269  ;;  %v2092_v35 = vadd.f32 %v6403_v8, %v2091_v12  ;;  %2360 = vmatpush.msra.mxu3 %v5187_v45  ;;  %v6406_v12 = vld [vmem:[#allocation46_spill] sm:$0xff] }
 0x327   : > { %v2249_v53 = vadd.f32 %v5183_v28, %v2248_v60  ;;  %6402 = vst [vmem:[#allocation60_spill] sm:$0xff] %v5190_v62  ;;  %v5194_v40 = vpop.eup %3271  ;;  %v6405_v60 = vld [vmem:[#allocation15_spill] sm:$0xff] }
 0x328   : > { %v2093_v52 = vadd.f32 %v6404_v46, %v2092_v35  ;;  %2361 = vmatpush.msra.mxu3 %v5194_v40  ;;  %v5201_v16 = vpop.eup %3273 }
 0x329   : > { %v5197_v9 = vadd.f32 %v5190_v62, %v2249_v53  ;;  %v5205_v63 = vpop.eup %3275  ;;  %v6409_v62 = vld [vmem:[#allocation31_spill] sm:$0xff] }
 0x32a   : > { %v2094_v18 = vadd.f32 %v6405_v60, %v2093_v52  ;;  %2362 = vmatpush.msra.mxu3 %v5201_v16  ;;  %v5209_v58 = vpop.eup %3277 }
 0x32c   : > { %v2095_v8 = vadd.f32 %v6406_v12, %v2094_v18  ;;  %2363 = vmatpush.msra.mxu3 %v5205_v63  ;;  %v6407_v18 = vld [vmem:[#allocation135_spill] sm:$0xff] }
 0x32d   : > { %v1663_v12 = vsub.f32 %v6407_v18, %v4692_v2 }
 0x32e   : > { %v2096_v44 = vadd.f32 %v5056_v24, %v2095_v8  ;;  %2364 = vmatpush.msra.mxu3 %v5209_v58  ;;  %v6408_v24 = vld [vmem:[#allocation131_spill] sm:$0xff] }
 0x32f   : > { %v1661_v8 = vsub.f32 %v6408_v24, %v4692_v2  ;;  %v6414_v24 = vld [vmem:[#allocation122_spill] sm:$0xff] }
 0x330   : > { %v2097_v53 = vadd.f32 %v5045_v47, %v2096_v44  ;;  %v1695_v47 = vsub.f32 %v6409_v62, %v4692_v2  ;;  %v6413_v62 = vld [vmem:[#allocation119_spill] sm:$0xff] }
 0x332   : > { %v2098_v35 = vadd.f32 %v5034_v30, %v2097_v53  ;;  %v2013_v53 = vmul.f32 1.442695, %v1663_v12  ;;  %v1689_v12 = vsub.f32 %v6414_v24, %v4692_v2 }
 0x334   : > { %v2099_v46 = vadd.f32 %v5023_v19, %v2098_v35  ;;  %v6410_v19 = vld [vmem:[#allocation127_spill] sm:$0xff]  ;;  %3279 = vpow2.f32 %v2013_v53  ;;  %v2065_v24 = vmul.f32 1.442695, %v1689_v12 }
 0x335   : > { %v1659_v44 = vsub.f32 %v6410_v19, %v4692_v2  ;;  %v6419_v53 = vld [vmem:[#allocation111_spill] sm:$0xff] }
 0x336   : > { %v2100_v52 = vadd.f32 %v5012_v3, %v2099_v46  ;;  %v2009_v46 = vmul.f32 1.442695, %v1661_v8 }
 0x338   : > { %v2101_v60 = vadd.f32 %v5001_v4, %v2100_v52  ;;  %v6411_v4 = vld [vmem:[#allocation123_spill] sm:$0xff]  ;;  %3281 = vpow2.f32 %v2009_v46 }
 0x339   : > { %v1657_v35 = vsub.f32 %v6411_v4, %v4692_v2  ;;  %v6417_v4 = vld [vmem:[#allocation115_spill] sm:$0xff] }
 0x33a   : > { %v2102_v28 = vadd.f32 %v4990_v1, %v2101_v60  ;;  %v6412_v1 = vld [vmem:[#allocation130_spill] sm:$0xff]  ;;  %v2077_v60 = vmul.f32 1.442695, %v1695_v47  ;;  %v1653_v47 = vsub.f32 %v6417_v4, %v4692_v2 }
 0x33b   : > { %v1691_v52 = vsub.f32 %v6412_v1, %v4692_v2  ;;  %v2001_v1 = vmul.f32 1.442695, %v1657_v35  ;;  %v6420_v35 = vld [vmem:[#allocation159_spill] sm:$0xff] }
 0x33c   : > { %v2103_v30 = vadd.f32 %v4979_v57, %v2102_v28  ;;  %v1655_v57 = vsub.f32 %v6413_v62, %v4692_v2  ;;  %v2005_v28 = vmul.f32 1.442695, %v1659_v44  ;;  %3283 = vpow2.f32 %v2077_v60 }
 0x33d   : > { %v2069_v62 = vmul.f32 1.442695, %v1691_v52  ;;  %v1685_v46 = vsub.f32 %v6420_v35, %v4692_v2 }
 0x33e   : > { %v2104_v3 = vadd.f32 %v4974_v33, %v2103_v30  ;;  %v6415_v33 = vld [vmem:[#allocation126_spill] sm:$0xff]  ;;  %3285 = vpow2.f32 %v2005_v28 }
 0x33f   : > { %v6416_v30 = vsub.f32 %v6415_v33, %v4692_v2  ;;  %v1993_v33 = vmul.f32 1.442695, %v1653_v47 }
 0x340   : > { %v2105_v18 = vadd.f32 %v4963_v38, %v2104_v3  ;;  %v6418_v38 = vld [vmem:[#allocation114_spill] sm:$0xff] }
 0x341   : > { %v2073_v19 = vmul.f32 1.442695, %v6416_v30  ;;  %v1687_v3 = vsub.f32 %v6418_v38, %v4692_v2  ;;  %v5261_v30 = vld [vmem:[%s5251_s21] sm:$0xff] }
 0x342   : > { %v2106_v8 = vadd.f32 %v4952_v26, %v2105_v18  ;;  %v1651_v26 = vsub.f32 %v6419_v53, %v4692_v2  ;;  %v1997_v18 = vmul.f32 1.442695, %v1655_v57  ;;  %v6423_v57 = vld [vmem:[#allocation27_spill] sm:$0xff]  ;;  %2305 = vmatmul.f32.vlgmr.msrb.gmra.mxu2 %v5261_v30  ;;  %v2057_v53 = vmul.f32 1.442695, %v1685_v46  ;;  %v6429_v46 = vld [vmem:[#allocation104_spill] sm:$0xff] }
 0x343   : > { %3287 = vpow2.f32 %v2073_v19  ;;  %v1683_v28 = vsub.f32 %v6423_v57, %v4692_v2  ;;  %v2061_v4 = vmul.f32 1.442695, %v1687_v3  ;;  %v6426_v3 = vld [vmem:[#allocation120_spill] sm:$0xff] }
 0x344   : > { %v2107_v44 = vadd.f32 %v4941_v43, %v2106_v8  ;;  %v6421_v43 = vld [vmem:[#allocation107_spill] sm:$0xff]  ;;  %3289 = vpow2.f32 %v2001_v1  ;;  %v5263_v8 = vpop.eup %3279  ;;  %v1989_v47 = vmul.f32 1.442695, %v1651_v26  ;;  %v5274_v1 = vld [vmem:[%s5251_s21 + $0x8] sm:$0xff]  ;;  %v6427_v26 = vld [vmem:[#allocation88_spill] sm:$0xff] }
 0x345   : > { %v1649_v60 = vsub.f32 %v6421_v43, %v4692_v2  ;;  %6422 = vst [vmem:[#allocation58_spill] sm:$0xff] %v5263_v8  ;;  %3291 = vpow2.f32 %v2069_v62  ;;  %v5269_v19 = vpop.eup %3281  ;;  %2369 = vmatpush.msrb.mxu2 %v5263_v8  ;;  %v1681_v62 = vsub.f32 %v6426_v3, %v4692_v2  ;;  %2325 = vmatmul.f32.vlgmr.msrb.gmra.mxu3 %v5274_v1  ;;  %v2053_v57 = vmul.f32 1.442695, %v1683_v28  ;;  %v6442_v8 = vld [vmem:[#allocation28_spill] sm:$0xff] }
 0x346   : > { %v2108_v52 = vadd.f32 %v4930_v20, %v2107_v44  ;;  %v6424_v20 = vld [vmem:[#allocation92_spill] sm:$0xff]  ;;  %3293 = vpow2.f32 %v1997_v18  ;;  %v5277_v44 = vpop.eup %3283  ;;  %v1645_v18 = vsub.f32 %v6427_v26, %v4692_v2  ;;  %v6432_v26 = vld [vmem:[#allocation83_spill] sm:$0xff] }
 0x347   : > { %v1647_v38 = vsub.f32 %v6424_v20, %v4692_v2  ;;  %6425 = vst [vmem:[#allocation56_spill] sm:$0xff] %v5277_v44  ;;  %3295 = vpow2.f32 %v2065_v24  ;;  %v5283_v35 = vpop.eup %3285  ;;  %2389 = vmatpush.msrb.mxu3 %v5277_v44  ;;  %2370 = vmatpush.msrb.mxu2 %v5269_v19  ;;  %v1679_v24 = vsub.f32 %v6429_v46, %v4692_v2  ;;  %v6430_v20 = vld [vmem:[#allocation84_spill] sm:$0xff] }
 0x348   : > { %v2109_v12 = vadd.f32 %v4919_v54, %v2108_v52  ;;  %v1985_v52 = vmul.f32 1.442695, %v1649_v60  ;;  %3297 = vpow2.f32 %v1993_v33  ;;  %v1643_v3 = vsub.f32 %v6430_v20, %v4692_v2  ;;  %v6433_v46 = vld [vmem:[#allocation80_spill] sm:$0xff] }
 0x349   : > { %v5289_v43 = vpop.eup %3287  ;;  %3299 = vpow2.f32 %v2061_v4  ;;  %v1981_v60 = vmul.f32 1.442695, %v1647_v38  ;;  %2371 = vmatpush.msrb.mxu2 %v5283_v35  ;;  %v1677_v28 = vsub.f32 %v6432_v26, %v4692_v2  ;;  %v2049_v4 = vmul.f32 1.442695, %v1681_v62  ;;  %v6435_v62 = vld [vmem:[#allocation157_spill] sm:$0xff] }
 0x34a   : > { %v2110_v54 = vadd.f32 %v4908_v25, %v2109_v12  ;;  %6428 = vst [vmem:[#allocation51_spill] sm:$0xff] %v5289_v43  ;;  %v5294_v12 = vpop.eup %3289  ;;  %3301 = vpow2.f32 %v1989_v47  ;;  %2390 = vmatpush.msrb.mxu3 %v5289_v43  ;;  %v1641_v20 = vsub.f32 %v6433_v46, %v4692_v2  ;;  %v1977_v38 = vmul.f32 1.442695, %v1645_v18  ;;  %v5312_v47 = vld [vmem:[%s5251_s21 + $0x10] sm:$0xff]  ;;  %v5327_v43 = vld [vmem:[%s5251_s21 + $0x18] sm:$0xff] }
 0x34b   : > { %v5300_v33 = vpop.eup %3291  ;;  %3303 = vpow2.f32 %v2057_v53  ;;  %2372 = vmatpush.msrb.mxu2 %v5294_v12  ;;  %v1675_v53 = vsub.f32 %v6435_v62, %v4692_v2  ;;  %v1973_v46 = vmul.f32 1.442695, %v1643_v3  ;;  %v6439_v3 = vld [vmem:[#allocation54_spill] sm:$0xff] }
 0x34c   : > { %v2111_v25 = vadd.f32 %v4897_v17, %v2110_v54  ;;  %6431 = vst [vmem:[#allocation48_spill] sm:$0xff] %v5300_v33  ;;  %v5305_v54 = vpop.eup %3293  ;;  %3305 = vpow2.f32 %v1985_v52  ;;  %2391 = vmatpush.msrb.mxu3 %v5300_v33  ;;  %2345 = vmatmul.f32.vlgmr.msra.gmra.mxu2 %v5312_v47  ;;  %v6436_v52 = vld [vmem:[#allocation75_spill] sm:$0xff]  ;;  %v1969_v33 = vmul.f32 1.442695, %v1641_v20 }
 0x34d   : > { %v5314_v44 = vpop.eup %3295  ;;  %3307 = vpow2.f32 %v2053_v57  ;;  %v1639_v26 = vsub.f32 %v6436_v52, %v4692_v2  ;;  %2373 = vmatpush.msrb.mxu2 %v5305_v54  ;;  %v2041_v57 = vmul.f32 1.442695, %v1677_v28  ;;  %2365 = vmatmul.f32.vlgmr.msra.gmra.mxu3 %v5327_v43  ;;  %v6441_v28 = vld [vmem:[#allocation149_spill] sm:$0xff] }
 0x34e   : > { %v2112_v17 = vadd.f32 %v5149_v34, %v2111_v25  ;;  %6434 = vst [vmem:[#allocation45_spill] sm:$0xff] %v5314_v44  ;;  %v2045_v34 = vmul.f32 1.442695, %v1679_v24  ;;  %v5320_v18 = vpop.eup %3297  ;;  %3309 = vpow2.f32 %v1981_v60  ;;  %2392 = vmatpush.msrb.mxu3 %v5314_v44  ;;  %v6438_v24 = vld [vmem:[#allocation153_spill] sm:$0xff]  ;;  %v1637_v60 = vsub.f32 %v6439_v3, %v4692_v2 }
 0x34f   : > { %v5329_v62 = vpop.eup %3299  ;;  %3311 = vpow2.f32 %v2049_v4  ;;  %2374 = vmatpush.msrb.mxu2 %v5320_v18  ;;  %v1671_v4 = vsub.f32 %v6441_v28, %v4692_v2  ;;  %v1635_v3 = vsub.f32 %v6442_v8, %v4692_v2  ;;  %v1965_v20 = vmul.f32 1.442695, %v1639_v26 }
 0x350   : > { %v2113_v25 = vadd.f32 %v5139_v37, %v2112_v17  ;;  %6437 = vst [vmem:[#allocation42_spill] sm:$0xff] %v5329_v62  ;;  %v1673_v37 = vsub.f32 %v6438_v24, %v4692_v2  ;;  %v5335_v52 = vpop.eup %3301  ;;  %3313 = vpow2.f32 %v1977_v38  ;;  %2393 = vmatpush.msrb.mxu3 %v5329_v62  ;;  %v2037_v24 = vmul.f32 1.442695, %v1675_v53  ;;  %v6444_v62 = vld [vmem:[#allocation145_spill] sm:$0xff] }
 0x351   : > { %v5341_v44 = vpop.eup %3303  ;;  %3315 = vpow2.f32 %v2045_v34  ;;  %2375 = vmatpush.msrb.mxu2 %v5335_v52  ;;  %v1669_v28 = vsub.f32 %v6444_v62, %v4692_v2  ;;  %v1961_v26 = vmul.f32 1.442695, %v1637_v60  ;;  %v6447_v60 = vld [vmem:[#allocation138_spill] sm:$0xff] }
 0x352   : > { %v2114_v17 = vadd.f32 %v5127_v41, %v2113_v25  ;;  %6440 = vst [vmem:[#allocation38_spill] sm:$0xff] %v5341_v44  ;;  %v5346_v25 = vpop.eup %3305  ;;  %3317 = vpow2.f32 %v1973_v46  ;;  %2394 = vmatpush.msrb.mxu3 %v5341_v44  ;;  %v2033_v53 = vmul.f32 1.442695, %v1673_v37  ;;  %v6446_v44 = vld [vmem:[#allocation141_spill] sm:$0xff]  ;;  %v2029_v37 = vmul.f32 1.442695, %v1671_v4 }
 0x353   : > { %v5352_v38 = vpop.eup %3307  ;;  %3319 = vpow2.f32 %v2041_v57  ;;  %2376 = vmatpush.msrb.mxu2 %v5346_v25  ;;  %v1667_v62 = vsub.f32 %v6446_v44, %v4692_v2 }
 0x354   : > { %v2115_v41 = vadd.f32 %v5115_v49, %v2114_v17  ;;  %6443 = vst [vmem:[#allocation35_spill] sm:$0xff] %v5352_v38  ;;  %v5357_v34 = vpop.eup %3309  ;;  %v6445_v17 = vld [vmem:[#allocation26_spill] sm:$0xff]  ;;  %3321 = vpow2.f32 %v1969_v33  ;;  %2395 = vmatpush.msrb.mxu3 %v5352_v38  ;;  %v2025_v38 = vmul.f32 1.442695, %v1669_v28 }
 0x355   : > { %v1633_v8 = vsub.f32 %v6445_v17, %v4692_v2  ;;  %v5363_v46 = vpop.eup %3311  ;;  %3323 = vpow2.f32 %v2037_v24  ;;  %2377 = vmatpush.msrb.mxu2 %v5357_v34  ;;  %v1665_v17 = vsub.f32 %v6447_v60, %v4692_v2 }
 0x356   : > { %v2116_v49 = vadd.f32 %v5103_v23, %v2115_v41  ;;  %v5368_v57 = vpop.eup %3313  ;;  %v1957_v41 = vmul.f32 1.442695, %v1635_v3  ;;  %3325 = vpow2.f32 %v1965_v20  ;;  %2396 = vmatpush.msrb.mxu3 %v5363_v46  ;;  %v2021_v3 = vmul.f32 1.442695, %v1667_v62 }
 0x357   : > { %v5372_v33 = vpop.eup %3315  ;;  %3327 = vpow2.f32 %v2033_v53  ;;  %2378 = vmatpush.msrb.mxu2 %v5368_v57 }
 0x358   : > { %v2117_v23 = vadd.f32 %v5091_v15, %v2116_v49  ;;  %v5377_v4 = vpop.eup %3317  ;;  %v1953_v15 = vmul.f32 1.442695, %v1633_v8  ;;  %3329 = vpow2.f32 %v1961_v26  ;;  %2397 = vmatpush.msrb.mxu3 %v5372_v33 }
 0x359   : > { %v5381_v24 = vpop.eup %3319  ;;  %3331 = vpow2.f32 %v2029_v37  ;;  %2379 = vmatpush.msrb.mxu2 %v5377_v4 }
 0x35a   : > { %v2118_v44 = vadd.f32 %v5078_v10, %v2117_v23  ;;  %v5384_v49 = vpop.eup %3321  ;;  %3333 = vpow2.f32 %v1957_v41  ;;  %2398 = vmatpush.msrb.mxu3 %v5381_v24  ;;  %v2017_v10 = vmul.f32 1.442695, %v1665_v17  ;;  %v6448_v17 = vld [vmem:[#allocation55_spill] sm:$0xff] }
 0x35b   : > { %v5388_v2 = vpop.eup %3323  ;;  %3335 = vpow2.f32 %v2025_v38  ;;  %2380 = vmatpush.msrb.mxu2 %v5384_v49 }
 0x35c   : > { %v2119_v20 = vadd.f32 %v5067_v14, %v2118_v44  ;;  %v5391_v53 = vpop.eup %3325  ;;  %3337 = vpow2.f32 %v1953_v15  ;;  %2399 = vmatpush.msrb.mxu3 %v5388_v2  ;;  %v6449_v44 = vld [vmem:[#allocation8_spill] sm:$0xff] }
 0x35d   : > { %v5395_v14 = vpop.eup %3327  ;;  %3339 = vpow2.f32 %v2021_v3  ;;  %2381 = vmatpush.msrb.mxu2 %v5391_v53  ;;  %v6450_v3 = vld [vmem:[#allocation160_spill] sm:$0xff] }
 0x35e   : > { %v2120_v28 = vadd.f32 %v5062_v48, %v2119_v20  ;;  %v5398_v26 = vpop.eup %3329  ;;  %2400 = vmatpush.msrb.mxu3 %v5395_v14  ;;  %3341 = vpow2.f32 %v2017_v10  ;;  %v6451_v20 = vld [vmem:[#allocation52_spill] sm:$0xff] }
 0x35f   : > { %v5402_v38 = vpop.eup %3331  ;;  %2382 = vmatpush.msrb.mxu2 %v5398_v26 }
 0x360   : > { %v2121_v8 = vadd.f32 %v5051_v5, %v2120_v28  ;;  %v5405_v62 = vpop.eup %3333  ;;  %2401 = vmatpush.msrb.mxu3 %v5402_v38  ;;  %v5431_v28 = vld [vmem:[%s5251_s21 + $0x20] sm:$0xff] }
 0x361   : > { %v5409_v37 = vpop.eup %3335  ;;  %2383 = vmatpush.msrb.mxu2 %v5405_v62 }
 0x362   : > { %v2122_v48 = vadd.f32 %v5040_v27, %v2121_v8  ;;  %v5412_v23 = vpop.eup %3337  ;;  %2402 = vmatpush.msrb.mxu3 %v5409_v37  ;;  %v6453_v8 = vld [vmem:[#allocation108_spill] sm:$0xff] }
 0x363   : > { %v5416_v41 = vpop.eup %3339  ;;  %2384 = vmatpush.msrb.mxu2 %v5412_v23 }
 0x364   : > { %v2123_v5 = vadd.f32 %v5029_v55, %v2122_v48  ;;  %2403 = vmatpush.msrb.mxu3 %v5416_v41  ;;  %v5421_v60 = vpop.eup %3341  ;;  %v6454_v48 = vld [vmem:[#allocation49_spill] sm:$0xff]  ;;  %2385 = vmatmul.f32.vlgmr.msrb.gmra.mxu2 %v5431_v28 }
 0x365   : > { %2409 = vmatpush.msra.mxu2 %v6448_v17 }
 0x366   : > { %v2124_v27 = vadd.f32 %v5018_v29, %v2123_v5  ;;  %2404 = vmatpush.msrb.mxu3 %v5421_v60  ;;  %v6452_v29 = vld [vmem:[#allocation67_spill] sm:$0xff]  ;;  %v5438_v5 = vld [vmem:[%s5251_s21 + $0x28] sm:$0xff] }
 0x367   : > { %2410 = vmatpush.msra.mxu2 %v6451_v20  ;;  %2405 = vmatmul.f32.vlgmr.msrb.gmra.mxu3 %v5438_v5  ;;  %v6459_v20 = vld [vmem:[#allocation87_spill] sm:$0xff] }
 0x368   : > { %v2125_v55 = vadd.f32 %v5007_v0, %v2124_v27  ;;  %2429 = vmatpush.msra.mxu3 %v6450_v3  ;;  %v6455_v27 = vld [vmem:[#allocation101_spill] sm:$0xff] }
 0x369   : > { %2411 = vmatpush.msra.mxu2 %v6454_v48 }
 0x36a   : > { %v2126_v15 = vadd.f32 %v6449_v44, %v2125_v55  ;;  %2430 = vmatpush.msra.mxu3 %v6453_v8  ;;  %v6456_v55 = vld [vmem:[#allocation47_spill] sm:$0xff] }
 0x36b   : > { %2412 = vmatpush.msra.mxu2 %v6456_v55  ;;  %v6457_v44 = vld [vmem:[#allocation95_spill] sm:$0xff]  ;;  %v6465_v55 = vld [vmem:[#allocation74_spill] sm:$0xff] }
 0x36c   : > { %v2127_v10 = vadd.f32 %v6452_v29, %v2126_v15  ;;  %2431 = vmatpush.msra.mxu3 %v6455_v27  ;;  %v6458_v15 = vld [vmem:[#allocation44_spill] sm:$0xff]  ;;  %v6460_v29 = vld [vmem:[#allocation41_spill] sm:$0xff]  ;;  %v6462_v8 = vld [vmem:[#allocation39_spill] sm:$0xff] }
 0x36d   : > { %2413 = vmatpush.msra.mxu2 %v6458_v15  ;;  %v6463_v27 = vld [vmem:[#allocation77_spill] sm:$0xff] }
 0x36e   : > { %v2128_v0 = vadd.f32 %v5209_v58, %v2127_v10  ;;  %2432 = vmatpush.msra.mxu3 %v6457_v44  ;;  %v6461_v10 = vld [vmem:[#allocation79_spill] sm:$0xff] }
 0x36f   : > { %2414 = vmatpush.msra.mxu2 %v6460_v29  ;;  %v6467_v44 = vld [vmem:[#allocation71_spill] sm:$0xff]  ;;  %v6471_v29 = vld [vmem:[#allocation66_spill] sm:$0xff] }
 0x370   : > { %v2129_v17 = vadd.f32 %v5205_v63, %v2128_v0  ;;  %2433 = vmatpush.msra.mxu3 %v6459_v20  ;;  %v6464_v63 = vld [vmem:[#allocation36_spill] sm:$0xff] }
 0x371   : > { %2415 = vmatpush.msra.mxu2 %v6462_v8 }
 0x372   : > { %v2130_v3 = vadd.f32 %v5201_v16, %v2129_v17  ;;  %2434 = vmatpush.msra.mxu3 %v6461_v10  ;;  %v6466_v16 = vld [vmem:[#allocation34_spill] sm:$0xff]  ;;  %v6473_v10 = vld [vmem:[#allocation64_spill] sm:$0xff] }
 0x373   : > { %2416 = vmatpush.msra.mxu2 %v6464_v63  ;;  %v6477_v63 = vld [vmem:[#allocation61_spill] sm:$0xff] }
 0x374   : > { %v2131_v58 = vadd.f32 %v5194_v40, %v2130_v3  ;;  %2435 = vmatpush.msra.mxu3 %v6463_v27  ;;  %v6468_v40 = vld [vmem:[#allocation16_spill] sm:$0xff] }
 0x375   : > { %2417 = vmatpush.msra.mxu2 %v6466_v16  ;;  %v6469_v3 = vld [vmem:[#allocation68_spill] sm:$0xff]  ;;  %v6481_v16 = vld [vmem:[#allocation166_spill] sm:$0xff] }
 0x376   : > { %v2132_v48 = vadd.f32 %v5187_v45, %v2131_v58  ;;  %2436 = vmatpush.msra.mxu3 %v6465_v55  ;;  %v6470_v45 = vld [vmem:[#allocation11_spill] sm:$0xff] }
 0x377   : > { %2418 = vmatpush.msra.mxu2 %v6468_v40  ;;  %v6479_v55 = vld [vmem:[#allocation59_spill] sm:$0xff] }
 0x378   : > { %v2133_v0 = vadd.f32 %v5180_v56, %v2132_v48  ;;  %2437 = vmatpush.msra.mxu3 %v6467_v44  ;;  %v6472_v56 = vld [vmem:[#allocation9_spill] sm:$0xff]  ;;  %v6475_v48 = vld [vmem:[#allocation63_spill] sm:$0xff] }
 0x379   : > { %2419 = vmatpush.msra.mxu2 %v6470_v45 }
 0x37a   : > { %v2134_v17 = vadd.f32 %v5173_v42, %v2133_v0  ;;  %2438 = vmatpush.msra.mxu3 %v6469_v3  ;;  %v6474_v42 = vld [vmem:[#allocation7_spill] sm:$0xff]  ;;  %v6489_v3 = vld [vmem:[#allocation18_spill] sm:$0xff] }
 0x37b   : > { %2420 = vmatpush.msra.mxu2 %v6472_v56 }
 0x37c   : > { %v2135_v15 = vadd.f32 %v5164_v39, %v2134_v17  ;;  %2439 = vmatpush.msra.mxu3 %v6471_v29  ;;  %v6476_v39 = vld [vmem:[#allocation134_spill] sm:$0xff]  ;;  %v6482_v17 = vld [vmem:[#allocation57_spill] sm:$0xff] }
 0x37d   : > { %2421 = vmatpush.msra.mxu2 %v6474_v42  ;;  %v6497_v42 = vld [vmem:[#allocation142_spill] sm:$0xff] }
 0x37e   : > { %v2136_v20 = vadd.f32 %v5154_v21, %v2135_v15  ;;  %2440 = vmatpush.msra.mxu3 %v6473_v10  ;;  %v6478_v21 = vld [vmem:[#allocation137_spill] sm:$0xff]  ;;  %v6487_v15 = vld [vmem:[#allocation82_spill] sm:$0xff]  ;;  %v6496_v10 = vld [vmem:[#allocation43_spill] sm:$0xff] }
 0x37f   : > { %2422 = vmatpush.msra.mxu2 %v6476_v39  ;;  %v6499_v39 = vld [vmem:[#allocation32_spill] sm:$0xff] }
 0x380   : > { %v2137_v58 = vadd.f32 %v5144_v50, %v2136_v20  ;;  %2441 = vmatpush.msra.mxu3 %v6475_v48  ;;  %v6480_v50 = vld [vmem:[#allocation118_spill] sm:$0xff] }
 0x381   : > { %2423 = vmatpush.msra.mxu2 %v6478_v21  ;;  %v6493_v20 = vld [vmem:[#allocation146_spill] sm:$0xff] }
 0x382   : > { %v2138_v8 = vadd.f32 %v5134_v36, %v2137_v58  ;;  %2442 = vmatpush.msra.mxu3 %v6477_v63  ;;  %v6500_v21 = vld [vmem:[#allocation22_spill] sm:$0xff] }
 0x383   : > { %2424 = vmatpush.msra.mxu2 %v6480_v50 }
 0x384   : > { %v2139_v27 = vadd.f32 %v5122_v61, %v2138_v8  ;;  %2443 = vmatpush.msra.mxu3 %v6479_v55  ;;  %2425 = vmatmul.f32.vlgmr.msra.gmra.mxu2 %v5261_v30  ;;  %v6483_v61 = vld [vmem:[#allocation165_spill] sm:$0xff] }
 0x385   : > { %2449 = vmatpush.msrb.mxu2 %v6481_v16 }
 0x386   : > { %v2140_v0 = vadd.f32 %v5110_v59, %v2139_v27  ;;  %2444 = vmatpush.msra.mxu3 %v6482_v17  ;;  %v6484_v59 = vld [vmem:[#allocation164_spill] sm:$0xff]  ;;  %v1696_v27 = vsub.f32 %v6499_v39, %v4493_v7 }
 0x387   : > { %2450 = vmatpush.msrb.mxu2 %v6483_v61  ;;  %2445 = vmatmul.f32.vlgmr.msra.gmra.mxu3 %v5274_v1  ;;  %v6488_v1 = vld [vmem:[#allocation154_spill] sm:$0xff] }
 0x388   : > { %v2141_v36 = vadd.f32 %v5098_v32, %v2140_v0  ;;  %2469 = vmatpush.msrb.mxu3 %v4872_v13  ;;  %v6485_v32 = vld [vmem:[#allocation91_spill] sm:$0xff] }
 0x389   : > { %2451 = vmatpush.msrb.mxu2 %v6484_v59  ;;  %v6486_v13 = vld [vmem:[#allocation163_spill] sm:$0xff]  ;;  %v6506_v59 = vld [vmem:[#allocation102_spill] sm:$0xff] }
 0x38a   : > { %v2142_v44 = vadd.f32 %v5086_v6, %v2141_v36  ;;  %2470 = vmatpush.msrb.mxu3 %v6390_v22  ;;  %v6501_v0 = vld [vmem:[#allocation139_spill] sm:$0xff]  ;;  %v6503_v36 = vld [vmem:[#allocation29_spill] sm:$0xff] }
 0x38b   : > { %2452 = vmatpush.msrb.mxu2 %v6485_v32  ;;  %v1694_v17 = vsub.f32 %v6503_v36, %v4493_v7 }
 0x38c   : > { %v2143_v40 = vadd.f32 %v5073_v51, %v2142_v44  ;;  %2471 = vmatpush.msrb.mxu3 %v4852_v11  ;;  %v6490_v51 = vld [vmem:[#allocation150_spill] sm:$0xff]  ;;  %v6504_v44 = vld [vmem:[#allocation40_spill] sm:$0xff] }
 0x38d   : > { %2453 = vmatpush.msrb.mxu2 %v6486_v13 }
 0x38e   : > { %v2144_v30 = vadd.f32 %v5412_v23, %v2143_v40  ;;  %2472 = vmatpush.msrb.mxu3 %v4842_v31  ;;  %v6491_v23 = vld [vmem:[#allocation81_spill] sm:$0xff]  ;;  %v6492_v31 = vld [vmem:[#allocation20_spill] sm:$0xff]  ;;  %v1658_v40 = vsub.f32 %v6506_v59, %v4493_v7 }
 0x38f   : > { %2454 = vmatpush.msrb.mxu2 %v6488_v1  ;;  %v1646_v45 = vsub.f32 %v6491_v23, %v4493_v7  ;;  %v6510_v1 = vld [vmem:[#allocation99_spill] sm:$0xff]  ;;  %v2075_v23 = vmul.f32 1.442695, %v1694_v17 }
 0x390   : > { %v2145_v6 = vadd.f32 %v5405_v62, %v2144_v30  ;;  %2473 = vmatpush.msrb.mxu3 %v6487_v15  ;;  %v6494_v62 = vld [vmem:[#allocation85_spill] sm:$0xff]  ;;  %v6507_v30 = vld [vmem:[#allocation112_spill] sm:$0xff]  ;;  %v6508_v15 = vld [vmem:[#allocation23_spill] sm:$0xff] }
 0x391   : > { %2455 = vmatpush.msrb.mxu2 %v6490_v51  ;;  %v1648_v29 = vsub.f32 %v6494_v62, %v4493_v7  ;;  %v1979_v63 = vmul.f32 1.442695, %v1646_v45  ;;  %v1692_v13 = vsub.f32 %v6507_v30, %v4493_v7  ;;  %v6511_v51 = vld [vmem:[#allocation98_spill] sm:$0xff]  ;;  %v6512_v45 = vld [vmem:[#allocation37_spill] sm:$0xff] }
 0x392   : > { %v2146_v22 = vadd.f32 %v5398_v26, %v2145_v6  ;;  %2474 = vmatpush.msrb.mxu3 %v6489_v3  ;;  %v6495_v26 = vld [vmem:[#allocation113_spill] sm:$0xff]  ;;  %v2079_v6 = vmul.f32 1.442695, %v1696_v27 }
 0x393   : > { %2456 = vmatpush.msrb.mxu2 %v6493_v20  ;;  %v1664_v58 = vsub.f32 %v6495_v26, %v4493_v7  ;;  %v1983_v50 = vmul.f32 1.442695, %v1648_v29  ;;  %3343 = vpow2.f32 %v1979_v63  ;;  %v6514_v20 = vld [vmem:[#allocation96_spill] sm:$0xff]  ;;  %v2003_v29 = vmul.f32 1.442695, %v1658_v40  ;;  %v6515_v26 = vld [vmem:[#allocation158_spill] sm:$0xff] }
 0x394   : > { %v2147_v11 = vadd.f32 %v5391_v53, %v2146_v22  ;;  %2475 = vmatpush.msrb.mxu3 %v6492_v31  ;;  %v6498_v53 = vld [vmem:[#allocation109_spill] sm:$0xff]  ;;  %v1656_v22 = vsub.f32 %v6510_v1, %v4493_v7  ;;  %v6513_v31 = vld [vmem:[#allocation128_spill] sm:$0xff]  ;;  %v1654_v62 = vsub.f32 %v6514_v20, %v4493_v7  ;;  %v6519_v63 = vld [vmem:[#allocation155_spill] sm:$0xff] }
 0x395   : > { %2457 = vmatpush.msrb.mxu2 %v6497_v42  ;;  %v1662_v8 = vsub.f32 %v6498_v53, %v4493_v7  ;;  %v2015_v61 = vmul.f32 1.442695, %v1664_v58  ;;  %3345 = vpow2.f32 %v1983_v50  ;;  %v1688_v58 = vsub.f32 %v6515_v26, %v4493_v7  ;;  %v6516_v42 = vld [vmem:[#allocation25_spill] sm:$0xff]  ;;  %v6517_v53 = vld [vmem:[#allocation124_spill] sm:$0xff]  ;;  %v6524_v40 = vld [vmem:[#allocation167_spill] sm:$0xff] }
 0x396   : > { %v2148_v56 = vadd.f32 %v5384_v49, %v2147_v11  ;;  %2476 = vmatpush.msrb.mxu3 %v6496_v10  ;;  %v6502_v49 = vld [vmem:[#allocation105_spill] sm:$0xff]  ;;  %v1690_v11 = vsub.f32 %v6511_v51, %v4493_v7  ;;  %v2071_v10 = vmul.f32 1.442695, %v1692_v13  ;;  %v1999_v39 = vmul.f32 1.442695, %v1656_v22  ;;  %v6527_v1 = vld [vmem:[#allocation30_spill] sm:$0xff] }
 0x397   : > { %2458 = vmatpush.msrb.mxu2 %v6501_v0  ;;  %v1660_v55 = vsub.f32 %v6502_v49, %v4493_v7  ;;  %v2011_v32 = vmul.f32 1.442695, %v1662_v8  ;;  %3347 = vpow2.f32 %v2015_v61  ;;  %v6518_v8 = vld [vmem:[#allocation93_spill] sm:$0xff]  ;;  %v1995_v36 = vmul.f32 1.442695, %v1654_v62  ;;  %v6529_v20 = vld [vmem:[#allocation140_spill] sm:$0xff] }
 0x398   : > { %v2149_v48 = vadd.f32 %v5377_v4, %v2148_v56  ;;  %2477 = vmatpush.msrb.mxu3 %v6500_v21  ;;  %v6505_v4 = vld [vmem:[#allocation162_spill] sm:$0xff]  ;;  %v1686_v21 = vsub.f32 %v6519_v63, %v4493_v7  ;;  %v6520_v0 = vld [vmem:[#allocation33_spill] sm:$0xff]  ;;  %v2063_v59 = vmul.f32 1.442695, %v1688_v58  ;;  %v1678_v62 = vsub.f32 %v6529_v20, %v4493_v7  ;;  %v6530_v58 = vld [vmem:[#allocation136_spill] sm:$0xff] }
 0x399   : > { %2459 = vmatpush.msrb.mxu2 %v6505_v4  ;;  %v2007_v3 = vmul.f32 1.442695, %v1660_v55  ;;  %3349 = vpow2.f32 %v2011_v32  ;;  %v5548_v27 = vpop.eup %3343  ;;  %v6521_v49 = vld [vmem:[#allocation161_spill] sm:$0xff]  ;;  %v6525_v32 = vld [vmem:[#allocation116_spill] sm:$0xff] }
 0x39a   : > { %v2150_v16 = vadd.f32 %v5368_v57, %v2149_v48  ;;  %2478 = vmatpush.msrb.mxu3 %v6504_v44  ;;  %v6509_v57 = vld [vmem:[#allocation132_spill] sm:$0xff]  ;;  %3351 = vpow2.f32 %v2079_v6  ;;  %v1652_v48 = vsub.f32 %v6518_v8, %v4493_v7  ;;  %v6522_v50 = vld [vmem:[#allocation89_spill] sm:$0xff]  ;;  %v6523_v44 = vld [vmem:[#allocation151_spill] sm:$0xff] }
 0x39b   : > { %2460 = vmatpush.msrb.mxu2 %v6509_v57  ;;  %3353 = vpow2.f32 %v2007_v3  ;;  %v5554_v55 = vpop.eup %3345  ;;  %v1684_v4 = vsub.f32 %v6523_v44, %v4493_v7  ;;  %v2059_v57 = vmul.f32 1.442695, %v1686_v21  ;;  %v2251_v21 = vadd.f32 %v5548_v27, %v5197_v9  ;;  %v6533_v9 = vld [vmem:[#allocation125_spill] sm:$0xff] }
 0x39c   : > { %2479 = vmatpush.msrb.mxu3 %v6508_v15  ;;  %v2151_v56 = vadd.f32 %v5357_v34, %v2150_v16  ;;  %v2067_v34 = vmul.f32 1.442695, %v1690_v11  ;;  %3355 = vpow2.f32 %v2075_v23  ;;  %v1650_v16 = vsub.f32 %v6522_v50, %v4493_v7  ;;  %v6528_v23 = vld [vmem:[#allocation143_spill] sm:$0xff] }
 0x39d   : > { %2461 = vmatpush.msrb.mxu2 %v6513_v31  ;;  %3357 = vpow2.f32 %v2003_v29  ;;  %v5559_v61 = vpop.eup %3347  ;;  %v1991_v13 = vmul.f32 1.442695, %v1652_v48  ;;  %v2055_v31 = vmul.f32 1.442695, %v1684_v4  ;;  %v1670_v44 = vsub.f32 %v6533_v9, %v4493_v7 }
 0x39e   : > { %2480 = vmatpush.msrb.mxu3 %v6512_v45  ;;  %v2152_v17 = vadd.f32 %v5346_v25, %v2151_v56  ;;  %3359 = vpow2.f32 %v2071_v10  ;;  %v6526_v25 = vld [vmem:[#allocation147_spill] sm:$0xff]  ;;  %v1987_v3 = vmul.f32 1.442695, %v1650_v16  ;;  %v1680_v45 = vsub.f32 %v6528_v23, %v4493_v7 }
 0x39f   : > { %2462 = vmatpush.msrb.mxu2 %v6517_v53  ;;  %v5565_v30 = vpop.eup %3349  ;;  %3361 = vpow2.f32 %v1999_v39  ;;  %v1682_v15 = vsub.f32 %v6526_v25, %v4493_v7  ;;  %v1676_v10 = vsub.f32 %v6530_v58, %v4493_v7  ;;  %v2043_v39 = vmul.f32 1.442695, %v1678_v62 }
 0x3a0   : > { %2481 = vmatpush.msrb.mxu3 %v6516_v42  ;;  %v5568_v6 = vpop.eup %3351  ;;  %3363 = vpow2.f32 %v2067_v34  ;;  %v2153_v51 = vadd.f32 %v5335_v52, %v2152_v17  ;;  %v2047_v42 = vmul.f32 1.442695, %v1680_v45  ;;  %v2252_v4 = vadd.f32 %v5554_v55, %v2251_v21 }
 0x3a1   : > { %2463 = vmatpush.msrb.mxu2 %v6521_v49  ;;  %v5574_v22 = vpop.eup %3353  ;;  %3365 = vpow2.f32 %v1995_v36  ;;  %v2051_v29 = vmul.f32 1.442695, %v1682_v15  ;;  %v6532_v49 = vld [vmem:[#allocation129_spill] sm:$0xff]  ;;  %v2039_v16 = vmul.f32 1.442695, %v1676_v10  ;;  %v6539_v10 = vld [vmem:[#allocation58_spill] sm:$0xff] }
 0x3a2   : > { %2482 = vmatpush.msrb.mxu3 %v6520_v0  ;;  %v5579_v11 = vpop.eup %3355  ;;  %3367 = vpow2.f32 %v2063_v59  ;;  %v2154_v26 = vadd.f32 %v5320_v18, %v2153_v51  ;;  %v6531_v18 = vld [vmem:[#allocation133_spill] sm:$0xff]  ;;  %v1672_v50 = vsub.f32 %v6532_v49, %v4493_v7 }
 0x3a3   : > { %2464 = vmatpush.msrb.mxu2 %v6525_v32  ;;  %3369 = vpow2.f32 %v1991_v13  ;;  %v1674_v48 = vsub.f32 %v6531_v18, %v4493_v7  ;;  %v6534_v32 = vld [vmem:[#allocation121_spill] sm:$0xff]  ;;  %v6540_v18 = vld [vmem:[#allocation6_spill] sm:$0xff] }
 0x3a4   : > { %2483 = vmatpush.msrb.mxu3 %v6524_v40  ;;  %2465 = vmatmul.f32.vlgmr.msrb.gmra.mxu2 %v5312_v47  ;;  %v5584_v47 = vpop.eup %3357  ;;  %3371 = vpow2.f32 %v2059_v57  ;;  %v2155_v34 = vadd.f32 %v5305_v54, %v2154_v26  ;;  %v1668_v13 = vsub.f32 %v6534_v32, %v4493_v7  ;;  %v2031_v25 = vmul.f32 1.442695, %v1672_v50  ;;  %v6535_v57 = vld [vmem:[#allocation117_spill] sm:$0xff]  ;;  %v6538_v26 = vld [vmem:[#allocation62_spill] sm:$0xff] }
 0x3a5   : > { %2489 = vmatpush.msra.mxu2 %v5559_v61  ;;  %v5588_v52 = vpop.eup %3359  ;;  %3373 = vpow2.f32 %v1987_v3  ;;  %v2035_v54 = vmul.f32 1.442695, %v1674_v48 }
 0x3a6   : > { %2484 = vmatpush.msrb.mxu3 %v6527_v1  ;;  %v5592_v56 = vpop.eup %3361  ;;  %3375 = vpow2.f32 %v2055_v31  ;;  %v2156_v59 = vadd.f32 %v5294_v12, %v2155_v34  ;;  %v1666_v1 = vsub.f32 %v6535_v57, %v4493_v7  ;;  %v2027_v12 = vmul.f32 1.442695, %v1670_v44  ;;  %v6536_v31 = vld [vmem:[#allocation60_spill] sm:$0xff]  ;;  %v6542_v34 = vld [vmem:[#allocation10_spill] sm:$0xff] }
 0x3a7   : > { %2490 = vmatpush.msra.mxu2 %v5565_v30  ;;  %2485 = vmatmul.f32.vlgmr.msrb.gmra.mxu3 %v5327_v43  ;;  %v5597_v43 = vpop.eup %3363  ;;  %3377 = vpow2.f32 %v2051_v29  ;;  %v2023_v45 = vmul.f32 1.442695, %v1668_v13  ;;  %v6537_v29 = vld [vmem:[#allocation5_spill] sm:$0xff]  ;;  %v6544_v13 = vld [vmem:[#allocation38_spill] sm:$0xff] }
 0x3a8   : > { %2509 = vmatpush.msra.mxu3 %v5568_v6  ;;  %v3366_v53 = vpop.eup %3365  ;;  %3379 = vpow2.f32 %v2047_v42  ;;  %v2157_v51 = vadd.f32 %v5283_v35, %v2156_v59  ;;  %v2019_v20 = vmul.f32 1.442695, %v1666_v1  ;;  %v6546_v1 = vld [vmem:[#allocation45_spill] sm:$0xff] }
 0x3a9   : > { %2491 = vmatpush.msra.mxu2 %v5574_v22  ;;  %v5603_v8 = vpop.eup %3367  ;;  %3381 = vpow2.f32 %v2043_v39  ;;  %v6541_v39 = vld [vmem:[#allocation65_spill] sm:$0xff] }
 0x3aa   : > { %2510 = vmatpush.msra.mxu3 %v5579_v11  ;;  %v3370_v63 = vpop.eup %3369  ;;  %3383 = vpow2.f32 %v2039_v16  ;;  %v2158_v7 = vadd.f32 %v5269_v19, %v2157_v51 }
 0x3ab   : > { %2492 = vmatpush.msra.mxu2 %v5584_v47  ;;  %v5611_v0 = vpop.eup %3371  ;;  %3385 = vpow2.f32 %v2035_v54 }
 0x3ac   : > { %2511 = vmatpush.msra.mxu3 %v5588_v52  ;;  %v3374_v36 = vpop.eup %3373  ;;  %3387 = vpow2.f32 %v2031_v25  ;;  %v2159_v42 = vadd.f32 %v6539_v10, %v2158_v7 }
 0x3ad   : > { %2493 = vmatpush.msra.mxu2 %v5592_v56  ;;  %v5616_v17 = vpop.eup %3375  ;;  %v2253_v3 = vadd.f32 %v3374_v36, %v2252_v4  ;;  %3389 = vpow2.f32 %v2027_v12 }
 0x3ae   : > { %2512 = vmatpush.msra.mxu3 %v5597_v43  ;;  %v5623_v40 = vpop.eup %3377  ;;  %3391 = vpow2.f32 %v2023_v45  ;;  %v2160_v21 = vadd.f32 %v5421_v60, %v2159_v42 }
 0x3af   : > { %2494 = vmatpush.msra.mxu2 %v3366_v53  ;;  %v5629_v15 = vpop.eup %3379  ;;  %v2254_v62 = vadd.f32 %v3370_v63, %v2253_v3  ;;  %3393 = vpow2.f32 %v2019_v20  ;;  %v6547_v3 = vld [vmem:[#allocation48_spill] sm:$0xff] }
 0x3b0   : > { %2513 = vmatpush.msra.mxu3 %v5603_v8  ;;  %v3382_v23 = vpop.eup %3381  ;;  %v2161_v50 = vadd.f32 %v5416_v41, %v2160_v21 }
 0x3b1   : > { %2495 = vmatpush.msra.mxu2 %v3370_v63  ;;  %v2255_v58 = vadd.f32 %v3366_v53, %v2254_v62 }
 0x3b2   : > { %2514 = vmatpush.msra.mxu3 %v5611_v0 }
 0x3b3   : > { %2496 = vmatpush.msra.mxu2 %v3374_v36  ;;  %v2256_v63 = vadd.f32 %v5592_v56, %v2255_v58  ;;  %v2162_v36 = vadd.f32 %v5409_v37, %v2161_v50 }
 0x3b4   : > { %2515 = vmatpush.msra.mxu3 %v5616_v17 }
 0x3b5   : > { %2497 = vmatpush.msra.mxu2 %v5554_v55  ;;  %v3384_v55 = vpop.eup %3383  ;;  %v2257_v53 = vadd.f32 %v5584_v47, %v2256_v63  ;;  %v2163_v60 = vadd.f32 %v5402_v38, %v2162_v36 }
 0x3b6   : > { %2516 = vmatpush.msra.mxu3 %v5623_v40  ;;  %v3386_v35 = vpop.eup %3385 }
 0x3b7   : > { %2498 = vmatpush.msra.mxu2 %v5548_v27  ;;  %v3388_v27 = vpop.eup %3387  ;;  %v2258_v16 = vadd.f32 %v5574_v22, %v2257_v53  ;;  %v2164_v44 = vadd.f32 %v5395_v14, %v2163_v60  ;;  %v6545_v14 = vld [vmem:[#allocation42_spill] sm:$0xff] }
 0x3b8   : > { %2517 = vmatpush.msra.mxu3 %v5629_v15  ;;  %v3390_v48 = vpop.eup %3389 }
 0x3b9   : > { %2499 = vmatpush.msra.mxu2 %v6536_v31  ;;  %v3392_v19 = vpop.eup %3391  ;;  %v2259_v56 = vadd.f32 %v5565_v30, %v2258_v16  ;;  %v2165_v54 = vadd.f32 %v5388_v2, %v2164_v44  ;;  %v6543_v30 = vld [vmem:[#allocation35_spill] sm:$0xff]  ;;  %v2560_v16 = vlaneseq }
 0x3ba   : > { %2518 = vmatpush.msra.mxu3 %v3382_v23  ;;  %v3394_v49 = vpop.eup %3393 }
 0x3bb   : > { %2500 = vmatpush.msra.mxu2 %v6537_v29  ;;  %v2260_v9 = vadd.f32 %v5559_v61, %v2259_v56  ;;  %v2166_v47 = vadd.f32 %v5381_v24, %v2165_v54  ;;  %v2559_v56 = vld [vmem:[%s297_s30] sm:$0x3]  ;;  %v2561_v54 = vshrl.u32 %v2560_v16, 7  ;;  %vm2600_vm12 = vcmp.lt.s32.totalorder %v2560_v16, 256 }
 0x3bc   : > { %2519 = vmatpush.msra.mxu3 %v3384_v55 }
 0x3bd   : > { %2501 = vmatpush.msra.mxu2 %v6538_v26  ;;  %v2167_v41 = vadd.f32 %v5372_v33, %v2166_v47 }
 0x3be   : > { %2520 = vmatpush.msra.mxu3 %v3386_v35 }
 0x3bf   : > { %2502 = vmatpush.msra.mxu2 %v6540_v18  ;;  %v2168_v37 = vadd.f32 %v5363_v46, %v2167_v41  ;;  %v6548_v46 = vld [vmem:[#allocation51_spill] sm:$0xff] }
 0x3c0   : > { %2521 = vmatpush.msra.mxu3 %v3388_v27 }
 0x3c1   : > { %2503 = vmatpush.msra.mxu2 %v6541_v39  ;;  %v2169_v32 = vadd.f32 %v6543_v30, %v2168_v37 }
 0x3c2   : > { %2522 = vmatpush.msra.mxu3 %v3390_v48 }
 0x3c3   : > { %2504 = vmatpush.msra.mxu2 %v6542_v34  ;;  %v2170_v61 = vadd.f32 %v6544_v13, %v2169_v32  ;;  %v3483_v13 = vmov 0.0  }
 0x3c4   : > { %2523 = vmatpush.msra.mxu3 %v3392_v19  ;;  %2505 = vmatmul.f32.vlgmr.msra.gmra.mxu2 %v5431_v28  ;;  %v2261_v28 = vadd.f32 %v3394_v49, %v2260_v9 }
 0x3c5   : > { %v2171_v57 = vadd.f32 %v6545_v14, %v2170_v61  ;;  %v2306_v42 = vpop.f32.mrf.mxu2 }
 0x3c6   : > { %2524 = vmatpush.msra.mxu3 %v3394_v49 }
 0x3c7   : > { %2525 = vmatmul.f32.vlgmr.msra.gmra.mxu3 %v5438_v5  ;;  %v2262_v5 = vadd.f32 %v3392_v19, %v2261_v28  ;;  %v2172_v12 = vadd.f32 %v6546_v1, %v2171_v57 }
 0x3c9   : > { %v2263_v4 = vadd.f32 %v3390_v48, %v2262_v5  ;;  %v2173_v33 = vadd.f32 %v6547_v3, %v2172_v12  ;;  %v2562_v5 = vperm.slane %v2559_v56, 0 }
 0x3cb   : > { %v2264_v22 = vadd.f32 %v3388_v27, %v2263_v4  ;;  %v2174_v45 = vadd.f32 %v6548_v46, %v2173_v33  ;;  %vm2564_vm5 = vcmp.eq.s32.totalorder %v2561_v54, %v2562_v5  ;;  %v2563_v46 = vperm.slane %v2559_v56, 1 }
 0x3cc   : > { %v2938_v61 = vsel %vm2564_vm5, 1.0, %v3483_v13 }
 0x3cd   : > { %v2265_v59 = vadd.f32 %v3386_v35, %v2264_v22  ;;  %vm2565_vm9 = vcmp.eq.s32.totalorder %v2561_v54, %v2563_v46 }
 0x3cf   : > { %v2266_v38 = vadd.f32 %v3384_v55, %v2265_v59  ;;  %v6549_v55 = vld [vmem:[#allocation56_spill] sm:$0xff]  ;;  %v2346_v19 = vpop.f32.mrf.mxu2 }
 0x3d0   : > { %v2175_v20 = vadd.f32 %v6549_v55, %v2174_v45 }
 0x3d1   : > { %v2267_v25 = vadd.f32 %v3382_v23, %v2266_v38 }
 0x3d2   : > { %v2176_v62 = vrot.slane %v2175_v20, 4 }
 0x3d3   : > { %v2268_v2 = vadd.f32 %v5629_v15, %v2267_v25 }
 0x3d4   : > { %v2177_v15 = vadd.f32 %v2176_v62, %v2175_v20 }
 0x3d5   : > { %v2269_v24 = vadd.f32 %v5623_v40, %v2268_v2 }
 0x3d6   : > { %v2178_v35 = vrot.slane %v2177_v15, 2 }
 0x3d7   : > { %v2270_v51 = vadd.f32 %v5616_v17, %v2269_v24 }
 0x3d8   : > { %v2179_v26 = vadd.f32 %v2178_v35, %v2177_v15 }
 0x3d9   : > { %v2271_v31 = vadd.f32 %v5611_v0, %v2270_v51 }
 0x3da   : > { %v2180_v27 = vrot.slane %v2179_v26, 1 }
 0x3db   : > { %v2272_v23 = vadd.f32 %v5603_v8, %v2271_v31  ;;  %v2326_v8 = vpop.f32.mrf.mxu3 }
 0x3dc   : > { %v2181_v0 = vadd.f32 %v2180_v27, %v2179_v26  ;;  %v2939_v26 = vsel %vm2565_vm9, 1.0, %v3483_v13 }
 0x3dd   : > { %v2273_v7 = vadd.f32 %v5597_v43, %v2272_v23 }
 0x3de   : > { %3395 = vrcp.f32 %v2181_v0  ;;  %v2540_v44 = vand.u32 2147483648, %v2181_v0  ;;  %vm2534_vm2 = vweird.f32 %v2181_v0  ;;  %v2538_v28 = vand.u32 2147483647, %v2181_v0 }
 0x3df   : > { %v2274_v29 = vadd.f32 %v5588_v52, %v2273_v7  ;;  %v2327_v52 = vadd.f32 %v2326_v8, %v2306_v42 }
 0x3e0   : > { %v2541_v22 = vor.u32 1.1754944e-38, %v2540_v44  ;;  %vm2539_vm4 = vcmp.eq.f32.partialorder %v2538_v28, 8.507059e+37 }
 0x3e1   : > { %v2275_v40 = vadd.f32 %v5579_v11, %v2274_v29  ;;  %v2347_v34 = vadd.f32 %v2346_v19, %v2327_v52 }
 0x3e3   : > { %v2276_v17 = vadd.f32 %v5568_v6, %v2275_v40  ;;  %v2366_v21 = vpop.f32.mrf.mxu3 }
 0x3e4   : > { %v3396_v48 = vpop.eup %3395  ;;  %v2367_v50 = vadd.f32 %v2366_v21, %v2347_v34 }
 0x3e5   : > { %v2277_v58 = vrot.slane %v2276_v17, 4  ;;  %v2530_v39 = vmul.f32 %v3396_v48, %v2181_v0  ;;  %vm2535_vm1 = vweird.f32 %v3396_v48 }
 0x3e6   : > { %vm2536_vm3 = vmor %vm2534_vm2, %vm2535_vm1 }
 0x3e7   : > { %v2278_v10 = vadd.f32 %v2277_v58, %v2276_v17  ;;  %v2531_v11 = vsub.f32 1.0, %v2530_v39  ;;  %v2386_v53 = vpop.f32.mrf.mxu2 }
 0x3e8   : > { %v2387_v60 = vadd.f32 %v2386_v53, %v2367_v50 }
 0x3e9   : > { %v2279_v18 = vrot.slane %v2278_v10, 2  ;;  %v2532_v49 = vmul.f32 %v3396_v48, %v2531_v11 }
 0x3eb   : > { %v2280_v43 = vadd.f32 %v2279_v18, %v2278_v10  ;;  %v2406_v36 = vpop.f32.mrf.mxu3  ;;  %v2533_v9 = vadd.f32 %v3396_v48, %v2532_v49 }
 0x3ec   : > { %v2407_v47 = vadd.f32 %v2406_v36, %v2387_v60 }
 0x3ed   : > { %v2281_v63 = vrot.slane %v2280_v43, 1  ;;  %v2537_v4 = vsel %vm2536_vm3, %v3396_v48, %v2533_v9 }
 0x3ee   : > { %v2542_v59 = vsel %vm2539_vm4, %v2541_v22, %v2537_v4 }
 0x3ef   : > { %v2282_v6 = vadd.f32 %v2281_v63, %v2280_v43  ;;  %v2543_v32 = vmul.f32 %v2542_v59, %v2407_v47 }
 0x3f1   : > { %3397 = vrcp.f32 %v2282_v6  ;;  %v2570_v25 = vmul.f32 %v2938_v61, %v2543_v32  ;;  %v2555_v45 = vand.u32 2147483648, %v2282_v6  ;;  %vm2549_vm7 = vweird.f32 %v2282_v6 }
 0x3f2   : > { %v2553_v55 = vand.u32 2147483647, %v2282_v6 }
 0x3f3   : > { %v2572_v1 = vrot.slane %v2570_v25, 4  ;;  %v2556_v29 = vor.u32 1.1754944e-38, %v2555_v45 }
 0x3f4   : > { %vm2554_vm10 = vcmp.eq.f32.partialorder %v2553_v55, 8.507059e+37 }
 0x3f5   : > { %v2573_v33 = vadd.f32 %v2572_v1, %v2570_v25 }
 0x3f7   : > { %v3398_v41 = vpop.eup %3397  ;;  %v2574_v23 = vrot.slane %v2573_v33, 2 }
 0x3f8   : > { %v2545_v38 = vmul.f32 %v3398_v41, %v2282_v6  ;;  %vm2550_vm6 = vweird.f32 %v3398_v41 }
 0x3f9   : > { %vm2551_vm8 = vmor %vm2549_vm7, %vm2550_vm6  ;;  %v2575_v17 = vadd.f32 %v2574_v23, %v2573_v33 }
 0x3fa   : > { %v2546_v14 = vsub.f32 1.0, %v2545_v38 }
 0x3fb   : > { %v2576_v0 = vrot.slane %v2575_v17, 1 }
 0x3fc   : > { %v2547_v12 = vmul.f32 %v3398_v41, %v2546_v14 }
 0x3fd   : > { %v2577_v8 = vadd.f32 %v2576_v0, %v2575_v17 }
 0x3fe   : > { %v2548_v51 = vadd.f32 %v3398_v41, %v2547_v12 }
 0x3ff   : > { %v2584_v43 = vadd.f32 1e-14, %v2577_v8 }
 0x400   : > { %v2552_v7 = vsel %vm2551_vm8, %v3398_v41, %v2548_v51 }
 0x401   : > { %v2557_v40 = vsel %vm2554_vm10, %v2556_v29, %v2552_v7  ;;  %3399 = vlog2.f32 %v2584_v43 }
 0x407   : > { %v2426_v37 = vpop.f32.mrf.mxu2  ;;  %v3400_v63 = vpop.eup %3399 }
 0x408   : > { %v2587_v11 = vmul.f32 0.6931472, %v3400_v63 }
 0x40a   : > { %v2446_v30 = vpop.f32.mrf.mxu3  ;;  %v2590_v49 = vsub.f32 0.0, %v2587_v11 }
 0x40b   : > { %v2447_v57 = vadd.f32 %v2446_v30, %v2426_v37 }
 0x427   : > { %v2466_v2 = vpop.f32.mrf.mxu2 }
 0x428   : > { %v2467_v3 = vadd.f32 %v2466_v2, %v2447_v57 }
 0x42a   : > { %v2486_v24 = vpop.f32.mrf.mxu3 }
 0x42b   : > { %v2487_v31 = vadd.f32 %v2486_v24, %v2467_v3 }
 0x447   : > { %v2506_v20 = vpop.f32.mrf.mxu2 }
 0x448   : > { %v2507_v62 = vadd.f32 %v2506_v20, %v2487_v31 }
 0x44a   : > { %v2526_v15 = vpop.f32.mrf.mxu3 }
 0x44b   : > { %v2527_v35 = vadd.f32 %v2526_v15, %v2507_v62 }
 0x44d   : > { %v2558_v27 = vmul.f32 %v2557_v40, %v2527_v35 }
 0x44f   : > { %v2571_v58 = vmul.f32 %v2939_v26, %v2558_v27 }
 0x451   : > { %v2578_v10 = vrot.slane %v2571_v58, 4 }
 0x453   : > { %v2579_v42 = vadd.f32 %v2578_v10, %v2571_v58 }
 0x455   : > { %v2580_v18 = vrot.slane %v2579_v42, 2 }
 0x457   : > { %v2581_v48 = vadd.f32 %v2580_v18, %v2579_v42 }
 0x459   : > { %v2582_v39 = vrot.slane %v2581_v48, 1 }
 0x45b   : > { %v2583_v19 = vadd.f32 %v2582_v39, %v2581_v48 }
 0x45d   : > { %v2585_v52 = vadd.f32 1e-14, %v2583_v19 }
 0x45f   : > { %3401 = vlog2.f32 %v2585_v52 }
 0x465   : > { %v3402_v21 = vpop.eup %3401 }
 0x466   : > { %v2589_v34 = vmul.f32 0.6931472, %v3402_v21 }
 0x468   : > { %v2591_v6 = vsub.f32 0.0, %v2589_v34 }
 0x46a   : > { %v2594_v53 = vrot.slane %v2591_v6, 7 }
 0x46c   : > { %v2596_v50 = vsel %vm2595_vm11, %v2590_v49, %v2594_v53 }
 0x46d   : > { %2602 = vst.msk [vmem:[%s269_s10] sm:$0x3] %vm2600_vm12, %v2596_v50 }
 0x46e   : > { %3430 = shalt.err (!%p3427_p5)
}
 0x46f   : > { %2955 = dma.vmem_to_hbm [thread:$0]  (%p3549_p4), %s2619_s11, 32, %s2621_s12, %s2604_s18  }
 0x470 PF: > { %p2961_p6 = scmp.ge.s32.totalorder %s3481_s20, 2  ;;  %s2632_s29 = sand.u32 1, %s3461_s15  }
 0x471   : > { %s2633_s5 = scalar_lea.sflag [#allocation3], %s2632_s29 }
 0x472   : > { %p2958_p7 = pnand %p2961_p6, %p3556_p8 }
 0x474   : > { %p2959_p9 = pneg %p2958_p7 }
 0x476   : > { %3456 = dma.done.wait (%p2959_p9), %s2633_s5, 32  }
 0x477   : > { %3458 = vsyncadd (%p2959_p9), %s2633_s5, 4294967264  ;;  %s17_s20 = sadd.s32 1, %s3481_s20   ;;  %s6550_s15 = smov %s3465_s16 }
 0x478   : > { %p14_p10 = scmp.ge.s32.totalorder %s17_s20, 4   ;;  %s6551_s16 = smov %s3469_s17 }
 0x479   : > { %s6552_s17 = smov %s3562_s28  ;;  %s6553_s18 = smov %s3477_s19 }
 0x47a   : > { %s6554_s19 = smov %s6556_s23  ;;  %16 = sbr.rel (!%p14_p10) target bundleno = 4 (0x4), region = 80 }
 0x47f   :  { %2639 = vsyncpa [#allocation3], 1 }
 0x480   :  { %2641 = vsyncpa [#allocation3 + $0x1], 1 }

</bundles_post_ra>
